<compile_context>
chip_gen: v7x
topology: tpu7x:2x2x1
jax: 0.10.0
libtpu: 0.0.40
codegen_flags: <defaults>
</compile_context>

<pallas_src>
import jax
import jax.numpy as jnp
from jax.experimental import pallas as pl
from jax.experimental.pallas import tpu as pltpu

# ----- reduced-size model config (PyTorch module uses D=768, 12 heads, 12 layers) -----
D = 256          # hidden size
H = 2            # attention heads -> head_dim = 128 (lane aligned)
DH = D // H
FF = 4 * D       # FFN intermediate
S = 64           # sequence length (max_length)
LAYERS = 2
VOCAB = 128
NUM_CLS = 4      # number of sentence [CLS] positions
LN_EPS = 1e-12   # BERT LayerNorm eps
CLS_PAD = 128    # classifier output padded to a full lane width


def _layernorm(x, g, b):
    mu = jnp.mean(x, axis=-1, keepdims=True)
    var = jnp.mean(jnp.square(x - mu), axis=-1, keepdims=True)
    return (x - mu) * jax.lax.rsqrt(var + LN_EPS) * g + b


# -------------------------- fused Pallas kernel --------------------------

def fused_forward_kernel(clss_ref,                                   # SMEM (scalar prefetch)
                         x_ref, wqkv_ref, bqkv_ref, wo_ref, bo_ref,
                         g1_ref, be1_ref, w1_ref, b1_ref, w2_ref, b2_ref,
                         g2_ref, be2_ref, wc_ref, bc_ref,            # inputs
                         out_ref,                                    # output
                         x_sc):                                      # VMEM scratch (S, D) f32
    l = pl.program_id(0)

    @pl.when(l == 0)
    def _():
        x_sc[...] = x_ref[...]                                       # bring x resident once

    x = x_sc[...]                                                    # (S, D) f32
    x_bf = x.astype(jnp.bfloat16)

    # ---- fused QKV projection (scale already folded into the Q weights) ----
    qkv = jnp.dot(x_bf, wqkv_ref[0],
                  preferred_element_type=jnp.float32) + bqkv_ref[0]  # (S, 3D) f32

    # ---- multi-head attention, per-head output projection accumulated ----
    wo = wo_ref[0]                                                   # (D, D) bf16
    attn = jnp.zeros((S, D), jnp.float32)
    for h in range(H):                                               # static unroll, lane-aligned
        q_h = qkv[:, h * DH:(h + 1) * DH]
        k_h = qkv[:, D + h * DH:D + (h + 1) * DH]
        v_h = qkv[:, 2 * D + h * DH:2 * D + (h + 1) * DH]
        s = jnp.dot(q_h.astype(jnp.bfloat16), k_h.astype(jnp.bfloat16).T,
                    preferred_element_type=jnp.float32)              # (S, S)
        s = s - jnp.max(s, axis=-1, keepdims=True)
        p = jnp.exp(s)
        p = p * pl.reciprocal(jnp.sum(p, axis=-1, keepdims=True), approx=True)
        ctx_h = jnp.dot(p.astype(jnp.bfloat16), v_h.astype(jnp.bfloat16),
                        preferred_element_type=jnp.float32)          # (S, DH)
        attn = attn + jnp.dot(ctx_h.astype(jnp.bfloat16),
                              wo[h * DH:(h + 1) * DH, :],
                              preferred_element_type=jnp.float32)
    attn = attn + bo_ref[0]

    h1 = _layernorm(x + attn, g1_ref[0], be1_ref[0])                 # f32

    # ---- FFN ----
    ff = jnp.dot(h1.astype(jnp.bfloat16), w1_ref[0],
                 preferred_element_type=jnp.float32) + b1_ref[0]
    ff = jax.nn.gelu(ff, approximate=True)
    ff = jnp.dot(ff.astype(jnp.bfloat16), w2_ref[0],
                 preferred_element_type=jnp.float32) + b2_ref[0]

    x_new = _layernorm(h1 + ff, g2_ref[0], be2_ref[0])               # (S, D) f32
    x_sc[...] = x_new

    # ---- classifier head on the final layer's output ----
    @pl.when(l == pl.num_programs(0) - 1)
    def _():
        # Replaces the python loop `output[i,:] = classifier(out[clss[i],:])`
        pos = jax.lax.broadcasted_iota(jnp.int32, (1, S), 1)
        sel = jnp.concatenate(
            [(pos == clss_ref[i]).astype(jnp.float32) for i in range(NUM_CLS)],
            axis=0)                                                  # one-hot (NUM_CLS, S)
        gathered = jnp.dot(sel, x_new,
                           preferred_element_type=jnp.float32)       # (NUM_CLS, D)
        logits = jnp.dot(gathered.astype(jnp.bfloat16), wc_ref[...],
                         preferred_element_type=jnp.float32) + bc_ref[...]
        out_ref[...] = jax.nn.sigmoid(logits)                        # (NUM_CLS, CLS_PAD)


# -------------------------- Pallas wrapper --------------------------

@jax.jit
def bert_sum_forward(kp, ids, clss):
    x = embed(kp, ids)                                               # glue: embedding + LN (f32)

    grid_spec = pltpu.PrefetchScalarGridSpec(
        num_scalar_prefetch=1,                                       # clss -> SMEM
        grid=(LAYERS,),
        in_specs=[
            pl.BlockSpec((S, D), lambda l, c: (0, 0)),               # x (DMA'd once)
            pl.BlockSpec((1, D, 3 * D), lambda l, c: (l, 0, 0)),     # wqkv (bf16, streamed)
            pl.BlockSpec((1, 1, 3 * D), lambda l, c: (l, 0, 0)),     # bqkv
            pl.BlockSpec((1, D, D), lambda l, c: (l, 0, 0)),         # wo
            pl.BlockSpec((1, 1, D), lambda l, c: (l, 0, 0)),         # bo
            pl.BlockSpec((1, 1, D), lambda l, c: (l, 0, 0)),         # g1
            pl.BlockSpec((1, 1, D), lambda l, c: (l, 0, 0)),         # be1
            pl.BlockSpec((1, D, FF), lambda l, c: (l, 0, 0)),        # w1
            pl.BlockSpec((1, 1, FF), lambda l, c: (l, 0, 0)),        # b1
            pl.BlockSpec((1, FF, D), lambda l, c: (l, 0, 0)),        # w2
            pl.BlockSpec((1, 1, D), lambda l, c: (l, 0, 0)),         # b2
            pl.BlockSpec((1, 1, D), lambda l, c: (l, 0, 0)),         # g2
            pl.BlockSpec((1, 1, D), lambda l, c: (l, 0, 0)),         # be2
            pl.BlockSpec((D, CLS_PAD), lambda l, c: (0, 0)),         # classifier W (padded)
            pl.BlockSpec((1, CLS_PAD), lambda l, c: (0, 0)),         # classifier b (padded)
        ],
        out_specs=pl.BlockSpec((NUM_CLS, CLS_PAD), lambda l, c: (0, 0)),
        scratch_shapes=[pltpu.VMEM((S, D), jnp.float32)],            # resident activation
    )

    out = pl.pallas_call(
        fused_forward_kernel,
        grid_spec=grid_spec,
        out_shape=jax.ShapeDtypeStruct((NUM_CLS, CLS_PAD), jnp.float32),
        compiler_params=pltpu.CompilerParams(dimension_semantics=("arbitrary",)),
    )(clss, x, kp["wqkv"], kp["bqkv"], kp["wo"], kp["bo"], kp["g1"], kp["be1"],
      kp["w1"], kp["b1"], kp["w2"], kp["b2"], kp["g2"], kp["be2"],
      kp["wc"], kp["bc"])
    return out[:, :2]                                                # (len(clss), 2)


# -------------------------- params + packing + glue --------------------------

def init_params(key):
    k_iter = iter(jax.random.split(key, 8 + 6 * LAYERS))

    def nrm(shape):
        return 0.02 * jax.random.normal(next(k_iter), shape, jnp.float32)

    params = {
        "tok_emb": nrm((VOCAB, D)),
        "pos_emb": nrm((S, D)),
        "emb_g": jnp.ones((1, D), jnp.float32),
        "emb_b": jnp.zeros((1, D), jnp.float32),
        "cls_w": nrm((D, 2)),
        "cls_b": jnp.zeros((1, 2), jnp.float32),
        "layers": [],
    }
    for _ in range(LAYERS):
        params["layers"].append({
            "wq": nrm((D, D)), "bq": jnp.zeros((1, D), jnp.float32),
            "wk": nrm((D, D)), "bk": jnp.zeros((1, D), jnp.float32),
            "wv": nrm((D, D)), "bv": jnp.zeros((1, D), jnp.float32),
            "wo": nrm((D, D)), "bo": jnp.zeros((1, D), jnp.float32),
            "g1": jnp.ones((1, D), jnp.float32), "be1": jnp.zeros((1, D), jnp.float32),
            "w1": nrm((D, FF)), "b1": jnp.zeros((1, FF), jnp.float32),
            "w2": nrm((FF, D)), "b2": jnp.zeros((1, D), jnp.float32),
            "g2": jnp.ones((1, D), jnp.float32), "be2": jnp.zeros((1, D), jnp.float32),
        })
    return params


def pack_params(p):
    """One-time packing: stack layers, fuse QKV, fold 1/sqrt(DH) into Q,
    cast matmul weights to bf16, pad classifier to a full lane width."""
    scale = 1.0 / (DH ** 0.5)

    def stack(name):
        return jnp.stack([lp[name] for lp in p["layers"]], axis=0)

    wqkv = jnp.concatenate([stack("wq") * scale, stack("wk"), stack("wv")], axis=-1)
    bqkv = jnp.concatenate([stack("bq") * scale, stack("bk"), stack("bv")], axis=-1)

    wc = jnp.zeros((D, CLS_PAD), jnp.float32).at[:, :2].set(p["cls_w"])
    bc = jnp.zeros((1, CLS_PAD), jnp.float32).at[:, :2].set(p["cls_b"])

    return {
        "tok_emb": p["tok_emb"], "pos_emb": p["pos_emb"],
        "emb_g": p["emb_g"], "emb_b": p["emb_b"],
        "wqkv": wqkv.astype(jnp.bfloat16), "bqkv": bqkv,
        "wo": stack("wo").astype(jnp.bfloat16), "bo": stack("bo"),
        "g1": stack("g1"), "be1": stack("be1"),
        "w1": stack("w1").astype(jnp.bfloat16), "b1": stack("b1"),
        "w2": stack("w2").astype(jnp.bfloat16), "b2": stack("b2"),
        "g2": stack("g2"), "be2": stack("be2"),
        "wc": wc.astype(jnp.bfloat16), "bc": bc,
    }


def embed(params, ids):
    x = params["tok_emb"][ids] + params["pos_emb"][jnp.arange(S)]
    return _layernorm(x, params["emb_g"], params["emb_b"])


# -------------------------- pure-JAX reference --------------------------

def reference_forward(params, ids, clss):
    x = embed(params, ids)
    for lp in params["layers"]:
        q = x @ lp["wq"] + lp["bq"]
        k = x @ lp["wk"] + lp["bk"]
        v = x @ lp["wv"] + lp["bv"]
        heads = []
        for h in range(H):
            sl = slice(h * DH, (h + 1) * DH)
            s = (q[:, sl] @ k[:, sl].T) / (DH ** 0.5)
            p = jax.nn.softmax(s, axis=-1)
            heads.append(p @ v[:, sl])
        attn = jnp.concatenate(heads, axis=-1) @ lp["wo"] + lp["bo"]
        h1 = _layernorm(x + attn, lp["g1"], lp["be1"])
        ff = jax.nn.gelu(h1 @ lp["w1"] + lp["b1"], approximate=True) @ lp["w2"] + lp["b2"]
        x = _layernorm(h1 + ff, lp["g2"], lp["be2"])
    gathered = x[clss]
    return jax.nn.sigmoid(gathered @ params["cls_w"] + params["cls_b"])


if __name__ == "__main__":
    key = jax.random.PRNGKey(0)
    raw_params = init_params(key)
    kparams = pack_params(raw_params)                 # packed once, outside the forward

    ids = jax.random.randint(jax.random.fold_in(key, 1), (S,), 0, VOCAB, jnp.int32)
    clss = jnp.array([0, 10, 25, 40], dtype=jnp.int32)   # sentence CLS positions

    out = bert_sum_forward(kparams, ids, clss)
    out = jax.block_until_ready(out)

    ref = reference_forward(raw_params, ids, clss)
    assert out.shape == (NUM_CLS, 2), out.shape
    assert jnp.max(jnp.abs(out - ref)) < 5e-2, float(jnp.max(jnp.abs(out - ref)))

    print("KERNEL_OK")
</pallas_src>

<mosaic_0001>
module attributes {stable_mosaic.version = 11 : i64} {
  func.func @fused_forward_kernel(%arg0: i32, %arg1: memref<4xi32, #tpu.memory_space<smem>>, %arg2: memref<64x256xf32, #tpu.memory_space<vmem>>, %arg3: memref<1x256x768xbf16, #tpu.memory_space<vmem>>, %arg4: memref<1x1x768xf32, #tpu.memory_space<vmem>>, %arg5: memref<1x256x256xbf16, #tpu.memory_space<vmem>>, %arg6: memref<1x1x256xf32, #tpu.memory_space<vmem>>, %arg7: memref<1x1x256xf32, #tpu.memory_space<vmem>>, %arg8: memref<1x1x256xf32, #tpu.memory_space<vmem>>, %arg9: memref<1x256x1024xbf16, #tpu.memory_space<vmem>>, %arg10: memref<1x1x1024xf32, #tpu.memory_space<vmem>>, %arg11: memref<1x1024x256xbf16, #tpu.memory_space<vmem>>, %arg12: memref<1x1x256xf32, #tpu.memory_space<vmem>>, %arg13: memref<1x1x256xf32, #tpu.memory_space<vmem>>, %arg14: memref<1x1x256xf32, #tpu.memory_space<vmem>>, %arg15: memref<256x128xbf16, #tpu.memory_space<vmem>>, %arg16: memref<1x128xf32, #tpu.memory_space<vmem>>, %arg17: memref<4x128xf32, #tpu.memory_space<vmem>>, %arg18: memref<64x256xf32, #tpu.memory_space<vmem>>) attributes {dimension_semantics = [#tpu.dimension_semantics<arbitrary>], iteration_bounds = array<i64: 2>, scalar_prefetch = 1 : i64, scratch_operands = 1 : i64, tpu.core_type = #tpu.core_type<tc>, window_params = [{pipeline_mode = #tpu.pipeline_mode<synchronous>, transform_indices = @transform_0, window_bounds = array<i64: 64, 256>}, {transform_indices = @transform_1, window_bounds = array<i64: 1, 256, 768>}, {transform_indices = @transform_2, window_bounds = array<i64: 1, 1, 768>}, {transform_indices = @transform_3, window_bounds = array<i64: 1, 256, 256>}, {transform_indices = @transform_4, window_bounds = array<i64: 1, 1, 256>}, {transform_indices = @transform_5, window_bounds = array<i64: 1, 1, 256>}, {transform_indices = @transform_6, window_bounds = array<i64: 1, 1, 256>}, {transform_indices = @transform_7, window_bounds = array<i64: 1, 256, 1024>}, {transform_indices = @transform_8, window_bounds = array<i64: 1, 1, 1024>}, {transform_indices = @transform_9, window_bounds = array<i64: 1, 1024, 256>}, {transform_indices = @transform_10, window_bounds = array<i64: 1, 1, 256>}, {transform_indices = @transform_11, window_bounds = array<i64: 1, 1, 256>}, {transform_indices = @transform_12, window_bounds = array<i64: 1, 1, 256>}, {pipeline_mode = #tpu.pipeline_mode<synchronous>, transform_indices = @transform_13, window_bounds = array<i64: 256, 128>}, {pipeline_mode = #tpu.pipeline_mode<synchronous>, transform_indices = @transform_14, window_bounds = array<i64: 1, 128>}, {pipeline_mode = #tpu.pipeline_mode<synchronous>, transform_indices = @transform_15, window_bounds = array<i64: 4, 128>}]} {
    %c0_i32 = arith.constant 0 : i32
    %0 = arith.cmpi eq, %arg0, %c0_i32 : i32
    %1 = arith.extui %0 : i1 to i32
    %c0_i32_0 = arith.constant 0 : i32
    %2 = arith.cmpi ne, %1, %c0_i32_0 : i32
    scf.if %2 {
      %c0_68 = arith.constant 0 : index
      %c0_69 = arith.constant 0 : index
      %154 = vector.load %arg2[%c0_68, %c0_69] : memref<64x256xf32, #tpu.memory_space<vmem>>, vector<64x256xf32>
      %c0_70 = arith.constant 0 : index
      %c0_71 = arith.constant 0 : index
      %155 = vector.load %arg18[%c0_70, %c0_71] : memref<64x256xf32, #tpu.memory_space<vmem>>, vector<64x256xf32>
      tpu.vector_store %arg18[%c0_70, %c0_71], %154 {strides = array<i32>} : memref<64x256xf32, #tpu.memory_space<vmem>>, vector<64x256xf32>,
    } else {
    }
    %c0 = arith.constant 0 : index
    %c0_1 = arith.constant 0 : index
    %3 = vector.load %arg18[%c0, %c0_1] : memref<64x256xf32, #tpu.memory_space<vmem>>, vector<64x256xf32>
    %4 = arith.truncf %3 : vector<64x256xf32> to vector<64x256xbf16>
    %c0_2 = arith.constant 0 : index
    %c0_3 = arith.constant 0 : index
    %c0_4 = arith.constant 0 : index
    %5 = vector.load %arg3[%c0_2, %c0_3, %c0_4] : memref<1x256x768xbf16, #tpu.memory_space<vmem>>, vector<1x256x768xbf16>
    %6 = vector.shape_cast %5 : vector<1x256x768xbf16> to vector<256x768xbf16>
    %cst = arith.constant dense<0.000000e+00> : vector<64x768xf32>
    %7 = tpu.matmul %4, %6, %cst {dimension_numbers = #tpu.dot_dimension_numbers<[1], [0], [0], [1], [0, 0, 1, 1], [], []>} : vector<64x256xbf16>, vector<256x768xbf16>, vector<64x768xf32> -> vector<64x768xf32>
    %c0_5 = arith.constant 0 : index
    %c0_6 = arith.constant 0 : index
    %c0_7 = arith.constant 0 : index
    %8 = vector.load %arg4[%c0_5, %c0_6, %c0_7] : memref<1x1x768xf32, #tpu.memory_space<vmem>>, vector<1x1x768xf32>
    %9 = vector.shape_cast %8 : vector<1x1x768xf32> to vector<1x768xf32>
    %10 = vector.broadcast %9 : vector<1x768xf32> to vector<64x768xf32>
    %11 = arith.addf %7, %10 : vector<64x768xf32>
    %c0_8 = arith.constant 0 : index
    %c0_9 = arith.constant 0 : index
    %c0_10 = arith.constant 0 : index
    %12 = vector.load %arg5[%c0_8, %c0_9, %c0_10] : memref<1x256x256xbf16, #tpu.memory_space<vmem>>, vector<1x256x256xbf16>
    %13 = vector.shape_cast %12 : vector<1x256x256xbf16> to vector<256x256xbf16>
    %cst_11 = arith.constant 0.000000e+00 : f32
    %14 = vector.broadcast %cst_11 : f32 to vector<64x256xf32>
    %15 = vector.extract_strided_slice %11 {offsets = [0, 0], sizes = [64, 128], strides = [1, 1]} : vector<64x768xf32> to vector<64x128xf32>
    %16 = vector.extract_strided_slice %11 {offsets = [0, 256], sizes = [64, 128], strides = [1, 1]} : vector<64x768xf32> to vector<64x128xf32>
    %17 = vector.extract_strided_slice %11 {offsets = [0, 512], sizes = [64, 128], strides = [1, 1]} : vector<64x768xf32> to vector<64x128xf32>
    %18 = arith.truncf %15 : vector<64x128xf32> to vector<64x128xbf16>
    %19 = arith.truncf %16 : vector<64x128xf32> to vector<64x128xbf16>
    %20 = tpu.transpose %19, [1, 0] : vector<64x128xbf16> -> vector<128x64xbf16>
    %cst_12 = arith.constant dense<0.000000e+00> : vector<64x64xf32>
    %21 = tpu.matmul %18, %20, %cst_12 {dimension_numbers = #tpu.dot_dimension_numbers<[1], [0], [0], [1], [0, 0, 1, 1], [], []>} : vector<64x128xbf16>, vector<128x64xbf16>, vector<64x64xf32> -> vector<64x64xf32>
    %cst_13 = arith.constant dense<0xFF800000> : vector<64xf32>
    %22 = vector.multi_reduction <maximumf>, %21, %cst_13 [1] : vector<64x64xf32> to vector<64xf32>
    %23 = vector.shape_cast %22 : vector<64xf32> to vector<64x1xf32>
    %24 = vector.broadcast %23 : vector<64x1xf32> to vector<64x64xf32>
    %25 = arith.subf %21, %24 : vector<64x64xf32>
    %26 = math.exp %25 : vector<64x64xf32>
    %cst_14 = arith.constant dense<0.000000e+00> : vector<64xf32>
    %27 = vector.multi_reduction <add>, %26, %cst_14 [1] : vector<64x64xf32> to vector<64xf32>
    %28 = vector.shape_cast %27 : vector<64xf32> to vector<64x1xf32>
    %29 = tpu.reciprocal %28 {approx = true} : vector<64x1xf32> -> vector<64x1xf32>
    %30 = vector.broadcast %29 : vector<64x1xf32> to vector<64x64xf32>
    %31 = arith.mulf %26, %30 : vector<64x64xf32>
    %32 = arith.truncf %31 : vector<64x64xf32> to vector<64x64xbf16>
    %33 = arith.truncf %17 : vector<64x128xf32> to vector<64x128xbf16>
    %cst_15 = arith.constant dense<0.000000e+00> : vector<64x128xf32>
    %34 = tpu.matmul %32, %33, %cst_15 {dimension_numbers = #tpu.dot_dimension_numbers<[1], [0], [0], [1], [0, 0, 1, 1], [], []>} : vector<64x64xbf16>, vector<64x128xbf16>, vector<64x128xf32> -> vector<64x128xf32>
    %35 = arith.truncf %34 : vector<64x128xf32> to vector<64x128xbf16>
    %36 = vector.extract_strided_slice %13 {offsets = [0, 0], sizes = [128, 256], strides = [1, 1]} : vector<256x256xbf16> to vector<128x256xbf16>
    %cst_16 = arith.constant dense<0.000000e+00> : vector<64x256xf32>
    %37 = tpu.matmul %35, %36, %cst_16 {dimension_numbers = #tpu.dot_dimension_numbers<[1], [0], [0], [1], [0, 0, 1, 1], [], []>} : vector<64x128xbf16>, vector<128x256xbf16>, vector<64x256xf32> -> vector<64x256xf32>
    %38 = arith.addf %14, %37 : vector<64x256xf32>
    %39 = vector.extract_strided_slice %11 {offsets = [0, 128], sizes = [64, 128], strides = [1, 1]} : vector<64x768xf32> to vector<64x128xf32>
    %40 = vector.extract_strided_slice %11 {offsets = [0, 384], sizes = [64, 128], strides = [1, 1]} : vector<64x768xf32> to vector<64x128xf32>
    %41 = vector.extract_strided_slice %11 {offsets = [0, 640], sizes = [64, 128], strides = [1, 1]} : vector<64x768xf32> to vector<64x128xf32>
    %42 = arith.truncf %39 : vector<64x128xf32> to vector<64x128xbf16>
    %43 = arith.truncf %40 : vector<64x128xf32> to vector<64x128xbf16>
    %44 = tpu.transpose %43, [1, 0] : vector<64x128xbf16> -> vector<128x64xbf16>
    %cst_17 = arith.constant dense<0.000000e+00> : vector<64x64xf32>
    %45 = tpu.matmul %42, %44, %cst_17 {dimension_numbers = #tpu.dot_dimension_numbers<[1], [0], [0], [1], [0, 0, 1, 1], [], []>} : vector<64x128xbf16>, vector<128x64xbf16>, vector<64x64xf32> -> vector<64x64xf32>
    %cst_18 = arith.constant dense<0xFF800000> : vector<64xf32>
    %46 = vector.multi_reduction <maximumf>, %45, %cst_18 [1] : vector<64x64xf32> to vector<64xf32>
    %47 = vector.shape_cast %46 : vector<64xf32> to vector<64x1xf32>
    %48 = vector.broadcast %47 : vector<64x1xf32> to vector<64x64xf32>
    %49 = arith.subf %45, %48 : vector<64x64xf32>
    %50 = math.exp %49 : vector<64x64xf32>
    %cst_19 = arith.constant dense<0.000000e+00> : vector<64xf32>
    %51 = vector.multi_reduction <add>, %50, %cst_19 [1] : vector<64x64xf32> to vector<64xf32>
    %52 = vector.shape_cast %51 : vector<64xf32> to vector<64x1xf32>
    %53 = tpu.reciprocal %52 {approx = true} : vector<64x1xf32> -> vector<64x1xf32>
    %54 = vector.broadcast %53 : vector<64x1xf32> to vector<64x64xf32>
    %55 = arith.mulf %50, %54 : vector<64x64xf32>
    %56 = arith.truncf %55 : vector<64x64xf32> to vector<64x64xbf16>
    %57 = arith.truncf %41 : vector<64x128xf32> to vector<64x128xbf16>
    %cst_20 = arith.constant dense<0.000000e+00> : vector<64x128xf32>
    %58 = tpu.matmul %56, %57, %cst_20 {dimension_numbers = #tpu.dot_dimension_numbers<[1], [0], [0], [1], [0, 0, 1, 1], [], []>} : vector<64x64xbf16>, vector<64x128xbf16>, vector<64x128xf32> -> vector<64x128xf32>
    %59 = arith.truncf %58 : vector<64x128xf32> to vector<64x128xbf16>
    %60 = vector.extract_strided_slice %13 {offsets = [128, 0], sizes = [128, 256], strides = [1, 1]} : vector<256x256xbf16> to vector<128x256xbf16>
    %cst_21 = arith.constant dense<0.000000e+00> : vector<64x256xf32>
    %61 = tpu.matmul %59, %60, %cst_21 {dimension_numbers = #tpu.dot_dimension_numbers<[1], [0], [0], [1], [0, 0, 1, 1], [], []>} : vector<64x128xbf16>, vector<128x256xbf16>, vector<64x256xf32> -> vector<64x256xf32>
    %62 = arith.addf %38, %61 : vector<64x256xf32>
    %c0_22 = arith.constant 0 : index
    %c0_23 = arith.constant 0 : index
    %c0_24 = arith.constant 0 : index
    %63 = vector.load %arg6[%c0_22, %c0_23, %c0_24] : memref<1x1x256xf32, #tpu.memory_space<vmem>>, vector<1x1x256xf32>
    %64 = vector.shape_cast %63 : vector<1x1x256xf32> to vector<1x256xf32>
    %65 = vector.broadcast %64 : vector<1x256xf32> to vector<64x256xf32>
    %66 = arith.addf %62, %65 : vector<64x256xf32>
    %67 = arith.addf %3, %66 : vector<64x256xf32>
    %c0_25 = arith.constant 0 : index
    %c0_26 = arith.constant 0 : index
    %c0_27 = arith.constant 0 : index
    %68 = vector.load %arg7[%c0_25, %c0_26, %c0_27] : memref<1x1x256xf32, #tpu.memory_space<vmem>>, vector<1x1x256xf32>
    %69 = vector.shape_cast %68 : vector<1x1x256xf32> to vector<1x256xf32>
    %c0_28 = arith.constant 0 : index
    %c0_29 = arith.constant 0 : index
    %c0_30 = arith.constant 0 : index
    %70 = vector.load %arg8[%c0_28, %c0_29, %c0_30] : memref<1x1x256xf32, #tpu.memory_space<vmem>>, vector<1x1x256xf32>
    %71 = vector.shape_cast %70 : vector<1x1x256xf32> to vector<1x256xf32>
    %cst_31 = arith.constant dense<0.000000e+00> : vector<64xf32>
    %72 = vector.multi_reduction <add>, %67, %cst_31 [1] : vector<64x256xf32> to vector<64xf32>
    %73 = vector.shape_cast %72 : vector<64xf32> to vector<64x1xf32>
    %cst_32 = arith.constant 2.560000e+02 : f32
    %74 = vector.broadcast %cst_32 : f32 to vector<64x1xf32>
    %75 = arith.divf %73, %74 : vector<64x1xf32>
    %76 = vector.broadcast %75 : vector<64x1xf32> to vector<64x256xf32>
    %77 = arith.subf %67, %76 : vector<64x256xf32>
    %78 = arith.mulf %77, %77 : vector<64x256xf32>
    %cst_33 = arith.constant dense<0.000000e+00> : vector<64xf32>
    %79 = vector.multi_reduction <add>, %78, %cst_33 [1] : vector<64x256xf32> to vector<64xf32>
    %80 = vector.shape_cast %79 : vector<64xf32> to vector<64x1xf32>
    %cst_34 = arith.constant 2.560000e+02 : f32
    %81 = vector.broadcast %cst_34 : f32 to vector<64x1xf32>
    %82 = arith.divf %80, %81 : vector<64x1xf32>
    %83 = vector.broadcast %75 : vector<64x1xf32> to vector<64x256xf32>
    %84 = arith.subf %67, %83 : vector<64x256xf32>
    %cst_35 = arith.constant 9.99999996E-13 : f32
    %85 = vector.broadcast %cst_35 : f32 to vector<64x1xf32>
    %86 = arith.addf %82, %85 : vector<64x1xf32>
    %87 = math.rsqrt %86 : vector<64x1xf32>
    %88 = vector.broadcast %87 : vector<64x1xf32> to vector<64x256xf32>
    %89 = arith.mulf %84, %88 : vector<64x256xf32>
    %90 = vector.broadcast %69 : vector<1x256xf32> to vector<64x256xf32>
    %91 = arith.mulf %89, %90 : vector<64x256xf32>
    %92 = vector.broadcast %71 : vector<1x256xf32> to vector<64x256xf32>
    %93 = arith.addf %91, %92 : vector<64x256xf32>
    %94 = arith.truncf %93 : vector<64x256xf32> to vector<64x256xbf16>
    %c0_36 = arith.constant 0 : index
    %c0_37 = arith.constant 0 : index
    %c0_38 = arith.constant 0 : index
    %95 = vector.load %arg9[%c0_36, %c0_37, %c0_38] : memref<1x256x1024xbf16, #tpu.memory_space<vmem>>, vector<1x256x1024xbf16>
    %96 = vector.shape_cast %95 : vector<1x256x1024xbf16> to vector<256x1024xbf16>
    %cst_39 = arith.constant dense<0.000000e+00> : vector<64x1024xf32>
    %97 = tpu.matmul %94, %96, %cst_39 {dimension_numbers = #tpu.dot_dimension_numbers<[1], [0], [0], [1], [0, 0, 1, 1], [], []>} : vector<64x256xbf16>, vector<256x1024xbf16>, vector<64x1024xf32> -> vector<64x1024xf32>
    %c0_40 = arith.constant 0 : index
    %c0_41 = arith.constant 0 : index
    %c0_42 = arith.constant 0 : index
    %98 = vector.load %arg10[%c0_40, %c0_41, %c0_42] : memref<1x1x1024xf32, #tpu.memory_space<vmem>>, vector<1x1x1024xf32>
    %99 = vector.shape_cast %98 : vector<1x1x1024xf32> to vector<1x1024xf32>
    %100 = vector.broadcast %99 : vector<1x1024xf32> to vector<64x1024xf32>
    %101 = arith.addf %97, %100 : vector<64x1024xf32>
    %102 = arith.mulf %101, %101 : vector<64x1024xf32>
    %103 = arith.mulf %101, %102 : vector<64x1024xf32>
    %cst_43 = arith.constant 4.471500e-02 : f32
    %104 = vector.broadcast %cst_43 : f32 to vector<64x1024xf32>
    %105 = arith.mulf %104, %103 : vector<64x1024xf32>
    %106 = arith.addf %101, %105 : vector<64x1024xf32>
    %cst_44 = arith.constant 0.797884583 : f32
    %107 = vector.broadcast %cst_44 : f32 to vector<64x1024xf32>
    %108 = arith.mulf %107, %106 : vector<64x1024xf32>
    %109 = math.tanh %108 : vector<64x1024xf32>
    %cst_45 = arith.constant 1.000000e+00 : f32
    %110 = vector.broadcast %cst_45 : f32 to vector<64x1024xf32>
    %111 = arith.addf %110, %109 : vector<64x1024xf32>
    %cst_46 = arith.constant 5.000000e-01 : f32
    %112 = vector.broadcast %cst_46 : f32 to vector<64x1024xf32>
    %113 = arith.mulf %112, %111 : vector<64x1024xf32>
    %114 = arith.mulf %101, %113 : vector<64x1024xf32>
    %115 = arith.truncf %114 : vector<64x1024xf32> to vector<64x1024xbf16>
    %c0_47 = arith.constant 0 : index
    %c0_48 = arith.constant 0 : index
    %c0_49 = arith.constant 0 : index
    %116 = vector.load %arg11[%c0_47, %c0_48, %c0_49] : memref<1x1024x256xbf16, #tpu.memory_space<vmem>>, vector<1x1024x256xbf16>
    %117 = vector.shape_cast %116 : vector<1x1024x256xbf16> to vector<1024x256xbf16>
    %cst_50 = arith.constant dense<0.000000e+00> : vector<64x256xf32>
    %118 = tpu.matmul %115, %117, %cst_50 {dimension_numbers = #tpu.dot_dimension_numbers<[1], [0], [0], [1], [0, 0, 1, 1], [], []>} : vector<64x1024xbf16>, vector<1024x256xbf16>, vector<64x256xf32> -> vector<64x256xf32>
    %c0_51 = arith.constant 0 : index
    %c0_52 = arith.constant 0 : index
    %c0_53 = arith.constant 0 : index
    %119 = vector.load %arg12[%c0_51, %c0_52, %c0_53] : memref<1x1x256xf32, #tpu.memory_space<vmem>>, vector<1x1x256xf32>
    %120 = vector.shape_cast %119 : vector<1x1x256xf32> to vector<1x256xf32>
    %121 = vector.broadcast %120 : vector<1x256xf32> to vector<64x256xf32>
    %122 = arith.addf %118, %121 : vector<64x256xf32>
    %123 = arith.addf %93, %122 : vector<64x256xf32>
    %c0_54 = arith.constant 0 : index
    %c0_55 = arith.constant 0 : index
    %c0_56 = arith.constant 0 : index
    %124 = vector.load %arg13[%c0_54, %c0_55, %c0_56] : memref<1x1x256xf32, #tpu.memory_space<vmem>>, vector<1x1x256xf32>
    %125 = vector.shape_cast %124 : vector<1x1x256xf32> to vector<1x256xf32>
    %c0_57 = arith.constant 0 : index
    %c0_58 = arith.constant 0 : index
    %c0_59 = arith.constant 0 : index
    %126 = vector.load %arg14[%c0_57, %c0_58, %c0_59] : memref<1x1x256xf32, #tpu.memory_space<vmem>>, vector<1x1x256xf32>
    %127 = vector.shape_cast %126 : vector<1x1x256xf32> to vector<1x256xf32>
    %cst_60 = arith.constant dense<0.000000e+00> : vector<64xf32>
    %128 = vector.multi_reduction <add>, %123, %cst_60 [1] : vector<64x256xf32> to vector<64xf32>
    %129 = vector.shape_cast %128 : vector<64xf32> to vector<64x1xf32>
    %cst_61 = arith.constant 2.560000e+02 : f32
    %130 = vector.broadcast %cst_61 : f32 to vector<64x1xf32>
    %131 = arith.divf %129, %130 : vector<64x1xf32>
    %132 = vector.broadcast %131 : vector<64x1xf32> to vector<64x256xf32>
    %133 = arith.subf %123, %132 : vector<64x256xf32>
    %134 = arith.mulf %133, %133 : vector<64x256xf32>
    %cst_62 = arith.constant dense<0.000000e+00> : vector<64xf32>
    %135 = vector.multi_reduction <add>, %134, %cst_62 [1] : vector<64x256xf32> to vector<64xf32>
    %136 = vector.shape_cast %135 : vector<64xf32> to vector<64x1xf32>
    %cst_63 = arith.constant 2.560000e+02 : f32
    %137 = vector.broadcast %cst_63 : f32 to vector<64x1xf32>
    %138 = arith.divf %136, %137 : vector<64x1xf32>
    %139 = vector.broadcast %131 : vector<64x1xf32> to vector<64x256xf32>
    %140 = arith.subf %123, %139 : vector<64x256xf32>
    %cst_64 = arith.constant 9.99999996E-13 : f32
    %141 = vector.broadcast %cst_64 : f32 to vector<64x1xf32>
    %142 = arith.addf %138, %141 : vector<64x1xf32>
    %143 = math.rsqrt %142 : vector<64x1xf32>
    %144 = vector.broadcast %143 : vector<64x1xf32> to vector<64x256xf32>
    %145 = arith.mulf %140, %144 : vector<64x256xf32>
    %146 = vector.broadcast %125 : vector<1x256xf32> to vector<64x256xf32>
    %147 = arith.mulf %145, %146 : vector<64x256xf32>
    %148 = vector.broadcast %127 : vector<1x256xf32> to vector<64x256xf32>
    %149 = arith.addf %147, %148 : vector<64x256xf32>
    %c0_65 = arith.constant 0 : index
    %c0_66 = arith.constant 0 : index
    %150 = vector.load %arg18[%c0_65, %c0_66] : memref<64x256xf32, #tpu.memory_space<vmem>>, vector<64x256xf32>
    tpu.vector_store %arg18[%c0_65, %c0_66], %149 {strides = array<i32>} : memref<64x256xf32, #tpu.memory_space<vmem>>, vector<64x256xf32>,
    %c1_i32 = arith.constant 1 : i32
    %151 = arith.cmpi eq, %arg0, %c1_i32 : i32
    %152 = arith.extui %151 : i1 to i32
    %c0_i32_67 = arith.constant 0 : i32
    %153 = arith.cmpi ne, %152, %c0_i32_67 : i32
    scf.if %153 {
      %154 = tpu.iota {dimensions = array<i32: 1>} : vector<1x64xi32>
      %c0_68 = arith.constant 0 : index
      %155 = memref.load %arg1[%c0_68] : memref<4xi32, #tpu.memory_space<smem>>
      %156 = vector.broadcast %155 : i32 to vector<1x64xi32>
      %157 = arith.cmpi eq, %154, %156 : vector<1x64xi32>
      %158 = arith.extui %157 : vector<1x64xi1> to vector<1x64xi32>
      %159 = arith.sitofp %158 : vector<1x64xi32> to vector<1x64xf32>
      %c1 = arith.constant 1 : index
      %160 = memref.load %arg1[%c1] : memref<4xi32, #tpu.memory_space<smem>>
      %161 = vector.broadcast %160 : i32 to vector<1x64xi32>
      %162 = arith.cmpi eq, %154, %161 : vector<1x64xi32>
      %163 = arith.extui %162 : vector<1x64xi1> to vector<1x64xi32>
      %164 = arith.sitofp %163 : vector<1x64xi32> to vector<1x64xf32>
      %c2 = arith.constant 2 : index
      %165 = memref.load %arg1[%c2] : memref<4xi32, #tpu.memory_space<smem>>
      %166 = vector.broadcast %165 : i32 to vector<1x64xi32>
      %167 = arith.cmpi eq, %154, %166 : vector<1x64xi32>
      %168 = arith.extui %167 : vector<1x64xi1> to vector<1x64xi32>
      %169 = arith.sitofp %168 : vector<1x64xi32> to vector<1x64xf32>
      %c3 = arith.constant 3 : index
      %170 = memref.load %arg1[%c3] : memref<4xi32, #tpu.memory_space<smem>>
      %171 = vector.broadcast %170 : i32 to vector<1x64xi32>
      %172 = arith.cmpi eq, %154, %171 : vector<1x64xi32>
      %173 = arith.extui %172 : vector<1x64xi1> to vector<1x64xi32>
      %174 = arith.sitofp %173 : vector<1x64xi32> to vector<1x64xf32>
      %175 = tpu.concatenate %159, %164, %169, %174 in 0 : vector<1x64xf32>, vector<1x64xf32>, vector<1x64xf32>, vector<1x64xf32> -> vector<4x64xf32>
      %cst_69 = arith.constant dense<0.000000e+00> : vector<4x256xf32>
      %176 = tpu.matmul %175, %149, %cst_69 {dimension_numbers = #tpu.dot_dimension_numbers<[1], [0], [0], [1], [0, 0, 1, 1], [], []>} : vector<4x64xf32>, vector<64x256xf32>, vector<4x256xf32> -> vector<4x256xf32>
      %177 = arith.truncf %176 : vector<4x256xf32> to vector<4x256xbf16>
      %c0_70 = arith.constant 0 : index
      %c0_71 = arith.constant 0 : index
      %178 = vector.load %arg15[%c0_70, %c0_71] : memref<256x128xbf16, #tpu.memory_space<vmem>>, vector<256x128xbf16>
      %cst_72 = arith.constant dense<0.000000e+00> : vector<4x128xf32>
      %179 = tpu.matmul %177, %178, %cst_72 {dimension_numbers = #tpu.dot_dimension_numbers<[1], [0], [0], [1], [0, 0, 1, 1], [], []>} : vector<4x256xbf16>, vector<256x128xbf16>, vector<4x128xf32> -> vector<4x128xf32>
      %c0_73 = arith.constant 0 : index
      %c0_74 = arith.constant 0 : index
      %180 = vector.load %arg16[%c0_73, %c0_74] : memref<1x128xf32, #tpu.memory_space<vmem>>, vector<1x128xf32>
      %181 = vector.broadcast %180 : vector<1x128xf32> to vector<4x128xf32>
      %182 = arith.addf %179, %181 : vector<4x128xf32>
      %183 = arith.negf %182 : vector<4x128xf32>
      %184 = math.exp %183 : vector<4x128xf32>
      %cst_75 = arith.constant 1.000000e+00 : f32
      %185 = vector.broadcast %cst_75 : f32 to vector<4x128xf32>
      %186 = arith.addf %185, %184 : vector<4x128xf32>
      %187 = arith.divf %185, %186 : vector<4x128xf32>
      %c0_76 = arith.constant 0 : index
      %c0_77 = arith.constant 0 : index
      %188 = vector.load %arg17[%c0_76, %c0_77] : memref<4x128xf32, #tpu.memory_space<vmem>>, vector<4x128xf32>
      tpu.vector_store %arg17[%c0_76, %c0_77], %187 {strides = array<i32>} : memref<4x128xf32, #tpu.memory_space<vmem>>, vector<4x128xf32>,
    } else {
    }
    return
  }
  func.func @transform_0(%arg0: i32, %arg1: memref<4xi32, #tpu.memory_space<smem>>) -> (i32, i32) {
    %c0_i32 = arith.constant 0 : i32
    %c0_i32_0 = arith.constant 0 : i32
    %c0_i32_1 = arith.constant 0 : i32
    return %c0_i32, %c0_i32_0 : i32, i32
  }
  func.func @transform_1(%arg0: i32, %arg1: memref<4xi32, #tpu.memory_space<smem>>) -> (i32, i32, i32) {
    %c0_i32 = arith.constant 0 : i32
    %c0_i32_0 = arith.constant 0 : i32
    %c0_i32_1 = arith.constant 0 : i32
    return %arg0, %c0_i32, %c0_i32_0 : i32, i32, i32
  }
  func.func @transform_2(%arg0: i32, %arg1: memref<4xi32, #tpu.memory_space<smem>>) -> (i32, i32, i32) {
    %c0_i32 = arith.constant 0 : i32
    %c0_i32_0 = arith.constant 0 : i32
    %c0_i32_1 = arith.constant 0 : i32
    return %arg0, %c0_i32, %c0_i32_0 : i32, i32, i32
  }
  func.func @transform_3(%arg0: i32, %arg1: memref<4xi32, #tpu.memory_space<smem>>) -> (i32, i32, i32) {
    %c0_i32 = arith.constant 0 : i32
    %c0_i32_0 = arith.constant 0 : i32
    %c0_i32_1 = arith.constant 0 : i32
    return %arg0, %c0_i32, %c0_i32_0 : i32, i32, i32
  }
  func.func @transform_4(%arg0: i32, %arg1: memref<4xi32, #tpu.memory_space<smem>>) -> (i32, i32, i32) {
    %c0_i32 = arith.constant 0 : i32
    %c0_i32_0 = arith.constant 0 : i32
    %c0_i32_1 = arith.constant 0 : i32
    return %arg0, %c0_i32, %c0_i32_0 : i32, i32, i32
  }
  func.func @transform_5(%arg0: i32, %arg1: memref<4xi32, #tpu.memory_space<smem>>) -> (i32, i32, i32) {
    %c0_i32 = arith.constant 0 : i32
    %c0_i32_0 = arith.constant 0 : i32
    %c0_i32_1 = arith.constant 0 : i32
    return %arg0, %c0_i32, %c0_i32_0 : i32, i32, i32
  }
  func.func @transform_6(%arg0: i32, %arg1: memref<4xi32, #tpu.memory_space<smem>>) -> (i32, i32, i32) {
    %c0_i32 = arith.constant 0 : i32
    %c0_i32_0 = arith.constant 0 : i32
    %c0_i32_1 = arith.constant 0 : i32
    return %arg0, %c0_i32, %c0_i32_0 : i32, i32, i32
  }
  func.func @transform_7(%arg0: i32, %arg1: memref<4xi32, #tpu.memory_space<smem>>) -> (i32, i32, i32) {
    %c0_i32 = arith.constant 0 : i32
    %c0_i32_0 = arith.constant 0 : i32
    %c0_i32_1 = arith.constant 0 : i32
    return %arg0, %c0_i32, %c0_i32_0 : i32, i32, i32
  }
  func.func @transform_8(%arg0: i32, %arg1: memref<4xi32, #tpu.memory_space<smem>>) -> (i32, i32, i32) {
    %c0_i32 = arith.constant 0 : i32
    %c0_i32_0 = arith.constant 0 : i32
    %c0_i32_1 = arith.constant 0 : i32
    return %arg0, %c0_i32, %c0_i32_0 : i32, i32, i32
  }
  func.func @transform_9(%arg0: i32, %arg1: memref<4xi32, #tpu.memory_space<smem>>) -> (i32, i32, i32) {
    %c0_i32 = arith.constant 0 : i32
    %c0_i32_0 = arith.constant 0 : i32
    %c0_i32_1 = arith.constant 0 : i32
    return %arg0, %c0_i32, %c0_i32_0 : i32, i32, i32
  }
  func.func @transform_10(%arg0: i32, %arg1: memref<4xi32, #tpu.memory_space<smem>>) -> (i32, i32, i32) {
    %c0_i32 = arith.constant 0 : i32
    %c0_i32_0 = arith.constant 0 : i32
    %c0_i32_1 = arith.constant 0 : i32
    return %arg0, %c0_i32, %c0_i32_0 : i32, i32, i32
  }
  func.func @transform_11(%arg0: i32, %arg1: memref<4xi32, #tpu.memory_space<smem>>) -> (i32, i32, i32) {
    %c0_i32 = arith.constant 0 : i32
    %c0_i32_0 = arith.constant 0 : i32
    %c0_i32_1 = arith.constant 0 : i32
    return %arg0, %c0_i32, %c0_i32_0 : i32, i32, i32
  }
  func.func @transform_12(%arg0: i32, %arg1: memref<4xi32, #tpu.memory_space<smem>>) -> (i32, i32, i32) {
    %c0_i32 = arith.constant 0 : i32
    %c0_i32_0 = arith.constant 0 : i32
    %c0_i32_1 = arith.constant 0 : i32
    return %arg0, %c0_i32, %c0_i32_0 : i32, i32, i32
  }
  func.func @transform_13(%arg0: i32, %arg1: memref<4xi32, #tpu.memory_space<smem>>) -> (i32, i32) {
    %c0_i32 = arith.constant 0 : i32
    %c0_i32_0 = arith.constant 0 : i32
    %c0_i32_1 = arith.constant 0 : i32
    return %c0_i32, %c0_i32_0 : i32, i32
  }
  func.func @transform_14(%arg0: i32, %arg1: memref<4xi32, #tpu.memory_space<smem>>) -> (i32, i32) {
    %c0_i32 = arith.constant 0 : i32
    %c0_i32_0 = arith.constant 0 : i32
    %c0_i32_1 = arith.constant 0 : i32
    return %c0_i32, %c0_i32_0 : i32, i32
  }
  func.func @transform_15(%arg0: i32, %arg1: memref<4xi32, #tpu.memory_space<smem>>) -> (i32, i32) {
    %c0_i32 = arith.constant 0 : i32
    %c0_i32_0 = arith.constant 0 : i32
    %c0_i32_1 = arith.constant 0 : i32
    return %c0_i32, %c0_i32_0 : i32, i32
  }
}

</mosaic_0001>

<bundles_post_ra>
// kernel: bert_sum_forward.1
= control target key start
LH: loop header
LB: loop body
LE: loop exit
PB: predicated region body
PF: predicated region fallthrough
CT: control target
= control target key end

     0   :  { %s10228_s0 = inlined_call_operand.vmem [shape: s32[4], index: 0, kind: input, shape index: {}]   ;;  %s10229_s1 = inlined_call_operand.vmem [shape: f32[64,256], index: 1, kind: input, shape index: {}]   ;;  %s10230_s2 = inlined_call_operand.hbm [shape: bf16[2,256,768], index: 2, kind: input, shape index: {}]   ;;  %s10231_s3 = inlined_call_operand.vmem [shape: f32[2,1,768], index: 3, kind: input, shape index: {}]   ;;  %s10232_s4 = inlined_call_operand.vmem [shape: bf16[2,256,256], index: 4, kind: input, shape index: {}]   ;;  %s10233_s5 = inlined_call_operand.vmem [shape: f32[2,1,256], index: 5, kind: input, shape index: {}]   ;;  %s10234_s6 = inlined_call_operand.vmem [shape: f32[2,1,256], index: 6, kind: input, shape index: {}]   ;;  %s10235_s7 = inlined_call_operand.vmem [shape: f32[2,1,256], index: 7, kind: input, shape index: {}]   ;;  %s10236_s8 = inlined_call_operand.vmem [shape: bf16[2,256,1024], index: 8, kind: input, shape index: {}]   ;;  %s10237_s9 = inlined_call_operand.vmem [shape: f32[2,1,1024], index: 9, kind: input, shape index: {}]   ;;  %s10238_s10 = inlined_call_operand.hbm [shape: bf16[2,1024,256], index: 10, kind: input, shape index: {}]   ;;  %s10239_s11 = inlined_call_operand.vmem [shape: f32[2,1,256], index: 11, kind: input, shape index: {}]   ;;  %s10240_s12 = inlined_call_operand.vmem [shape: f32[2,1,256], index: 12, kind: input, shape index: {}]   ;;  %s10241_s13 = inlined_call_operand.vmem [shape: f32[2,1,256], index: 13, kind: input, shape index: {}]   ;;  %s10242_s14 = inlined_call_operand.vmem [shape: bf16[256,128], index: 14, kind: input, shape index: {}]   ;;  %s10243_s15 = inlined_call_operand.vmem [shape: f32[1,128], index: 15, kind: input, shape index: {}]   ;;  %s10244_s16 = inlined_call_operand.vmem [shape: f32[4,128], index: 16, kind: output, shape index: {}]  }
   0x1   :  { %10300 = sst [smem:[#allocation66_spill]] %s10228_s0 }
   0x2   :  { %10301 = sst [smem:[#allocation67_spill]] %s10229_s1  ;;  %s10309_s23 = sld [smem:[#allocation66_spill]] }
   0x3   :  { %10302 = sst [smem:[#allocation68_spill]] %s10230_s2 }
   0x4   :  { %10303 = sst [smem:[#allocation69_spill]] %s10231_s3 }
   0x5   :  { %10304 = sst [smem:[#allocation70_spill]] %s10232_s4 }
   0x6   :  { %10305 = sst [smem:[#allocation71_spill]] %s10238_s10 }
   0x7   :  { %10306 = sst [smem:[#allocation72_spill]] %s10242_s14 }
   0x8   :  { %10307 = sst [smem:[#allocation73_spill]] %s10243_s15  ;;  %s21_s1 = sshll.u32 %s10309_s23, 4  ;;  %s22_s1 = int_to_ptr.vmem [resolvable:$true] %s21_s1 }
   0x9   :  { %10308 = sst [smem:[#allocation74_spill]] %s10244_s16  ;;  %s7515_s24 = scalar_lea.vmem %s22_s1, 16 }
   0xa   :  { %p7516_p0 = scmp.ne.s32.totalorder %s22_s1, %s7515_s24  ;;  %p7520_p1 = scmp.lt.s32.totalorder %s22_s1, %s22_s1 }
   0xb   :  { %p7521_p2 = scmp.lt.s32.totalorder %s7515_s24, %s7515_s24 }
   0xd   :  { %p7522_p3 = por %p7521_p2, %p7520_p1 }
   0xf   :  { %p7523_p4 = pnand %p7522_p3, %p7516_p0 }
  0x11   :  { %7526 = shalt.err (!%p7523_p4)  }
  0x12   :  { %s7629_s25 = smov [#allocation4]  }
  0x13   :  { %24 = dma.vmem_to_smem %s22_s1, 16, %s7629_s25, [#allocation3] }
  0x14   :  { %7603 = dma.done.wait [#allocation3], 16 }
  0x15   :  { %7604 = vsyncadd [#allocation3], 4294967280 }
  0x16   :  { %26 = sfence }
  0x17   :  { %27 = vsyncpa [#allocation6], 0 }
  0x18   :  { %29 = vsyncpa [#allocation6 + $0x1], 0 }
  0x19   :  { %30 = vsyncpa [#allocation8], 0 }
  0x1a   :  { %32 = vsyncpa [#allocation8 + $0x1], 0  ;;  %s7726_s26 = smov 0   ;;  %s7728_s27 = smov 0  }
  0x1b   :  { %s7730_s28 = smov 0   ;;  %s7732_s29 = smov 0  }
  0x1c LB: > { %10310 = sst [smem:[#allocation12_spill]] %s7619_s27  ;;  %s7745_s1 = sadd.s32 4294967295, %s7627_s29   ;;  %s7627_s29 = sphi %s7732_s29, %s10440_s29   ;;  %s7623_s28 = sphi %s7730_s28, %s10443_s28   ;;  %s7619_s27 = sphi %s7728_s27, %s10442_s27   ;;  %s7615_s26 = sphi %s7726_s26, %s10441_s26  }
  0x1d   : > { %10311 = sst [smem:[#allocation13_spill]] %s7623_s28  ;;  %s7748_s30 = sadd.s32 1, %s7627_s29  }
  0x1e   : > { %10312 = sst [smem:[#allocation14_spill]] %s7748_s30  ;;  %s63_s0 = ssub.s32 %s7627_s29, %s7748_s30 }
  0x1f   : > { %s66_s17 = sadd.s32 1, %s7623_s28  ;;  %p64_p5 = scmp.eq.s32.totalorder %s63_s0, 0 }
  0x20   : > { %p73_p6 = scmp.ne.s32.totalorder %s7623_s28, %s7619_s27  ;;  %p74_p7 = scmp.eq.s32.totalorder %s7627_s29, 0 }
  0x21   : > { %p79_p8 = scmp.ne.s32.totalorder %s7619_s27, %s7615_s26  ;;  %p80_p10 = scmp.eq.s32.totalorder %s7745_s1, 0 }
  0x22   : > { %s7758_s18 = scalar_select %p64_p5, %s7623_s28, %s66_s17  }
  0x23   : > { %p75_p9 = por %p74_p7, %p73_p6  ;;  %p6831_p11 = scmp.lt.s32.totalorder %s7627_s29, 2 }
  0x24   : > { %10313 = sst [smem:[#allocation15_spill]] %s7758_s18  ;;  %p7762_p12 = por %p80_p10, %p79_p8 }
  0x25   : > { %s7767_s20 = sand.u32 1, %s7623_s28   ;;  %s6817_s22 = smul.u32 12288, %s7627_s29 }
  0x26   : > { %s10314_s19 = scalar_select %p7762_p12, 1, 0 }
  0x27   : > { %s6816_s21 = smul.u32 768, %s7767_s20  ;;  %p7771_p13 = pnand %p6831_p11, %p75_p9 }
  0x28   : > { %s10316_s2 = sld [smem:[#allocation68_spill]]  ;;  %s462_s18 = scalar_lea.sflag [#allocation6], %s7767_s20 }
  0x29   : > { %s465_s0 = scalar_lea.vmem [#allocation5], %s6816_s21  ;;  %p7529_p2 = pneg %p7771_p13 }
  0x2a   : > { %s472_s17 = sshll.u32 %s465_s0, 4  ;;  %s7780_s17 = int_to_ptr.vmem [resolvable:$true] %s472_s17 }
  0x2e   : > { %s7778_s26 = scalar_lea.hbm %s10316_s2, %s6817_s22  ;;  %s7532_s25 = scalar_lea.hbm %s10316_s2, 24576 }
  0x2f   : > { %s7527_s28 = scalar_lea.hbm %s7778_s26, 12288  ;;  %p7533_p5 = scmp.lt.u32.totalorder %s7778_s26, %s10316_s2 }
  0x30   : > { %p7528_p1 = scmp.ne.s32.totalorder %s7778_s26, %s7527_s28  ;;  %p7534_p6 = scmp.lt.u32.totalorder %s7532_s25, %s7527_s28 }
  0x31   : > { %p7536_p8 = scmp.lt.u32.totalorder %s7527_s28, %s7778_s26 }
  0x32   : > { %p7530_p3 = pnand %p7529_p2, %p7528_p1  ;;  %p7535_p7 = por %p7534_p6, %p7533_p5 }
  0x34   : > { %p7531_p4 = pneg %p7530_p3  ;;  %p7537_p9 = por %p7536_p8, %p7535_p7 }
  0x36   : > { %p7538_p10 = pnand %p7537_p9, %p7531_p4 }
  0x38   : > { %7541 = shalt.err (!%p7538_p10)
}
  0x39   : > { %s7542_s21 = scalar_lea.vmem %s7780_s17, 12288  ;;  %s7630_s0 = smov [#allocation5]  }
  0x3a   : > { %p7543_p11 = scmp.ne.s32.totalorder %s7780_s17, %s7542_s21  ;;  %s7547_s22 = sshll.u32 %s7630_s0, 4  ;;  %s7548_s22 = int_to_ptr.vmem [resolvable:$false] %s7547_s22 }
  0x3b   : > { %s7549_s16 = scalar_lea.vmem %s7548_s22, 24576  ;;  %p7550_p0 = scmp.lt.s32.totalorder %s7780_s17, %s7548_s22 }
  0x3c   : > { %p7545_p1 = pnand %p7543_p11, %p7529_p2  ;;  %p7551_p5 = scmp.lt.s32.totalorder %s7549_s16, %s7542_s21 }
  0x3e   : > { %p7546_p3 = pneg %p7545_p1  ;;  %p7552_p6 = por %p7551_p5, %p7550_p0 }
  0x40   : > { %p7553_p7 = pnand %p7552_p6, %p7546_p3 }
  0x42   : > { %7556 = shalt.err (!%p7553_p7)
}
  0x43   : > { %s7631_s28 = smov 384   ;;  %s7632_s30 = smov 24  }
  0x44   : > { %6827 = dma.hbm_to_vmem [thread:$0]  (!%p7771_p13), %s7778_s26, 12288, %s7780_s17, %s462_s18, %s7631_s28, %s7631_s28, %s7632_s30  }
  0x45   : > { %p573_p4 = scmp.lt.s32.totalorder %s7627_s29, 3  ;;  %s6161_s24 = sshll.u32 %s7767_s20, 10 }
  0x46   : > { %s6599_s25 = sshll.u32 %s7627_s29, 14  ;;  %p10317_p0 = scmp.ge.s32.totalorder %s7627_s29, 1 }
  0x47   : > { %s10319_s10 = sld [smem:[#allocation71_spill]]  ;;  %s537_s2 = scalar_lea.vmem [#allocation7], %s6161_s24 }
  0x48   : > { %p7816_p8 = pnand %p10317_p0, %p573_p4  ;;  %s544_s15 = sshll.u32 %s537_s2, 4  ;;  %s7825_s15 = int_to_ptr.vmem [resolvable:$true] %s544_s15 }
  0x49   : > { %s534_s18 = scalar_lea.sflag [#allocation8], %s7767_s20 }
  0x4d   : > { %s7823_s16 = scalar_lea.hbm %s10319_s10, %s6599_s25  ;;  %s7562_s28 = scalar_lea.hbm %s10319_s10, 32768 }
  0x4e   : > { %s7557_s26 = scalar_lea.hbm %s7823_s16, 16384  ;;  %p7563_p1 = scmp.lt.u32.totalorder %s7823_s16, %s10319_s10 }
  0x4f   : > { %p7558_p9 = scmp.ne.s32.totalorder %s7823_s16, %s7557_s26  ;;  %p7564_p3 = scmp.lt.u32.totalorder %s7562_s28, %s7557_s26 }
  0x50   : > { %p7566_p6 = scmp.lt.u32.totalorder %s7557_s26, %s7823_s16 }
  0x51   : > { %p7560_p10 = pnand %p7558_p9, %p7529_p2  ;;  %p7565_p5 = por %p7564_p3, %p7563_p1 }
  0x53   : > { %p7561_p11 = pneg %p7560_p10  ;;  %p7567_p7 = por %p7566_p6, %p7565_p5 }
  0x55   : > { %p7568_p4 = pnand %p7567_p7, %p7561_p11 }
  0x57   : > { %7571 = shalt.err (!%p7568_p4)
}
  0x58   : > { %s7572_s2 = scalar_lea.vmem %s7825_s15, 16384  ;;  %s7633_s24 = smov [#allocation7]  }
  0x59   : > { %p7573_p0 = scmp.ne.s32.totalorder %s7825_s15, %s7572_s2  ;;  %s7577_s0 = sshll.u32 %s7633_s24, 4  ;;  %s7578_s0 = int_to_ptr.vmem [resolvable:$false] %s7577_s0 }
  0x5a   : > { %s7579_s22 = scalar_lea.vmem %s7578_s0, 32768  ;;  %p7580_p12 = scmp.lt.s32.totalorder %s7825_s15, %s7578_s0 }
  0x5b   : > { %p7575_p9 = pnand %p7573_p0, %p7529_p2  ;;  %p7581_p1 = scmp.lt.s32.totalorder %s7579_s22, %s7572_s2 }
  0x5d   : > { %p7576_p10 = pneg %p7575_p9  ;;  %p7582_p3 = por %p7581_p1, %p7580_p12 }
  0x5f   : > { %p7583_p5 = pnand %p7582_p3, %p7576_p10 }
  0x61   : > { %7586 = shalt.err (!%p7583_p5)
}
  0x62   : > { %s7634_s26 = smov 128   ;;  %s7635_s29 = smov 8  }
  0x63   : > { %6830 = dma.hbm_to_vmem [thread:$0]  (!%p7771_p13), %s7823_s16, 16384, %s7825_s15, %s534_s18, %s7634_s26, %s7634_s26, %s7635_s29  }
  0x64   : > { %577 = sbr.rel (%p7816_p8) target bundleno = 3911 (0xf47), region = 80 }
  0x6b   : > { %s579_s17 = sand.u32 1, %s7619_s27   ;;  %p10320_p12 = scmp.ne.s32.totalorder %s10314_s19, 0 }
  0x6c   : > { %s6818_s28 = smul.u32 768, %s579_s17  ;;  %s580_s30 = scalar_lea.sflag [#allocation6], %s579_s17 }
  0x6e   : > { %s7856_s25 = scalar_lea.vmem [#allocation5], %s6818_s28 }
  0x6f   : > { %7606 = dma.done.wait (%p10320_p12), %s580_s30, 12288  }
  0x70   : > { %7608 = vsyncadd (%p10320_p12), %s580_s30, 4294955008  ;;  %s6165_s2 = sshll.u32 %s579_s17, 10  ;;  %s589_s23 = scalar_lea.sflag [#allocation8], %s579_s17 }
  0x71   : > { %s7862_s20 = scalar_lea.vmem [#allocation7], %s6165_s2 }
  0x72   : > { %7610 = dma.done.wait (%p10320_p12), %s589_s23, 16384  }
  0x73   : > { %7612 = vsyncadd (%p10320_p12), %s589_s23, 4294950912  ;;  %p681_p13 = scmp.lt.s32.totalorder %s7745_s1, 1  ;;  %s10321_s4 = sld [smem:[#allocation70_spill]] }
  0x74   : > { %s10322_s3 = sld [smem:[#allocation69_spill]]  ;;  %p6177_p2 = scmp.ne.s32.totalorder %s7745_s1, 0 }
  0x75   : > { %s682_s15 = scalar_select %p681_p13, %s7745_s1, 1 }
  0x76   : > { %727 = sbr.rel (%p6177_p2) target bundleno = 140 (0x8c), region = 92 }
  0x77   : > { %s6819_s21 = smul.u32 6, %s682_s15  ;;  %s6600_s16 = sshll.u32 %s682_s15, 8 }
  0x78   : > { %s7875_s22 = sshll.u32 %s682_s15, 1  ;;  %s6601_s29 = sshll.u32 %s682_s15, 10 }
  0x79   : > { %s7873_s0 = scalar_lea.vmem %s10321_s4, %s6600_s16  ;;  %s6173_s4 = sshll.u32 %s682_s15, 3 }
  0x7a   : > { %s7880_s19 = scalar_lea.vmem %s10322_s3, %s6819_s21  ;;  %s7897_s14 = scalar_lea.vmem %s10236_s8, %s6601_s29 }
  0x7b   : > { %s7902_s17 = scalar_lea.vmem %s10237_s9, %s6173_s4  ;;  %s714_s2 = scalar_lea.vmem %s10239_s11, %s7875_s22 }
  0x7c   : > { %s718_s18 = scalar_lea.vmem %s10240_s12, %s7875_s22  ;;  %s722_s26 = scalar_lea.vmem %s10241_s13, %s7875_s22 }
  0x7d   : > { %s10323_s3 = sld [smem:[#allocation67_spill]] }
  0x83   : > { %v728_v0 = vld [vmem:[%s10323_s3] sm:$0xff]  ;;  %v729_v1 = vld [vmem:[%s10323_s3 + $0x8] sm:$0xff]  ;;  %v730_v2 = vld [vmem:[%s10323_s3 + $0x10] sm:$0xff] }
  0x84   : > { %744 = vst [vmem:[#allocation2] sm:$0xff] %v728_v0  ;;  %745 = vst [vmem:[#allocation2 + $0x8] sm:$0xff] %v729_v1  ;;  %v731_v3 = vld [vmem:[%s10323_s3 + $0x18] sm:$0xff]  ;;  %v732_v4 = vld [vmem:[%s10323_s3 + $0x20] sm:$0xff] }
  0x85   : > { %746 = vst [vmem:[#allocation2 + $0x10] sm:$0xff] %v730_v2  ;;  %v733_v5 = vld [vmem:[%s10323_s3 + $0x28] sm:$0xff]  ;;  %747 = vst [vmem:[#allocation2 + $0x18] sm:$0xff] %v731_v3  ;;  %v734_v6 = vld [vmem:[%s10323_s3 + $0x30] sm:$0xff] }
  0x86   : > { %748 = vst [vmem:[#allocation2 + $0x20] sm:$0xff] %v732_v4  ;;  %749 = vst [vmem:[#allocation2 + $0x28] sm:$0xff] %v733_v5  ;;  %v735_v7 = vld [vmem:[%s10323_s3 + $0x38] sm:$0xff]  ;;  %v736_v8 = vld [vmem:[%s10323_s3 + $0x40] sm:$0xff] }
  0x87   : > { %750 = vst [vmem:[#allocation2 + $0x30] sm:$0xff] %v734_v6  ;;  %751 = vst [vmem:[#allocation2 + $0x38] sm:$0xff] %v735_v7  ;;  %v737_v9 = vld [vmem:[%s10323_s3 + $0x48] sm:$0xff]  ;;  %v738_v10 = vld [vmem:[%s10323_s3 + $0x50] sm:$0xff] }
  0x88   : > { %752 = vst [vmem:[#allocation2 + $0x40] sm:$0xff] %v736_v8  ;;  %v739_v11 = vld [vmem:[%s10323_s3 + $0x58] sm:$0xff]  ;;  %753 = vst [vmem:[#allocation2 + $0x48] sm:$0xff] %v737_v9  ;;  %v740_v12 = vld [vmem:[%s10323_s3 + $0x60] sm:$0xff] }
  0x89   : > { %754 = vst [vmem:[#allocation2 + $0x50] sm:$0xff] %v738_v10  ;;  %755 = vst [vmem:[#allocation2 + $0x58] sm:$0xff] %v739_v11  ;;  %v741_v13 = vld [vmem:[%s10323_s3 + $0x68] sm:$0xff]  ;;  %v742_v14 = vld [vmem:[%s10323_s3 + $0x70] sm:$0xff] }
  0x8a   : > { %756 = vst [vmem:[#allocation2 + $0x60] sm:$0xff] %v740_v12  ;;  %757 = vst [vmem:[#allocation2 + $0x68] sm:$0xff] %v741_v13  ;;  %v743_v15 = vld [vmem:[%s10323_s3 + $0x78] sm:$0xff] }
  0x8b   : > { %758 = vst [vmem:[#allocation2 + $0x70] sm:$0xff] %v742_v14  ;;  %759 = vst [vmem:[#allocation2 + $0x78] sm:$0xff] %v743_v15 }
  0x8c PF: > { %v6871_v16 = vld [vmem:[%s7856_s25 + $0x4] ss:$24 sps:$4 sm:$0xff]   ;;  %v6873_v17 = vld [vmem:[%s7856_s25] ss:$24 sps:$4 sm:$0xff]   ;;  %v6874_v18 = vld [vmem:[%s7856_s25 + $0x34] ss:$24 sps:$4 sm:$0xff]   ;;  %s10327_s27 = scalar_lea.vmem %s10234_s6, %s7875_s22  ;;  %s10328_s30 = scalar_lea.vmem %s10235_s7, %s7875_s22 }
  0x8d   : > { %1392 = vmatprep.subr.bf16.mxu1 %v6871_v16  ;;  %v6876_v19 = vld [vmem:[%s7856_s25 + $0x30] ss:$24 sps:$4 sm:$0xff]   ;;  %v6877_v20 = vld [vmem:[%s7856_s25 + $0x64] ss:$24 sps:$4 sm:$0xff]   ;;  %v6879_v21 = vld [vmem:[%s7856_s25 + $0x60] ss:$24 sps:$4 sm:$0xff]  }
  0x8e   : > { %1393 = vmatpush1.bf16.msra.mxu1 %v6873_v17  ;;  %v6880_v22 = vld [vmem:[%s7856_s25 + $0x94] ss:$24 sps:$4 sm:$0xff]   ;;  %v6882_v23 = vld [vmem:[%s7856_s25 + $0x90] ss:$24 sps:$4 sm:$0xff]   ;;  %v6883_v24 = vld [vmem:[%s7856_s25 + $0xc4] ss:$24 sps:$4 sm:$0xff]  }
  0x8f   : > { %1394 = vmatprep.subr.bf16.mxu1 %v6874_v18  ;;  %v6885_v25 = vld [vmem:[%s7856_s25 + $0xc0] ss:$24 sps:$4 sm:$0xff]   ;;  %v6886_v26 = vld [vmem:[%s7856_s25 + $0xf4] ss:$24 sps:$4 sm:$0xff]   ;;  %v6888_v27 = vld [vmem:[%s7856_s25 + $0xf0] ss:$24 sps:$4 sm:$0xff]  }
  0x90   : > { %v6889_v28 = vld [vmem:[%s7856_s25 + $0x124] ss:$24 sps:$4 sm:$0xff]   ;;  %v761_v29 = vld [vmem:[#allocation2 + $0x8] sm:$0xff]  ;;  %v6891_v32 = vld [vmem:[%s7856_s25 + $0x120] ss:$24 sps:$4 sm:$0xff]   ;;  %vm1716_vm0 = vcmask 523264  }
  0x91   : > { %v763_v30 = vld [vmem:[#allocation2 + $0x18] sm:$0xff]  ;;  %v6892_v33 = vld [vmem:[%s7856_s25 + $0x154] ss:$24 sps:$4 sm:$0xff]   ;;  %v6894_v34 = vld [vmem:[%s7856_s25 + $0x150] ss:$24 sps:$4 sm:$0xff]   ;;  %p6570_p8 = scmp.ne.s32.totalorder %s7745_s1, 1 }
  0x92   : > { %1395 = vmatpush1.bf16.msra.mxu1 %v6876_v19  ;;  %v7978_v31 = vpack.c.bf16 %v763_v30, %v761_v29  ;;  %v6895_v35 = vld [vmem:[%s7856_s25 + $0x184] ss:$24 sps:$4 sm:$0xff]   ;;  %v6897_v36 = vld [vmem:[%s7856_s25 + $0x180] ss:$24 sps:$4 sm:$0xff]   ;;  %v6937_v37 = vld [vmem:[%s7856_s25 + $0x14] ss:$24 sps:$4 sm:$0xff]  }
  0x93   : > { %1396 = vmatprep.subr.bf16.mxu1 %v6877_v20  ;;  %v6939_v38 = vld [vmem:[%s7856_s25 + $0x10] ss:$24 sps:$4 sm:$0xff]   ;;  %v6898_v39 = vld [vmem:[%s7856_s25 + $0x1b4] ss:$24 sps:$4 sm:$0xff]   ;;  %1538 = vmatprep.subr.bf16.mxu0 %v6937_v37  ;;  %v6943_v40 = vld [vmem:[%s7856_s25 + $0x44] ss:$24 sps:$4 sm:$0xff]  }
  0x94   : > { %1424 = vmatprep.mubr.bf16.mxu1 %v7978_v31  ;;  %1570 = vmatprep.mubr.bf16.mxu0 %v7978_v31  ;;  %v6945_v41 = vld [vmem:[%s7856_s25 + $0x40] ss:$24 sps:$4 sm:$0xff]   ;;  %v6900_v42 = vld [vmem:[%s7856_s25 + $0x1b0] ss:$24 sps:$4 sm:$0xff]   ;;  %v6901_v43 = vld [vmem:[%s7856_s25 + $0x1e4] ss:$24 sps:$4 sm:$0xff]  }
  0x95   : > { %1539 = vmatpush1.bf16.msra.mxu0 %v6939_v38  ;;  %v6949_v44 = vld [vmem:[%s7856_s25 + $0x74] ss:$24 sps:$4 sm:$0xff]   ;;  %v6951_v45 = vld [vmem:[%s7856_s25 + $0x70] ss:$24 sps:$4 sm:$0xff]   ;;  %v6903_v46 = vld [vmem:[%s7856_s25 + $0x1e0] ss:$24 sps:$4 sm:$0xff]  }
  0x96   : > { %1397 = vmatpush1.bf16.msra.mxu1 %v6879_v21  ;;  %1540 = vmatprep.subr.bf16.mxu0 %v6943_v40  ;;  %v6955_v47 = vld [vmem:[%s7856_s25 + $0xa4] ss:$24 sps:$4 sm:$0xff]   ;;  %v6904_v48 = vld [vmem:[%s7856_s25 + $0x214] ss:$24 sps:$4 sm:$0xff]   ;;  %v6957_v49 = vld [vmem:[%s7856_s25 + $0xa0] ss:$24 sps:$4 sm:$0xff]  }
  0x97   : > { %1398 = vmatprep.subr.bf16.mxu1 %v6880_v22  ;;  %v6906_v50 = vld [vmem:[%s7856_s25 + $0x210] ss:$24 sps:$4 sm:$0xff]   ;;  %v6961_v51 = vld [vmem:[%s7856_s25 + $0xd4] ss:$24 sps:$4 sm:$0xff]   ;;  %v6907_v52 = vld [vmem:[%s7856_s25 + $0x244] ss:$24 sps:$4 sm:$0xff]  }
  0x98   : > { %v6909_v53 = vld [vmem:[%s7856_s25 + $0x240] ss:$24 sps:$4 sm:$0xff]   ;;  %v6963_v54 = vld [vmem:[%s7856_s25 + $0xd0] ss:$24 sps:$4 sm:$0xff]   ;;  %v6967_v55 = vld [vmem:[%s7856_s25 + $0x104] ss:$24 sps:$4 sm:$0xff]  }
  0x99   : > { %1541 = vmatpush1.bf16.msra.mxu0 %v6945_v41  ;;  %v6910_v56 = vld [vmem:[%s7856_s25 + $0x274] ss:$24 sps:$4 sm:$0xff]   ;;  %v6969_v57 = vld [vmem:[%s7856_s25 + $0x100] ss:$24 sps:$4 sm:$0xff]   ;;  %v6912_v58 = vld [vmem:[%s7856_s25 + $0x270] ss:$24 sps:$4 sm:$0xff]  }
  0x9a   : > { %1399 = vmatpush1.bf16.msra.mxu1 %v6882_v23  ;;  %1542 = vmatprep.subr.bf16.mxu0 %v6949_v44  ;;  %v6973_v59 = vld [vmem:[%s7856_s25 + $0x134] ss:$24 sps:$4 sm:$0xff]   ;;  %v6913_v60 = vld [vmem:[%s7856_s25 + $0x2a4] ss:$24 sps:$4 sm:$0xff]   ;;  %v6915_v61 = vld [vmem:[%s7856_s25 + $0x2a0] ss:$24 sps:$4 sm:$0xff]  }
  0x9b   : > { %1400 = vmatprep.subr.bf16.mxu1 %v6883_v24  ;;  %v6975_v62 = vld [vmem:[%s7856_s25 + $0x130] ss:$24 sps:$4 sm:$0xff]   ;;  %v6979_v63 = vld [vmem:[%s7856_s25 + $0x164] ss:$24 sps:$4 sm:$0xff]   ;;  %v6916_v0 = vld [vmem:[%s7856_s25 + $0x2d4] ss:$24 sps:$4 sm:$0xff]  }
  0x9c   : > { %v6918_v1 = vld [vmem:[%s7856_s25 + $0x2d0] ss:$24 sps:$4 sm:$0xff]   ;;  %v760_v2 = vld [vmem:[#allocation2] sm:$0xff]  ;;  %v6985_v7 = vld [vmem:[%s7856_s25 + $0x194] ss:$24 sps:$4 sm:$0xff]   ;;  %s10150_s28 = sld [smem:[#allocation4 + $0x3]] (!%p6570_p8) }
  0x9d   : > { %1543 = vmatpush1.bf16.msra.mxu0 %v6951_v45  ;;  %v762_v3 = vld [vmem:[#allocation2 + $0x10] sm:$0xff]  ;;  %v6921_v4 = vld [vmem:[%s7856_s25 + $0xc] ss:$24 sps:$4 sm:$0xff]   ;;  %v6981_v5 = vld [vmem:[%s7856_s25 + $0x160] ss:$24 sps:$4 sm:$0xff]   ;;  %vm5711_vm1 = vcmask (!%p6570_p8), 1040384  }
  0x9e   : > { %1401 = vmatpush1.bf16.msra.mxu1 %v6885_v25  ;;  %1544 = vmatprep.subr.bf16.mxu0 %v6955_v47  ;;  %v765_v6 = vld [vmem:[#allocation2 + $0x28] sm:$0xff]  ;;  %v767_v8 = vld [vmem:[#allocation2 + $0x38] sm:$0xff]  ;;  %v8019_v9 = vpack.c.bf16 %v762_v3, %v760_v2  ;;  %v764_v16 = vld [vmem:[#allocation2 + $0x20] sm:$0xff]  ;;  %vm5713_vm5 = vcmask (!%p6570_p8), 1041408   ;;  %vm5715_vm7 = vcmask (!%p6570_p8), 1042432   ;;  %s10439_s16 = sld [smem:[#allocation74_spill]] (!%p6570_p8) }
  0x9f   : > { %1402 = vmatprep.subr.bf16.mxu1 %v6886_v26  ;;  %v6987_v10 = vld [vmem:[%s7856_s25 + $0x190] ss:$24 sps:$4 sm:$0xff]   ;;  %v6924_v12 = vld [vmem:[%s7856_s25 + $0x3c] ss:$24 sps:$4 sm:$0xff]   ;;  %v8024_v13 = vpack.c.bf16 %v767_v8, %v765_v6  ;;  %v6927_v17 = vld [vmem:[%s7856_s25 + $0x6c] ss:$24 sps:$4 sm:$0xff]   ;;  %v10252_v8 = vlaneseq }
  0xa0   : > { %v6919_v11 = vld [vmem:[%s7856_s25 + $0x8] ss:$24 sps:$4 sm:$0xff]   ;;  %v6991_v14 = vld [vmem:[%s7856_s25 + $0x1c4] ss:$24 sps:$4 sm:$0xff]   ;;  %v6922_v15 = vld [vmem:[%s7856_s25 + $0x38] ss:$24 sps:$4 sm:$0xff]  }
  0xa1   : > { %1545 = vmatpush1.bf16.msra.mxu0 %v6957_v49  ;;  %v766_v18 = vld [vmem:[#allocation2 + $0x30] sm:$0xff]  ;;  %v6993_v19 = vld [vmem:[%s7856_s25 + $0x1c0] ss:$24 sps:$4 sm:$0xff]   ;;  %v769_v20 = vld [vmem:[#allocation2 + $0x48] sm:$0xff] }
  0xa2   : > { %1403 = vmatpush1.bf16.msra.mxu1 %v6888_v27  ;;  %1546 = vmatprep.subr.bf16.mxu0 %v6961_v51  ;;  %v6997_v21 = vld [vmem:[%s7856_s25 + $0x1f4] ss:$24 sps:$4 sm:$0xff]   ;;  %v771_v22 = vld [vmem:[#allocation2 + $0x58] sm:$0xff]  ;;  %v6925_v23 = vld [vmem:[%s7856_s25 + $0x68] ss:$24 sps:$4 sm:$0xff]   ;;  %v8036_v26 = vpack.c.bf16 %v766_v18, %v764_v16 }
  0xa3   : > { %1404 = vmatprep.subr.bf16.mxu1 %v6889_v28  ;;  %v6999_v24 = vld [vmem:[%s7856_s25 + $0x1f0] ss:$24 sps:$4 sm:$0xff]   ;;  %v6930_v25 = vld [vmem:[%s7856_s25 + $0x9c] ss:$24 sps:$4 sm:$0xff]   ;;  %v8039_v28 = vpack.c.bf16 %v771_v22, %v769_v20  ;;  %v7002_v29 = vld [vmem:[%s7856_s25 + $0x220] ss:$24 sps:$4 sm:$0xff]  }
  0xa4   : > { %v7000_v27 = vld [vmem:[%s7856_s25 + $0x224] ss:$24 sps:$4 sm:$0xff]   ;;  %v6928_v30 = vld [vmem:[%s7856_s25 + $0x98] ss:$24 sps:$4 sm:$0xff]   ;;  %v6940_v51 = vld [vmem:[%s7856_s25 + $0x128] ss:$24 sps:$4 sm:$0xff]  }
  0xa5   : > { %1547 = vmatpush1.bf16.msra.mxu0 %v6963_v54  ;;  %v775_v37 = vld [vmem:[#allocation2 + $0x78] sm:$0xff]  ;;  %v7005_v38 = vld [vmem:[%s7856_s25 + $0x250] ss:$24 sps:$4 sm:$0xff]   ;;  %v6942_v49 = vld [vmem:[%s7856_s25 + $0x12c] ss:$24 sps:$4 sm:$0xff]  }
  0xa6   : > { %1405 = vmatpush1.bf16.msra.mxu1 %v6891_v32  ;;  %1548 = vmatprep.subr.bf16.mxu0 %v6967_v55  ;;  %v768_v32 = vld [vmem:[#allocation2 + $0x40] sm:$0xff]  ;;  %v6936_v40 = vld [vmem:[%s7856_s25 + $0xfc] ss:$24 sps:$4 sm:$0xff]   ;;  %v6934_v45 = vld [vmem:[%s7856_s25 + $0xf8] ss:$24 sps:$4 sm:$0xff]  }
  0xa7   : > { %1406 = vmatprep.subr.bf16.mxu1 %v6892_v33  ;;  %v770_v33 = vld [vmem:[#allocation2 + $0x50] sm:$0xff]  ;;  %v7008_v44 = vld [vmem:[%s7856_s25 + $0x280] ss:$24 sps:$4 sm:$0xff]   ;;  %v7012_v54 = vld [vmem:[%s7856_s25 + $0x2e4] ss:$24 sps:$4 sm:$0xff]  }
  0xa8   : > { %v8050_v41 = vpack.c.bf16 %v770_v33, %v768_v32  ;;  %v774_v47 = vld [vmem:[#allocation2 + $0x70] sm:$0xff]  ;;  %v7014_v55 = vld [vmem:[%s7856_s25 + $0x2e0] ss:$24 sps:$4 sm:$0xff]  }
  0xa9   : > { %1549 = vmatpush1.bf16.msra.mxu0 %v6969_v57  ;;  %v6954_v57 = vld [vmem:[%s7856_s25 + $0x18c] ss:$24 sps:$4 sm:$0xff]   ;;  %v6984_v2 = vld [vmem:[%s7856_s25 + $0x27c] ss:$24 sps:$4 sm:$0xff]   ;;  %v6982_v3 = vld [vmem:[%s7856_s25 + $0x278] ss:$24 sps:$4 sm:$0xff]  }
  0xaa   : > { %1407 = vmatpush1.bf16.msra.mxu1 %v6894_v34  ;;  %1550 = vmatprep.subr.bf16.mxu0 %v6973_v59  ;;  %v7003_v34 = vld [vmem:[%s7856_s25 + $0x254] ss:$24 sps:$4 sm:$0xff]  }
  0xab   : > { %1408 = vmatprep.subr.bf16.mxu1 %v6895_v35  ;;  %v6933_v35 = vld [vmem:[%s7856_s25 + $0xcc] ss:$24 sps:$4 sm:$0xff]   ;;  %v6960_v59 = vld [vmem:[%s7856_s25 + $0x1bc] ss:$24 sps:$4 sm:$0xff]  }
  0xac   : > { %v6996_v6 = vld [vmem:[%s7856_s25 + $0x2dc] ss:$24 sps:$4 sm:$0xff]  }
  0xad   : > { %1551 = vmatpush1.bf16.msra.mxu0 %v6975_v62  ;;  %v6972_v62 = vld [vmem:[%s7856_s25 + $0x21c] ss:$24 sps:$4 sm:$0xff]  }
  0xae   : > { %1409 = vmatpush1.bf16.msra.mxu1 %v6897_v36  ;;  %1552 = vmatprep.subr.bf16.mxu0 %v6979_v63  ;;  %v773_v36 = vld [vmem:[#allocation2 + $0x68] sm:$0xff]  ;;  %v6970_v63 = vld [vmem:[%s7856_s25 + $0x218] ss:$24 sps:$4 sm:$0xff]  }
  0xaf   : > { %1410 = vmatprep.subr.bf16.mxu1 %v6898_v39  ;;  %v6931_v39 = vld [vmem:[%s7856_s25 + $0xc8] ss:$24 sps:$4 sm:$0xff]  }
  0xb1   : > { %1553 = vmatpush1.bf16.msra.mxu0 %v6981_v5  ;;  %v6988_v5 = vld [vmem:[%s7856_s25 + $0x2a8] ss:$24 sps:$4 sm:$0xff]  }
  0xb2   : > { %1411 = vmatpush1.bf16.msra.mxu1 %v6900_v42  ;;  %1554 = vmatprep.subr.bf16.mxu0 %v6985_v7  ;;  %v7006_v42 = vld [vmem:[%s7856_s25 + $0x284] ss:$24 sps:$4 sm:$0xff]   ;;  %v6994_v7 = vld [vmem:[%s7856_s25 + $0x2d8] ss:$24 sps:$4 sm:$0xff]  }
  0xb3   : > { %1412 = vmatprep.subr.bf16.mxu1 %v6901_v43  ;;  %v8053_v43 = vpack.c.bf16 %v775_v37, %v773_v36 }
  0xb5   : > { %1555 = vmatpush1.bf16.msra.mxu0 %v6987_v10  ;;  %v8097_v10 = vshrl.u32 %v10252_v8, 7 }
  0xb6   : > { %1413 = vmatpush1.bf16.msra.mxu1 %v6903_v46  ;;  %1556 = vmatprep.subr.bf16.mxu0 %v6991_v14  ;;  %v772_v46 = vld [vmem:[#allocation2 + $0x60] sm:$0xff] }
  0xb7   : > { %1414 = vmatprep.subr.bf16.mxu1 %v6904_v48  ;;  %v7009_v48 = vld [vmem:[%s7856_s25 + $0x2b4] ss:$24 sps:$4 sm:$0xff]  }
  0xb9   : > { %1557 = vmatpush1.bf16.msra.mxu0 %v6993_v19 }
  0xba   : > { %1415 = vmatpush1.bf16.msra.mxu1 %v6906_v50  ;;  %1558 = vmatprep.subr.bf16.mxu0 %v6997_v21  ;;  %v7011_v50 = vld [vmem:[%s7856_s25 + $0x2b0] ss:$24 sps:$4 sm:$0xff]  }
  0xbb   : > { %1416 = vmatprep.subr.bf16.mxu1 %v6907_v52  ;;  %v6948_v52 = vld [vmem:[%s7856_s25 + $0x15c] ss:$24 sps:$4 sm:$0xff]  }
  0xbd   : > { %1559 = vmatpush1.bf16.msra.mxu0 %v6999_v24 }
  0xbe   : > { %1417 = vmatpush1.bf16.msra.mxu1 %v6909_v53  ;;  %1560 = vmatprep.subr.bf16.mxu0 %v7000_v27  ;;  %v782_v53 = vpack.c.bf16 %v774_v47, %v772_v46  ;;  %v900_v47 = vsub.s32 4, %v8097_v10 }
  0xbf   : > { %1418 = vmatprep.subr.bf16.mxu1 %v6910_v56  ;;  %v6946_v56 = vld [vmem:[%s7856_s25 + $0x158] ss:$24 sps:$4 sm:$0xff]  }
  0xc1   : > { %1561 = vmatpush1.bf16.msra.mxu0 %v7002_v29 }
  0xc2   : > { %1419 = vmatpush1.bf16.msra.mxu1 %v6912_v58  ;;  %1562 = vmatprep.subr.bf16.mxu0 %v7003_v34  ;;  %v6952_v58 = vld [vmem:[%s7856_s25 + $0x188] ss:$24 sps:$4 sm:$0xff]  }
  0xc3   : > { %1420 = vmatprep.subr.bf16.mxu1 %v6913_v60  ;;  %v6958_v60 = vld [vmem:[%s7856_s25 + $0x1b8] ss:$24 sps:$4 sm:$0xff]  }
  0xc5   : > { %1563 = vmatpush1.bf16.msra.mxu0 %v7005_v38 }
  0xc6   : > { %1421 = vmatpush1.bf16.msra.mxu1 %v6915_v61  ;;  %1564 = vmatprep.subr.bf16.mxu0 %v7006_v42  ;;  %v6966_v61 = vld [vmem:[%s7856_s25 + $0x1ec] ss:$24 sps:$4 sm:$0xff]  }
  0xc7   : > { %1422 = vmatprep.subr.bf16.mxu1 %v6916_v0  ;;  %v6978_v0 = vld [vmem:[%s7856_s25 + $0x24c] ss:$24 sps:$4 sm:$0xff]  }
  0xc9   : > { %1565 = vmatpush1.bf16.msra.mxu0 %v7008_v44 }
  0xca   : > { %1423 = vmatpush1.bf16.msra.mxu1 %v6918_v1  ;;  %1566 = vmatprep.subr.bf16.mxu0 %v7009_v48  ;;  %v6976_v1 = vld [vmem:[%s7856_s25 + $0x248] ss:$24 sps:$4 sm:$0xff]  }
  0xcb   : > { %1465 = vmatprep.subr.bf16.mxu1 %v6921_v4  ;;  %v6990_v4 = vld [vmem:[%s7856_s25 + $0x2ac] ss:$24 sps:$4 sm:$0xff]  }
  0xcd   : > { %1425 = vmatmul.mubr.bf16.vlgmr.msra.gmra.mrb[0].mxu1 %v8019_v9  ;;  %1567 = vmatpush1.bf16.msra.mxu0 %v7011_v50  ;;  %v904_v50 = vsub.s32 5, %v8097_v10 }
  0xce   : > { %1466 = vmatpush1.bf16.msra.mxu1 %v6919_v11  ;;  %1434 = vmatprep.mubr.bf16.mxu1 %v8024_v13  ;;  %v8100_v11 = vsub.s32 0, %v8097_v10 }
  0xcf   : > { %1467 = vmatprep.subr.bf16.mxu1 %v6924_v12  ;;  %1568 = vmatprep.subr.bf16.mxu0 %v7012_v54  ;;  %v8103_v12 = vld [vmem:[%s7880_s19] sm:$0x3f]  ;;  %s10326_s19 = scalar_lea.vmem %s10233_s5, %s7875_s22  ;;  %s5691_s22 = sld [smem:[#allocation4]] (!%p6570_p8) }
  0xd0   : > { %10324 = vst [vmem:[#allocation16_spill] sm:$0xff] %v8100_v11 }
  0xd1   : > { %1569 = vmatpush1.bf16.msra.mxu0 %v7014_v55 }
  0xd2   : > { %1468 = vmatpush1.bf16.msra.mxu1 %v6922_v15 }
  0xd3   : > { %1469 = vmatprep.subr.bf16.mxu1 %v6927_v17 }
  0xd4   : > { %1571 = vmatmul.mubr.bf16.vlgmr.msra.gmra.mrb[0].mxu0 %v8019_v9 }
  0xd5   : > { %1435 = vmatmul.mubr.bf16.gmra.mrb[4].mxu1 %v8036_v26  ;;  %1580 = vmatprep.mubr.bf16.mxu0 %v8024_v13 }
  0xd6   : > { %1470 = vmatpush1.bf16.msra.mxu1 %v6925_v23  ;;  %1444 = vmatprep.mubr.bf16.mxu1 %v8039_v28 }
  0xd7   : > { %1471 = vmatprep.subr.bf16.mxu1 %v6930_v25 }
  0xda   : > { %1472 = vmatpush1.bf16.msra.mxu1 %v6928_v30 }
  0xdb   : > { %1473 = vmatprep.subr.bf16.mxu1 %v6933_v35 }
  0xdc   : > { %1581 = vmatmul.mubr.bf16.gmra.mrb[4].mxu0 %v8036_v26 }
  0xdd   : > { %1445 = vmatmul.mubr.bf16.gmra.mrb[8].mxu1 %v8050_v41  ;;  %1590 = vmatprep.mubr.bf16.mxu0 %v8039_v28 }
  0xde   : > { %1474 = vmatpush1.bf16.msra.mxu1 %v6931_v39  ;;  %1454 = vmatprep.mubr.bf16.mxu1 %v8053_v43 }
  0xdf   : > { %1475 = vmatprep.subr.bf16.mxu1 %v6936_v40 }
  0xe2   : > { %1476 = vmatpush1.bf16.msra.mxu1 %v6934_v45 }
  0xe3   : > { %1477 = vmatprep.subr.bf16.mxu1 %v6942_v49 }
  0xe4   : > { %1591 = vmatmul.mubr.bf16.gmra.mrb[8].mxu0 %v8050_v41 }
  0xe5   : > { %1455 = vmatmul.mubr.bf16.gmra.mrb[12].mxu1 %v782_v53  ;;  %1600 = vmatprep.mubr.bf16.mxu0 %v8053_v43 }
  0xe6   : > { %1478 = vmatpush1.bf16.msra.mxu1 %v6940_v51  ;;  %1497 = vmatprep.mubr.bf16.mxu1 %v7978_v31  ;;  %v6964_v31 = vld [vmem:[%s7856_s25 + $0x1e8] ss:$24 sps:$4 sm:$0xff]   ;;  %s10436_s25 = sld [smem:[#allocation72_spill]] (!%p6570_p8) }
  0xe7   : > { %1479 = vmatprep.subr.bf16.mxu1 %v6948_v52 }
  0xea   : > { %1480 = vmatpush1.bf16.msra.mxu1 %v6946_v56  ;;  %v901_v56 = vrot.slane %v8103_v12, %v900_v47 }
  0xeb   : > { %1481 = vmatprep.subr.bf16.mxu1 %v6954_v57 }
  0xec   : > { %1601 = vmatmul.mubr.bf16.gmra.mrb[12].mxu0 %v782_v53 }
  0xee   : > { %1482 = vmatpush1.bf16.msra.mxu1 %v6952_v58  ;;  %v8160_v58 = vrot.slane %v8103_v12, %v904_v50 }
  0xef   : > { %1483 = vmatprep.subr.bf16.mxu1 %v6960_v59 }
  0xf2   : > { %1484 = vmatpush1.bf16.msra.mxu1 %v6958_v60 }
  0xf3   : > { %1485 = vmatprep.subr.bf16.mxu1 %v6966_v61 }
  0xf6   : > { %1486 = vmatpush1.bf16.msra.mxu1 %v6964_v31 }
  0xf7   : > { %1487 = vmatprep.subr.bf16.mxu1 %v6972_v62 }
  0xfa   : > { %1488 = vmatpush1.bf16.msra.mxu1 %v6970_v63 }
  0xfb   : > { %1489 = vmatprep.subr.bf16.mxu1 %v6978_v0 }
  0xfe   : > { %1490 = vmatpush1.bf16.msra.mxu1 %v6976_v1 }
  0xff   : > { %1491 = vmatprep.subr.bf16.mxu1 %v6984_v2 }
 0x102   : > { %1492 = vmatpush1.bf16.msra.mxu1 %v6982_v3 }
 0x103   : > { %1493 = vmatprep.subr.bf16.mxu1 %v6990_v4 }
 0x106   : > { %1494 = vmatpush1.bf16.msra.mxu1 %v6988_v5 }
 0x107   : > { %1495 = vmatprep.subr.bf16.mxu1 %v6996_v6 }
 0x10a   : > { %1496 = vmatpush1.bf16.msra.mxu1 %v6994_v7 }
 0x10d   : > { %1498 = vmatmul.mubr.bf16.vlgmr.msra.gmra.mrb[16].mxu1 %v8019_v9  ;;  %v8106_v9 = vsub.s32 1, %v8097_v10 }
 0x10e   : > { %1507 = vmatprep.mubr.bf16.mxu1 %v8024_v13  ;;  %v885_v13 = vrot.slane %v8103_v12, %v8100_v11 }
 0x10f   : > { %10325 = vst [vmem:[#allocation17_spill] sm:$0xff] %v8106_v9  ;;  %v889_v15 = vrot.slane %v8103_v12, %v8106_v9 }
 0x115   : > { %1508 = vmatmul.mubr.bf16.gmra.mrb[20].mxu1 %v8036_v26 }
 0x116   : > { %1517 = vmatprep.mubr.bf16.mxu1 %v8039_v28 }
 0x11d   : > { %1518 = vmatmul.mubr.bf16.gmra.mrb[24].mxu1 %v8050_v41 }
 0x11e   : > { %1527 = vmatprep.mubr.bf16.mxu1 %v8053_v43 }
 0x125   : > { %1528 = vmatmul.mubr.bf16.gmra.mrb[28].mxu1 %v782_v53 }
 0x1a0   : > { %v1426_v14 = vpop.f32.mrb[0].mxu1 }
 0x1a1   : > { %v1427_v16 = vadd.f32 %v1426_v14, %v885_v13  ;;  %v1428_v17 = vpop.f32.mrb[1].mxu1 }
 0x1a2   : > { %v1430_v18 = vpop.f32.mrb[2].mxu1  ;;  %v8112_v21 = vadd.f32 %v1428_v17, %v889_v15 }
 0x1a3   : > { %v1431_v19 = vadd.f32 %v1430_v18, %v885_v13  ;;  %v1432_v20 = vpop.f32.mrb[3].mxu1 }
 0x1a4   : > { %v8114_v22 = vadd.f32 %v1432_v20, %v889_v15 }
 0x1a5   : > { %v1643_v23 = vpack.c.bf16 %v1431_v19, %v1427_v16 }
 0x1a6   : > { %v1894_v24 = vpack.c.bf16 %v8114_v22, %v8112_v21 }
 0x1a7   : > { %6664 = vmatprep.mubr.bf16.mxu1 %v1643_v23  ;;  %v1572_v60 = vpop.f32.mrb[0].mxu0 }
 0x1a8   : > { %v1436_v25 = vpop.f32.mrb[4].mxu1  ;;  %v1573_v61 = vadd.f32 %v1572_v60, %v901_v56  ;;  %v1574_v31 = vpop.f32.mrb[1].mxu0 }
 0x1a9   : > { %v8118_v26 = vadd.f32 %v1436_v25, %v885_v13  ;;  %v1438_v27 = vpop.f32.mrb[5].mxu1  ;;  %v1575_v62 = vadd.f32 %v1574_v31, %v8160_v58  ;;  %v1576_v63 = vpop.f32.mrb[2].mxu0  ;;  %v896_v31 = vsub.s32 3, %v8097_v10 }
 0x1aa   : > { %v8120_v28 = vadd.f32 %v1438_v27, %v889_v15  ;;  %v1440_v29 = vpop.f32.mrb[6].mxu1  ;;  %v1577_v0 = vadd.f32 %v1576_v63, %v901_v56  ;;  %v1578_v1 = vpop.f32.mrb[3].mxu0 }
 0x1ab   : > { %v8122_v30 = vadd.f32 %v1440_v29, %v885_v13  ;;  %v1442_v32 = vpop.f32.mrb[7].mxu1  ;;  %v1579_v2 = vadd.f32 %v1578_v1, %v8160_v58  ;;  %v897_v1 = vrot.slane %v8103_v12, %v896_v31 }
 0x1ac   : > { %v8124_v33 = vadd.f32 %v1442_v32, %v889_v15  ;;  %v8166_v3 = vpack.c.bf16 %v1577_v0, %v1573_v61  ;;  %v892_v61 = vsub.s32 2, %v8097_v10 }
 0x1ad   : > { %v1644_v34 = vpack.c.bf16 %v8122_v30, %v8118_v26  ;;  %v8168_v4 = vpack.c.bf16 %v1579_v2, %v1575_v62 }
 0x1ae   : > { %v1895_v35 = vpack.c.bf16 %v8124_v33, %v8120_v28  ;;  %v893_v63 = vrot.slane %v8103_v12, %v892_v61 }
 0x1af   : > { %v1582_v5 = vpop.f32.mrb[4].mxu0 }
 0x1b0   : > { %v1446_v36 = vpop.f32.mrb[8].mxu1  ;;  %v1583_v6 = vadd.f32 %v1582_v5, %v901_v56  ;;  %v1584_v7 = vpop.f32.mrb[5].mxu0 }
 0x1b1   : > { %v8130_v37 = vadd.f32 %v1446_v36, %v885_v13  ;;  %v1448_v38 = vpop.f32.mrb[9].mxu1  ;;  %v1586_v14 = vpop.f32.mrb[6].mxu0 }
 0x1b2   : > { %v8132_v39 = vadd.f32 %v1448_v38, %v889_v15  ;;  %v1450_v40 = vpop.f32.mrb[10].mxu1  ;;  %v1588_v16 = vpop.f32.mrb[7].mxu0 }
 0x1b3   : > { %v8134_v41 = vadd.f32 %v1450_v40, %v885_v13  ;;  %v1452_v42 = vpop.f32.mrb[11].mxu1  ;;  %v1589_v17 = vadd.f32 %v1588_v16, %v8160_v58 }
 0x1b4   : > { %v8136_v43 = vadd.f32 %v1452_v42, %v889_v15 }
 0x1b5   : > { %v1645_v44 = vpack.c.bf16 %v8134_v41, %v8130_v37 }
 0x1b6   : > { %v1896_v45 = vpack.c.bf16 %v8136_v43, %v8132_v39 }
 0x1b7   : > { %v1592_v20 = vpop.f32.mrb[8].mxu0 }
 0x1b8   : > { %v1456_v46 = vpop.f32.mrb[12].mxu1  ;;  %v1593_v23 = vadd.f32 %v1592_v20, %v901_v56  ;;  %v1594_v25 = vpop.f32.mrb[9].mxu0 }
 0x1b9   : > { %v8143_v48 = vadd.f32 %v1456_v46, %v885_v13  ;;  %v1458_v49 = vpop.f32.mrb[13].mxu1  ;;  %v1595_v27 = vadd.f32 %v1594_v25, %v8160_v58  ;;  %v1596_v29 = vpop.f32.mrb[10].mxu0 }
 0x1ba   : > { %v8146_v51 = vadd.f32 %v1458_v49, %v889_v15  ;;  %v1460_v52 = vpop.f32.mrb[14].mxu1  ;;  %v1597_v32 = vadd.f32 %v1596_v29, %v901_v56  ;;  %v1598_v36 = vpop.f32.mrb[11].mxu0 }
 0x1bb   : > { %v8148_v53 = vadd.f32 %v1460_v52, %v885_v13  ;;  %v1462_v54 = vpop.f32.mrb[15].mxu1  ;;  %v1585_v13 = vadd.f32 %v1584_v7, %v8160_v58  ;;  %v1599_v38 = vadd.f32 %v1598_v36, %v8160_v58 }
 0x1bc   : > { %v8150_v55 = vadd.f32 %v1462_v54, %v889_v15  ;;  %v1587_v15 = vadd.f32 %v1586_v14, %v901_v56  ;;  %v8178_v40 = vpack.c.bf16 %v1597_v32, %v1593_v23 }
 0x1bd   : > { %v1646_v57 = vpack.c.bf16 %v8148_v53, %v8143_v48  ;;  %v8174_v19 = vpack.c.bf16 %v1589_v17, %v1585_v13  ;;  %v8180_v42 = vpack.c.bf16 %v1599_v38, %v1595_v27 }
 0x1be   : > { %v1897_v59 = vpack.c.bf16 %v8150_v55, %v8146_v51  ;;  %v8172_v18 = vpack.c.bf16 %v1587_v15, %v1583_v6 }
 0x1bf   : > { %v1602_v46 = vpop.f32.mrb[12].mxu0 }
 0x1c0   : > { %v1603_v49 = vadd.f32 %v1602_v46, %v901_v56  ;;  %v8182_v52 = vpop.f32.mrb[13].mxu0 }
 0x1c1   : > { %v1606_v54 = vpop.f32.mrb[14].mxu0 }
 0x1c2   : > { %v1607_v60 = vadd.f32 %v1606_v54, %v901_v56 }
 0x1c4   : > { %v1812_v62 = vpack.c.bf16 %v1607_v60, %v1603_v49 }
 0x1e0   : > { %v1499_v0 = vpop.f32.mrb[16].mxu1 }
 0x1e1   : > { %v1501_v2 = vpop.f32.mrb[17].mxu1  ;;  %v1500_v6 = vadd.f32 %v1499_v0, %v893_v63 }
 0x1e2   : > { %v1503_v5 = vpop.f32.mrb[18].mxu1  ;;  %v1502_v56 = vadd.f32 %v1501_v2, %v897_v1 }
 0x1e3   : > { %v1504_v7 = vadd.f32 %v1503_v5, %v893_v63  ;;  %v1505_v13 = vpop.f32.mrb[19].mxu1 }
 0x1e4   : > { %v1506_v14 = vadd.f32 %v1505_v13, %v897_v1 }
 0x1e5   : > { %v1647_v15 = vpack.c.bf16 %v1504_v7, %v1500_v6 }
 0x1e6   : > { %v8192_v16 = vpack.c.bf16 %v1506_v14, %v1502_v56 }
 0x1e7   : > { %6656 = vmatprep.subr.bf16.mxu1 %v1647_v15 }
 0x1e8   : > { %v1509_v17 = vpop.f32.mrb[20].mxu1  ;;  %6657 = vmatpush3.bf16.xpose.msra.mxu1 %v1647_v15 }
 0x1e9   : > { %v1511_v20 = vpop.f32.mrb[21].mxu1  ;;  %v1510_v27 = vadd.f32 %v1509_v17, %v893_v63 }
 0x1ea   : > { %v1512_v23 = vadd.f32 %v1511_v20, %v897_v1  ;;  %v1513_v25 = vpop.f32.mrb[22].mxu1 }
 0x1eb   : > { %v1514_v29 = vadd.f32 %v1513_v25, %v893_v63  ;;  %v1515_v32 = vpop.f32.mrb[23].mxu1 }
 0x1ec   : > { %v1516_v12 = vadd.f32 %v1515_v32, %v897_v1 }
 0x1ed   : > { %v1648_v36 = vpack.c.bf16 %v1514_v29, %v1510_v27 }
 0x1ee   : > { %v8194_v38 = vpack.c.bf16 %v1516_v12, %v1512_v23 }
 0x1ef   : > { %6658 = vmatprep.subr.bf16.mxu1 %v1648_v36 }
 0x1f0   : > { %v1519_v46 = vpop.f32.mrb[24].mxu1  ;;  %6659 = vmatpush3.bf16.xpose.msra.mxu1 %v1648_v36 }
 0x1f1   : > { %v1521_v49 = vpop.f32.mrb[25].mxu1  ;;  %v1520_v0 = vadd.f32 %v1519_v46, %v893_v63 }
 0x1f2   : > { %v1522_v54 = vadd.f32 %v1521_v49, %v897_v1  ;;  %v1523_v60 = vpop.f32.mrb[26].mxu1 }
 0x1f3   : > { %v1524_v2 = vadd.f32 %v1523_v60, %v893_v63  ;;  %v1525_v5 = vpop.f32.mrb[27].mxu1 }
 0x1f4   : > { %v1526_v6 = vadd.f32 %v1525_v5, %v897_v1 }
 0x1f5   : > { %v1649_v7 = vpack.c.bf16 %v1524_v2, %v1520_v0 }
 0x1f6   : > { %v8196_v13 = vpack.c.bf16 %v1526_v6, %v1522_v54 }
 0x1f7   : > { %6660 = vmatprep.subr.bf16.mxu1 %v1649_v7 }
 0x1f8   : > { %v1529_v56 = vpop.f32.mrb[28].mxu1  ;;  %6661 = vmatpush3.bf16.xpose.msra.mxu1 %v1649_v7 }
 0x1f9   : > { %v1531_v14 = vpop.f32.mrb[29].mxu1  ;;  %v1530_v20 = vadd.f32 %v1529_v56, %v893_v63 }
 0x1fa   : > { %v1532_v15 = vadd.f32 %v1531_v14, %v897_v1  ;;  %v1533_v17 = vpop.f32.mrb[30].mxu1 }
 0x1fb   : > { %v1534_v23 = vadd.f32 %v1533_v17, %v893_v63  ;;  %v1535_v25 = vpop.f32.mrb[31].mxu1 }
 0x1fc   : > { %v1536_v27 = vadd.f32 %v1535_v25, %v897_v1 }
 0x1fd   : > { %v1650_v29 = vpack.c.bf16 %v1534_v23, %v1530_v20 }
 0x1fe   : > { %v8198_v32 = vpack.c.bf16 %v1536_v27, %v1532_v15 }
 0x1ff   : > { %6662 = vmatprep.subr.bf16.mxu1 %v1650_v29 }
 0x200   : > { %6663 = vmatpush3.bf16.xpose.msra.mxu1 %v1650_v29 }
 0x201   : > { %6672 = vmatprep.subr.bf16.mxu1 %v8166_v3 }
 0x207   : > { %6665 = vmatmul.mubr.bf16.vlgmr.msra.gmra.mrb[32].mxu1 %v1644_v34 }
 0x208   : > { %6668 = vmatprep.mubr.bf16.mxu1 %v1645_v44  ;;  %6673 = vmatpush3.bf16.msra.mxu1 %v8166_v3 }
 0x209   : > { %6674 = vmatprep.subr.bf16.mxu1 %v8172_v18 }
 0x20c   : > { %6675 = vmatpush3.bf16.msra.mxu1 %v8172_v18 }
 0x20d   : > { %6676 = vmatprep.subr.bf16.mxu1 %v8178_v40 }
 0x20f   : > { %6669 = vmatmul.mubr.bf16.gmra.mrb[36].mxu1 %v1646_v57 }
 0x210   : > { %6677 = vmatpush3.bf16.msra.mxu1 %v8178_v40 }
 0x211   : > { %6678 = vmatprep.subr.bf16.mxu1 %v1812_v62 }
 0x214   : > { %6679 = vmatpush3.bf16.msra.mxu1 %v1812_v62 }
 0x215   : > { %6688 = vmatprep.subr.bf16.mxu1 %v8192_v16 }
 0x2da   : > { %v6666_v26 = vpop.f32.mrb[32].mxu1 }
 0x2db   : > { %v1685_v30 = vpop.f32.mrb[33].mxu1  ;;  %v1723_v34 = vsel %vm1716_vm0, %v6666_v26, -inf }
 0x2dc   : > { %1724 = vmax.xlane.f32.xlu1 %v1723_v34  ;;  %v6667_v37 = vpop.f32.mrb[34].mxu1  ;;  %v1717_v41 = vsel %vm1716_vm0, %v1685_v30, -inf }
 0x2dd   : > { %1718 = vmax.xlane.f32.xlu0 %v1717_v41  ;;  %v1688_v44 = vpop.f32.mrb[35].mxu1  ;;  %v1726_v48 = vsel %vm1716_vm0, %v6667_v37, -inf }
 0x2de   : > { %v1720_v53 = vsel %vm1716_vm0, %v1688_v44, -inf }
 0x2e0   : > { %1727 = vmax.xlane.f32.xlu1 %v1726_v48 }
 0x2e1   : > { %1721 = vmax.xlane.f32.xlu0 %v1720_v53 }
 0x2e2   : > { %v6670_v57 = vpop.f32.mrb[36].mxu1 }
 0x2e3   : > { %v1701_v3 = vpop.f32.mrb[37].mxu1  ;;  %v1735_v1 = vsel %vm1716_vm0, %v6670_v57, -inf }
 0x2e4   : > { %v6671_v18 = vpop.f32.mrb[38].mxu1  ;;  %v1729_v40 = vsel %vm1716_vm0, %v1701_v3, -inf }
 0x2e5   : > { %1730 = vmax.xlane.f32.xlu0 %v1729_v40  ;;  %v1704_v62 = vpop.f32.mrb[39].mxu1  ;;  %v1738_v12 = vsel %vm1716_vm0, %v6671_v18, -inf }
 0x2e6   : > { %v1732_v63 = vsel %vm1716_vm0, %v1704_v62, -inf }
 0x2e7   : > { %1733 = vmax.xlane.f32.xlu1 %v1732_v63 }
 0x2e9   : > { %1736 = vmax.xlane.f32.xlu0 %v1735_v1 }
 0x2eb   : > { %1739 = vmax.xlane.f32.xlu1 %v1738_v12 }
 0x369   : > { %v1725_v36 = vpop.xlane.xlu1 %1724 }
 0x36a   : > { %v1743_v46 = vsub.f32 %v6666_v26, %v1725_v36  ;;  %v1719_v49 = vpop.xlane.xlu0 %1718 }
 0x36b   : > { %v1741_v54 = vsub.f32 %v1685_v30, %v1719_v49 }
 0x36c   : > { %v1753_v60 = vmul.f32 1.442695, %v1743_v46 }
 0x36d   : > { %v1749_v0 = vmul.f32 1.442695, %v1741_v54  ;;  %v1728_v2 = vpop.xlane.xlu1 %1727 }
 0x36e   : > { %v1744_v5 = vsub.f32 %v6667_v37, %v1728_v2  ;;  %v1722_v6 = vpop.xlane.xlu0 %1721  ;;  %v1608_v2 = vpop.f32.mrb[15].mxu0 }
 0x36f   : > { %7255 = vpow2.f32 %v1749_v0  ;;  %v1742_v7 = vsub.f32 %v1688_v44, %v1722_v6  ;;  %v1605_v0 = vadd.f32 %v8182_v52, %v8160_v58 }
 0x370   : > { %7257 = vpow2.f32 %v1753_v60  ;;  %v1755_v56 = vmul.f32 1.442695, %v1744_v5  ;;  %v1609_v5 = vadd.f32 %v1608_v2, %v8160_v58 }
 0x371   : > { %v1751_v14 = vmul.f32 1.442695, %v1742_v7 }
 0x372   : > { %v1731_v15 = vpop.xlane.xlu0 %1730  ;;  %v2062_v6 = vpack.c.bf16 %v1609_v5, %v1605_v0 }
 0x373   : > { %7259 = vpow2.f32 %v1751_v14  ;;  %v1745_v17 = vsub.f32 %v1701_v3, %v1731_v15 }
 0x374   : > { %v1734_v20 = vpop.xlane.xlu1 %1733  ;;  %7261 = vpow2.f32 %v1755_v56 }
 0x375   : > { %v1757_v23 = vmul.f32 1.442695, %v1745_v17  ;;  %v1746_v25 = vsub.f32 %v1704_v62, %v1734_v20 }
 0x376   : > { %v1737_v27 = vpop.xlane.xlu0 %1736 }
 0x377   : > { %7263 = vpow2.f32 %v1757_v23  ;;  %v1759_v29 = vmul.f32 1.442695, %v1746_v25  ;;  %v1747_v26 = vsub.f32 %v6670_v57, %v1737_v27 }
 0x378   : > { %v1740_v30 = vpop.xlane.xlu1 %1739 }
 0x379   : > { %v7256_v34 = vpop.eup %7255  ;;  %7265 = vpow2.f32 %v1759_v29  ;;  %v1761_v37 = vmul.f32 1.442695, %v1747_v26  ;;  %v1748_v41 = vsub.f32 %v6671_v18, %v1740_v30 }
 0x37a   : > { %v1765_v44 = vsel %vm1716_vm0, %v7256_v34, 0.0  ;;  %v7258_v48 = vpop.eup %7257 }
 0x37b   : > { %7267 = vpow2.f32 %v1761_v37  ;;  %v1763_v53 = vmul.f32 1.442695, %v1748_v41  ;;  %1766 = vadd.xlane.f32.xlu0 %v1765_v44  ;;  %v1771_v40 = vsel %vm1716_vm0, %v7258_v48, 0.0 }
 0x37d   : > { %v7260_v3 = vpop.eup %7259  ;;  %7269 = vpow2.f32 %v1763_v53 }
 0x37e   : > { %v1768_v62 = vsel %vm1716_vm0, %v7260_v3, 0.0  ;;  %v7262_v63 = vpop.eup %7261 }
 0x37f   : > { %1772 = vadd.xlane.f32.xlu0 %v1771_v40  ;;  %1769 = vadd.xlane.f32.xlu1 %v1768_v62  ;;  %v1774_v18 = vsel %vm1716_vm0, %v7262_v63, 0.0 }
 0x381   : > { %v7264_v57 = vpop.eup %7263 }
 0x382   : > { %v1777_v1 = vsel %vm1716_vm0, %v7264_v57, 0.0 }
 0x383   : > { %v7266_v12 = vpop.eup %7265  ;;  %1778 = vadd.xlane.f32.xlu0 %v1777_v1  ;;  %1775 = vadd.xlane.f32.xlu1 %v1774_v18 }
 0x384   : > { %v1780_v49 = vsel %vm1716_vm0, %v7266_v12, 0.0 }
 0x385   : > { %v7268_v36 = vpop.eup %7267 }
 0x386   : > { %v1783_v46 = vsel %vm1716_vm0, %v7268_v36, 0.0 }
 0x387   : > { %v7270_v54 = vpop.eup %7269  ;;  %1784 = vadd.xlane.f32.xlu0 %v1783_v46  ;;  %1781 = vadd.xlane.f32.xlu1 %v1780_v49 }
 0x388   : > { %v1786_v60 = vsel %vm1716_vm0, %v7270_v54, 0.0 }
 0x38b   : > { %1787 = vadd.xlane.f32.xlu1 %v1786_v60 }
 0x408   : > { %v1767_v7 = vpop.xlane.xlu0 %1766 }
 0x409   : > { %7271 = vrcp.f32 %v1767_v7 }
 0x40c   : > { %v1773_v56 = vpop.xlane.xlu0 %1772  ;;  %v1770_v14 = vpop.xlane.xlu1 %1769 }
 0x40d   : > { %7273 = vrcp.f32 %v1770_v14 }
 0x40e   : > { %7275 = vrcp.f32 %v1773_v56 }
 0x410   : > { %v1779_v15 = vpop.xlane.xlu0 %1778  ;;  %v1776_v17 = vpop.xlane.xlu1 %1775 }
 0x411   : > { %7277 = vrcp.f32 %v1776_v17 }
 0x412   : > { %7279 = vrcp.f32 %v1779_v15 }
 0x413   : > { %v7272_v25 = vpop.eup %7271 }
 0x414   : > { %v1785_v20 = vpop.xlane.xlu0 %1784  ;;  %v1782_v23 = vpop.xlane.xlu1 %1781  ;;  %v1797_v58 = vmul.f32 %v7272_v25, %v7256_v34 }
 0x415   : > { %7281 = vrcp.f32 %v1782_v23 }
 0x416   : > { %7283 = vrcp.f32 %v1785_v20 }
 0x417   : > { %v7274_v52 = vpop.eup %7273 }
 0x418   : > { %v1788_v27 = vpop.xlane.xlu1 %1787  ;;  %v1798_v29 = vmul.f32 %v7274_v52, %v7260_v3  ;;  %v7276_v26 = vpop.eup %7275 }
 0x419   : > { %7285 = vrcp.f32 %v1788_v27  ;;  %v1799_v41 = vmul.f32 %v7276_v26, %v7258_v48 }
 0x41a   : > { %v1805_v30 = vpack.c.bf16 %v1798_v29, %v1797_v58 }
 0x41b   : > { %v7278_v37 = vpop.eup %7277 }
 0x41c   : > { %v1800_v44 = vmul.f32 %v7278_v37, %v7262_v63  ;;  %6680 = vmatprep.mubr.msk.bf16.mxu1 %vm1716_vm0, %v1805_v30  ;;  %v7280_v53 = vpop.eup %7279 }
 0x41d   : > { %v1801_v18 = vmul.f32 %v7280_v53, %v7264_v57 }
 0x41e   : > { %v1806_v40 = vpack.c.bf16 %v1800_v44, %v1799_v41 }
 0x41f   : > { %v7282_v62 = vpop.eup %7281 }
 0x420   : > { %v7284_v1 = vpop.eup %7283  ;;  %6681 = vmatmul.mubr.msk.bf16.vlgmr.msra.gmra.mrb[40].mxu1 %vm1716_vm0, %v1806_v40  ;;  %v1802_v46 = vmul.f32 %v7282_v62, %v7266_v12 }
 0x421   : > { %6689 = vmatpush3.bf16.xpose.msra.mxu1 %v8192_v16  ;;  %v1803_v3 = vmul.f32 %v7284_v1, %v7268_v36 }
 0x422   : > { %6690 = vmatprep.subr.bf16.mxu1 %v8194_v38  ;;  %v1807_v34 = vpack.c.bf16 %v1802_v46, %v1801_v18 }
 0x423   : > { %v7286_v49 = vpop.eup %7285 }
 0x424   : > { %v1804_v60 = vmul.f32 %v7286_v49, %v7270_v54  ;;  %6684 = vmatprep.mubr.msk.bf16.mxu1 %vm1716_vm0, %v1807_v34 }
 0x426   : > { %v1808_v48 = vpack.c.bf16 %v1804_v60, %v1803_v3 }
 0x428   : > { %6685 = vmatmul.mubr.msk.bf16.gmra.mrb[44].mxu1 %vm1716_vm0, %v1808_v48 }
 0x429   : > { %6691 = vmatpush3.bf16.xpose.msra.mxu1 %v8194_v38  ;;  %6696 = vmatprep.mubr.bf16.mxu1 %v1894_v24 }
 0x42a   : > { %6692 = vmatprep.subr.bf16.mxu1 %v8196_v13 }
 0x431   : > { %6693 = vmatpush3.bf16.xpose.msra.mxu1 %v8196_v13 }
 0x432   : > { %6694 = vmatprep.subr.bf16.mxu1 %v8198_v32 }
 0x439   : > { %6695 = vmatpush3.bf16.xpose.msra.mxu1 %v8198_v32 }
 0x43a   : > { %6704 = vmatprep.subr.bf16.mxu1 %v8168_v4 }
 0x440   : > { %6697 = vmatmul.mubr.bf16.vlgmr.msra.gmra.mrb[48].mxu1 %v1895_v35 }
 0x441   : > { %6700 = vmatprep.mubr.bf16.mxu1 %v1896_v45  ;;  %6705 = vmatpush3.bf16.msra.mxu1 %v8168_v4 }
 0x442   : > { %6706 = vmatprep.subr.bf16.mxu1 %v8174_v19 }
 0x445   : > { %6707 = vmatpush3.bf16.msra.mxu1 %v8174_v19 }
 0x446   : > { %6708 = vmatprep.subr.bf16.mxu1 %v8180_v42 }
 0x448   : > { %6701 = vmatmul.mubr.bf16.gmra.mrb[52].mxu1 %v1897_v59 }
 0x449   : > { %6709 = vmatpush3.bf16.msra.mxu1 %v8180_v42 }
 0x44a   : > { %6710 = vmatprep.subr.bf16.mxu1 %v2062_v6 }
 0x44d   : > { %6711 = vmatpush3.bf16.msra.mxu1 %v2062_v6 }
 0x4f3   : > { %v8264_v21 = vpop.f32.mrb[40].mxu1 }
 0x4f4   : > { %v8266_v22 = vpop.f32.mrb[41].mxu1 }
 0x4f5   : > { %v8268_v24 = vpop.f32.mrb[42].mxu1 }
 0x4f6   : > { %v1891_v28 = vpack.c.bf16 %v8268_v24, %v8264_v21  ;;  %v8272_v33 = vpop.f32.mrb[43].mxu1 }
 0x4f7   : > { %v1890_v35 = vpack.c.bf16 %v8272_v33, %v8266_v22  ;;  %v2450_v22 = vld [vmem:[%s10326_s19] sm:$0x3] }
 0x4f8   : > { %v8358_v33 = vrot.slane %v2450_v22, %v8100_v11  ;;  %v8361_v21 = vrot.slane %v2450_v22, %v8106_v9 }
 0x4fb   : > { %v8276_v39 = vpop.f32.mrb[44].mxu1 }
 0x4fc   : > { %v8278_v43 = vpop.f32.mrb[45].mxu1 }
 0x4fd   : > { %v8280_v45 = vpop.f32.mrb[46].mxu1 }
 0x4fe   : > { %v1893_v51 = vpack.c.bf16 %v8280_v45, %v8276_v39  ;;  %v8284_v55 = vpop.f32.mrb[47].mxu1  ;;  %v7479_v39 = vld [vmem:[#allocation2] sm:$0xff] }
 0x4ff   : > { %v1892_v59 = vpack.c.bf16 %v8284_v55, %v8278_v43 }
 0x513   : > { %v6698_v4 = vpop.f32.mrb[48].mxu1 }
 0x514   : > { %v1936_v19 = vpop.f32.mrb[49].mxu1  ;;  %v1973_v32 = vsel %vm1716_vm0, %v6698_v4, -inf }
 0x515   : > { %v6699_v42 = vpop.f32.mrb[50].mxu1  ;;  %v1967_v16 = vsel %vm1716_vm0, %v1936_v19, -inf }
 0x516   : > { %1968 = vmax.xlane.f32.xlu0 %v1967_v16  ;;  %v1939_v38 = vpop.f32.mrb[51].mxu1  ;;  %v1976_v57 = vsel %vm1716_vm0, %v6699_v42, -inf }
 0x517   : > { %v1970_v13 = vsel %vm1716_vm0, %v1939_v38, -inf }
 0x518   : > { %1971 = vmax.xlane.f32.xlu1 %v1970_v13 }
 0x51a   : > { %1974 = vmax.xlane.f32.xlu0 %v1973_v32 }
 0x51b   : > { %v6702_v63 = vpop.f32.mrb[52].mxu1 }
 0x51c   : > { %1977 = vmax.xlane.f32.xlu1 %v1976_v57  ;;  %v1952_v12 = vpop.f32.mrb[53].mxu1  ;;  %v1985_v5 = vsel %vm1716_vm0, %v6702_v63, -inf }
 0x51d   : > { %v6703_v36 = vpop.f32.mrb[54].mxu1  ;;  %v1979_v54 = vsel %vm1716_vm0, %v1952_v12, -inf }
 0x51e   : > { %1980 = vmax.xlane.f32.xlu0 %v1979_v54  ;;  %v1955_v0 = vpop.f32.mrb[55].mxu1  ;;  %v1988_v6 = vsel %vm1716_vm0, %v6703_v36, -inf }
 0x51f   : > { %v1982_v2 = vsel %vm1716_vm0, %v1955_v0, -inf }
 0x520   : > { %1983 = vmax.xlane.f32.xlu1 %v1982_v2 }
 0x522   : > { %1986 = vmax.xlane.f32.xlu0 %v1985_v5 }
 0x524   : > { %1989 = vmax.xlane.f32.xlu1 %v1988_v6 }
 0x5a3   : > { %v1969_v7 = vpop.xlane.xlu0 %1968 }
 0x5a4   : > { %v1991_v56 = vsub.f32 %v1936_v19, %v1969_v7 }
 0x5a5   : > { %v1972_v14 = vpop.xlane.xlu1 %1971 }
 0x5a6   : > { %v1999_v15 = vmul.f32 1.442695, %v1991_v56  ;;  %v1992_v17 = vsub.f32 %v1939_v38, %v1972_v14 }
 0x5a7   : > { %v1975_v20 = vpop.xlane.xlu0 %1974 }
 0x5a8   : > { %7287 = vpow2.f32 %v1999_v15  ;;  %v2001_v23 = vmul.f32 1.442695, %v1992_v17  ;;  %v1993_v25 = vsub.f32 %v6698_v4, %v1975_v20 }
 0x5a9   : > { %v1978_v52 = vpop.xlane.xlu1 %1977 }
 0x5aa   : > { %7289 = vpow2.f32 %v2001_v23  ;;  %v2003_v27 = vmul.f32 1.442695, %v1993_v25  ;;  %v1994_v58 = vsub.f32 %v6699_v42, %v1978_v52 }
 0x5ab   : > { %v1981_v29 = vpop.xlane.xlu0 %1980 }
 0x5ac   : > { %7291 = vpow2.f32 %v2003_v27  ;;  %v2005_v26 = vmul.f32 1.442695, %v1994_v58  ;;  %v1995_v30 = vsub.f32 %v1952_v12, %v1981_v29 }
 0x5ad   : > { %v1984_v37 = vpop.xlane.xlu1 %1983 }
 0x5ae   : > { %7293 = vpow2.f32 %v2005_v26  ;;  %v2007_v41 = vmul.f32 1.442695, %v1995_v30  ;;  %v1996_v44 = vsub.f32 %v1955_v0, %v1984_v37  ;;  %v7017_v0 = vld [vmem:[%s7873_s0 + $0x84] ss:$8 sps:$4 sm:$0xff]  }
 0x5af   : > { %v1987_v53 = vpop.xlane.xlu0 %1986  ;;  %2224 = vmatprep.subr.bf16.mxu1 %v7017_v0  ;;  %v7041_v0 = vld [vmem:[%s7873_s0 + $0x4] ss:$8 sps:$4 sm:$0xff]  }
 0x5b0   : > { %7295 = vpow2.f32 %v2007_v41  ;;  %v2009_v40 = vmul.f32 1.442695, %v1996_v44  ;;  %v1997_v62 = vsub.f32 %v6702_v63, %v1987_v53  ;;  %v7015_v41 = vld [vmem:[%s7873_s0 + $0x80] ss:$8 sps:$4 sm:$0xff]   ;;  %v7020_v53 = vld [vmem:[%s7873_s0 + $0x94] ss:$8 sps:$4 sm:$0xff]  }
 0x5b1   : > { %v1990_v1 = vpop.xlane.xlu1 %1989 }
 0x5b2   : > { %v7288_v18 = vpop.eup %7287  ;;  %7297 = vpow2.f32 %v2009_v40  ;;  %v2011_v46 = vmul.f32 1.442695, %v1997_v62  ;;  %v1998_v49 = vsub.f32 %v6703_v36, %v1990_v1 }
 0x5b3   : > { %v2015_v34 = vsel %vm1716_vm0, %v7288_v18, 0.0 }
 0x5b4   : > { %v7290_v3 = vpop.eup %7289  ;;  %7299 = vpow2.f32 %v2011_v46  ;;  %v2013_v60 = vmul.f32 1.442695, %v1998_v49  ;;  %2016 = vadd.xlane.f32.xlu0 %v2015_v34  ;;  %v7018_v46 = vld [vmem:[%s7873_s0 + $0x90] ss:$8 sps:$4 sm:$0xff]   ;;  %v7023_v34 = vld [vmem:[%s7873_s0 + $0xa4] ss:$8 sps:$4 sm:$0xff]  }
 0x5b5   : > { %v2018_v48 = vsel %vm1716_vm0, %v7290_v3, 0.0 }
 0x5b6   : > { %v7292_v4 = vpop.eup %7291  ;;  %7301 = vpow2.f32 %v2013_v60  ;;  %2019 = vadd.xlane.f32.xlu1 %v2018_v48 }
 0x5b7   : > { %v2021_v19 = vsel %vm1716_vm0, %v7292_v4, 0.0 }
 0x5b8   : > { %v7294_v42 = vpop.eup %7293  ;;  %2022 = vadd.xlane.f32.xlu0 %v2021_v19 }
 0x5b9   : > { %v2024_v16 = vsel %vm1716_vm0, %v7294_v42, 0.0 }
 0x5ba   : > { %v7296_v38 = vpop.eup %7295  ;;  %2025 = vadd.xlane.f32.xlu1 %v2024_v16  ;;  %v7024_v16 = vld [vmem:[%s7873_s0 + $0xb0] ss:$8 sps:$4 sm:$0xff]  }
 0x5bb   : > { %v2027_v13 = vsel %vm1716_vm0, %v7296_v38, 0.0 }
 0x5bc   : > { %v7298_v32 = vpop.eup %7297  ;;  %2028 = vadd.xlane.f32.xlu0 %v2027_v13  ;;  %v7027_v13 = vld [vmem:[%s7873_s0 + $0xc0] ss:$8 sps:$4 sm:$0xff]  }
 0x5bd   : > { %v2030_v63 = vsel %vm1716_vm0, %v7298_v32, 0.0 }
 0x5be   : > { %v7300_v57 = vpop.eup %7299  ;;  %2031 = vadd.xlane.f32.xlu1 %v2030_v63  ;;  %v7030_v63 = vld [vmem:[%s7873_s0 + $0xd0] ss:$8 sps:$4 sm:$0xff]  }
 0x5bf   : > { %v2033_v12 = vsel %vm1716_vm0, %v7300_v57, 0.0 }
 0x5c0   : > { %v7302_v36 = vpop.eup %7301  ;;  %2034 = vadd.xlane.f32.xlu0 %v2033_v12  ;;  %v7033_v12 = vld [vmem:[%s7873_s0 + $0xe0] ss:$8 sps:$4 sm:$0xff]  }
 0x5c1   : > { %v2036_v54 = vsel %vm1716_vm0, %v7302_v36, 0.0 }
 0x5c2   : > { %2037 = vadd.xlane.f32.xlu1 %v2036_v54  ;;  %v7036_v54 = vld [vmem:[%s7873_s0 + $0xf0] ss:$8 sps:$4 sm:$0xff]  }
 0x641   : > { %v2017_v2 = vpop.xlane.xlu0 %2016 }
 0x642   : > { %7303 = vrcp.f32 %v2017_v2  ;;  %v7636_v2 = vmov 0  }
 0x643   : > { %v2020_v5 = vpop.xlane.xlu1 %2019 }
 0x644   : > { %7305 = vrcp.f32 %v2020_v5 }
 0x645   : > { %v2023_v6 = vpop.xlane.xlu0 %2022 }
 0x646   : > { %7307 = vrcp.f32 %v2023_v6 }
 0x647   : > { %v2026_v7 = vpop.xlane.xlu1 %2025 }
 0x648   : > { %7309 = vrcp.f32 %v2026_v7 }
 0x649   : > { %v2029_v56 = vpop.xlane.xlu0 %2028 }
 0x64a   : > { %7311 = vrcp.f32 %v2029_v56 }
 0x64b   : > { %v2032_v14 = vpop.xlane.xlu1 %2031 }
 0x64c   : > { %v7304_v15 = vpop.eup %7303  ;;  %7313 = vrcp.f32 %v2032_v14 }
 0x64d   : > { %v2035_v17 = vpop.xlane.xlu0 %2034  ;;  %v2047_v25 = vmul.f32 %v7304_v15, %v7288_v18  ;;  %v7039_v15 = vld [vmem:[%s7873_s0] ss:$8 sps:$4 sm:$0xff]  }
 0x64e   : > { %v7306_v20 = vpop.eup %7305  ;;  %7315 = vrcp.f32 %v2035_v17 }
 0x64f   : > { %v2038_v23 = vpop.xlane.xlu1 %2037  ;;  %v2048_v52 = vmul.f32 %v7306_v20, %v7290_v3  ;;  %v7044_v20 = vld [vmem:[%s7873_s0 + $0x14] ss:$8 sps:$4 sm:$0xff]  }
 0x650   : > { %v7308_v27 = vpop.eup %7307  ;;  %7317 = vrcp.f32 %v2038_v23  ;;  %v7042_v23 = vld [vmem:[%s7873_s0 + $0x10] ss:$8 sps:$4 sm:$0xff]  }
 0x651   : > { %v2055_v58 = vpack.c.bf16 %v2048_v52, %v2047_v25  ;;  %v2049_v26 = vmul.f32 %v7308_v27, %v7292_v4  ;;  %v7021_v4 = vld [vmem:[%s7873_s0 + $0xa0] ss:$8 sps:$4 sm:$0xff]   ;;  %v7047_v52 = vld [vmem:[%s7873_s0 + $0x24] ss:$8 sps:$4 sm:$0xff]  }
 0x652   : > { %v7310_v29 = vpop.eup %7309 }
 0x653   : > { %v2050_v30 = vmul.f32 %v7310_v29, %v7294_v42  ;;  %6712 = vmatprep.mubr.msk.bf16.mxu1 %vm1716_vm0, %v2055_v58  ;;  %v7026_v42 = vld [vmem:[%s7873_s0 + $0xb4] ss:$8 sps:$4 sm:$0xff]  }
 0x654   : > { %v7312_v37 = vpop.eup %7311 }
 0x655   : > { %v2056_v44 = vpack.c.bf16 %v2050_v30, %v2049_v26  ;;  %v2051_v62 = vmul.f32 %v7312_v37, %v7296_v38  ;;  %v7029_v38 = vld [vmem:[%s7873_s0 + $0xc4] ss:$8 sps:$4 sm:$0xff]   ;;  %v7045_v30 = vld [vmem:[%s7873_s0 + $0x20] ss:$8 sps:$4 sm:$0xff]  }
 0x656   : > { %v7314_v40 = vpop.eup %7313 }
 0x657   : > { %6713 = vmatmul.mubr.msk.bf16.vlgmr.msra.gmra.mrb[56].mxu1 %vm1716_vm0, %v2056_v44  ;;  %v2052_v1 = vmul.f32 %v7314_v40, %v7298_v32  ;;  %v7032_v32 = vld [vmem:[%s7873_s0 + $0xd4] ss:$8 sps:$4 sm:$0xff]   ;;  %v7048_v44 = vld [vmem:[%s7873_s0 + $0x30] ss:$8 sps:$4 sm:$0xff]   ;;  %v7051_v40 = vld [vmem:[%s7873_s0 + $0x40] ss:$8 sps:$4 sm:$0xff]  }
 0x658   : > { %v7316_v18 = vpop.eup %7315  ;;  %2225 = vmatpush1.bf16.msra.mxu1 %v7015_v41  ;;  %v7050_v41 = vld [vmem:[%s7873_s0 + $0x34] ss:$8 sps:$4 sm:$0xff]  }
 0x659   : > { %v2057_v49 = vpack.c.bf16 %v2052_v1, %v2051_v62  ;;  %2226 = vmatprep.subr.bf16.mxu1 %v7020_v53  ;;  %v2053_v60 = vmul.f32 %v7316_v18, %v7300_v57  ;;  %v7035_v57 = vld [vmem:[%s7873_s0 + $0xe4] ss:$8 sps:$4 sm:$0xff]   ;;  %v7056_v62 = vld [vmem:[%s7873_s0 + $0x54] ss:$8 sps:$4 sm:$0xff]   ;;  %v7054_v1 = vld [vmem:[%s7873_s0 + $0x50] ss:$8 sps:$4 sm:$0xff]  }
 0x65a   : > { %v7318_v3 = vpop.eup %7317  ;;  %v7053_v53 = vld [vmem:[%s7873_s0 + $0x44] ss:$8 sps:$4 sm:$0xff]  }
 0x65b   : > { %6716 = vmatprep.mubr.msk.bf16.mxu1 %vm1716_vm0, %v2057_v49  ;;  %v2054_v48 = vmul.f32 %v7318_v3, %v7302_v36  ;;  %v7038_v36 = vld [vmem:[%s7873_s0 + $0xf4] ss:$8 sps:$4 sm:$0xff]   ;;  %v7059_v18 = vld [vmem:[%s7873_s0 + $0x64] ss:$8 sps:$4 sm:$0xff]  }
 0x65c   : > { %2227 = vmatpush1.bf16.msra.mxu1 %v7018_v46  ;;  %v7057_v46 = vld [vmem:[%s7873_s0 + $0x60] ss:$8 sps:$4 sm:$0xff]   ;;  %v7062_v49 = vld [vmem:[%s7873_s0 + $0x74] ss:$8 sps:$4 sm:$0xff]  }
 0x65d   : > { %v2058_v19 = vpack.c.bf16 %v2054_v48, %v2053_v60  ;;  %2228 = vmatprep.subr.bf16.mxu1 %v7023_v34  ;;  %v7060_v34 = vld [vmem:[%s7873_s0 + $0x70] ss:$8 sps:$4 sm:$0xff]   ;;  %v7480_v3 = vld [vmem:[#allocation2 + $0x8] sm:$0xff] }
 0x65f   : > { %6717 = vmatmul.mubr.msk.bf16.gmra.mrb[60].mxu1 %vm1716_vm0, %v2058_v19 }
 0x660   : > { %2229 = vmatpush1.bf16.msra.mxu1 %v7021_v4  ;;  %2256 = vmatprep.mubr.bf16.mxu1 %v7636_v2  ;;  %v7481_v4 = vld [vmem:[#allocation2 + $0x10] sm:$0xff] }
 0x661   : > { %2230 = vmatprep.subr.bf16.mxu1 %v7026_v42  ;;  %v7482_v42 = vld [vmem:[#allocation2 + $0x18] sm:$0xff] }
 0x664   : > { %2231 = vmatpush1.bf16.msra.mxu1 %v7024_v16 }
 0x665   : > { %2232 = vmatprep.subr.bf16.mxu1 %v7029_v38 }
 0x668   : > { %2233 = vmatpush1.bf16.msra.mxu1 %v7027_v13 }
 0x669   : > { %2234 = vmatprep.subr.bf16.mxu1 %v7032_v32 }
 0x66c   : > { %2235 = vmatpush1.bf16.msra.mxu1 %v7030_v63 }
 0x66d   : > { %2236 = vmatprep.subr.bf16.mxu1 %v7035_v57 }
 0x670   : > { %2237 = vmatpush1.bf16.msra.mxu1 %v7033_v12 }
 0x671   : > { %2238 = vmatprep.subr.bf16.mxu1 %v7038_v36 }
 0x674   : > { %2239 = vmatpush1.bf16.msra.mxu1 %v7036_v54  ;;  %v7483_v54 = vld [vmem:[#allocation2 + $0x20] sm:$0xff] }
 0x675   : > { %2377 = vmatprep.subr.bf16.mxu1 %v7041_v0 }
 0x72a   : > { %v6714_v5 = vpop.f32.mrb[56].mxu1 }
 0x72b   : > { %v2109_v6 = vpop.f32.mrb[57].mxu1 }
 0x72c   : > { %v6715_v7 = vpop.f32.mrb[58].mxu1 }
 0x72d   : > { %v2141_v56 = vpack.c.bf16 %v6715_v7, %v6714_v5  ;;  %v2112_v14 = vpop.f32.mrb[59].mxu1 }
 0x72e   : > { %v2140_v17 = vpack.c.bf16 %v2112_v14, %v2109_v6  ;;  %v7484_v6 = vld [vmem:[#allocation2 + $0x28] sm:$0xff]  ;;  %v7485_v14 = vld [vmem:[#allocation2 + $0x30] sm:$0xff] }
 0x730   : > { %2257 = vmatmul.mubr.bf16.vlgmr.msra.gmra.mrb[64].mxu1 %v2140_v17  ;;  %v7486_v17 = vld [vmem:[#allocation2 + $0x38] sm:$0xff] }
 0x731   : > { %2378 = vmatpush1.bf16.msra.mxu1 %v7039_v15  ;;  %2266 = vmatprep.mubr.bf16.mxu1 %v7636_v2 }
 0x732   : > { %v6718_v25 = vpop.f32.mrb[60].mxu1  ;;  %2379 = vmatprep.subr.bf16.mxu1 %v7044_v20 }
 0x733   : > { %v2125_v27 = vpop.f32.mrb[61].mxu1 }
 0x734   : > { %v6719_v58 = vpop.f32.mrb[62].mxu1 }
 0x735   : > { %v2143_v29 = vpack.c.bf16 %v6719_v58, %v6718_v25  ;;  %v2128_v26 = vpop.f32.mrb[63].mxu1  ;;  %2380 = vmatpush1.bf16.msra.mxu1 %v7042_v23 }
 0x736   : > { %v2142_v37 = vpack.c.bf16 %v2128_v26, %v2125_v27  ;;  %2381 = vmatprep.subr.bf16.mxu1 %v7047_v52 }
 0x738   : > { %2267 = vmatmul.mubr.bf16.gmra.mrb[68].mxu1 %v2141_v56 }
 0x739   : > { %2382 = vmatpush1.bf16.msra.mxu1 %v7045_v30  ;;  %2276 = vmatprep.mubr.bf16.mxu1 %v7636_v2  ;;  %v7487_v30 = vld [vmem:[#allocation2 + $0x40] sm:$0xff] }
 0x73a   : > { %2383 = vmatprep.subr.bf16.mxu1 %v7050_v41 }
 0x73d   : > { %2384 = vmatpush1.bf16.msra.mxu1 %v7048_v44 }
 0x73e   : > { %2385 = vmatprep.subr.bf16.mxu1 %v7053_v53  ;;  %v7488_v53 = vld [vmem:[#allocation2 + $0x48] sm:$0xff] }
 0x740   : > { %2277 = vmatmul.mubr.bf16.gmra.mrb[72].mxu1 %v2142_v37 }
 0x741   : > { %2386 = vmatpush1.bf16.msra.mxu1 %v7051_v40  ;;  %2286 = vmatprep.mubr.bf16.mxu1 %v7636_v2 }
 0x742   : > { %2387 = vmatprep.subr.bf16.mxu1 %v7056_v62 }
 0x745   : > { %2388 = vmatpush1.bf16.msra.mxu1 %v7054_v1  ;;  %v7489_v1 = vld [vmem:[#allocation2 + $0x50] sm:$0xff] }
 0x746   : > { %2389 = vmatprep.subr.bf16.mxu1 %v7059_v18 }
 0x748   : > { %2287 = vmatmul.mubr.bf16.gmra.mrb[76].mxu1 %v2143_v29 }
 0x749   : > { %2390 = vmatpush1.bf16.msra.mxu1 %v7057_v46  ;;  %2409 = vmatprep.mubr.bf16.mxu1 %v7636_v2  ;;  %v7490_v46 = vld [vmem:[#allocation2 + $0x58] sm:$0xff] }
 0x74a   : > { %2391 = vmatprep.subr.bf16.mxu1 %v7062_v49 }
 0x74d   : > { %2392 = vmatpush1.bf16.msra.mxu1 %v7060_v34 }
 0x750   : > { %2410 = vmatmul.mubr.bf16.vlgmr.msra.gmra.mrb[64].mxu1 %v1890_v35 }
 0x751   : > { %2419 = vmatprep.mubr.bf16.mxu1 %v7636_v2 }
 0x758   : > { %2420 = vmatmul.mubr.bf16.gmra.mrb[68].mxu1 %v1891_v28 }
 0x759   : > { %2429 = vmatprep.mubr.bf16.mxu1 %v7636_v2 }
 0x760   : > { %2430 = vmatmul.mubr.bf16.gmra.mrb[72].mxu1 %v1892_v59 }
 0x761   : > { %2439 = vmatprep.mubr.bf16.mxu1 %v7636_v2 }
 0x768   : > { %2440 = vmatmul.mubr.bf16.gmra.mrb[76].mxu1 %v1893_v51 }
 0x823   : > { %v2411_v24 = vpop.f32.mrb[64].mxu1 }
 0x824   : > { %v2462_v28 = vadd.f32 %v8358_v33, %v2411_v24  ;;  %v2413_v35 = vpop.f32.mrb[65].mxu1 }
 0x825   : > { %v2463_v43 = vadd.f32 %v8361_v21, %v2413_v35  ;;  %v2415_v55 = vpop.f32.mrb[66].mxu1 }
 0x826   : > { %v8365_v45 = vadd.f32 %v7479_v39, %v2462_v28  ;;  %v2464_v51 = vadd.f32 %v8358_v33, %v2415_v55  ;;  %v2417_v59 = vpop.f32.mrb[67].mxu1  ;;  %v7491_v39 = vld [vmem:[#allocation2 + $0x60] sm:$0xff] }
 0x827   : > { %v8368_v60 = vadd.f32 %v7480_v3, %v2463_v43  ;;  %v2465_v48 = vadd.f32 %v8361_v21, %v2417_v59 }
 0x828   : > { %v8371_v19 = vadd.f32 %v7481_v4, %v2464_v51 }
 0x829   : > { %v8373_v16 = vadd.f32 %v7482_v42, %v2465_v48  ;;  %v2496_v38 = vadd.f32 %v8368_v60, %v8365_v45  ;;  %v7492_v48 = vld [vmem:[#allocation2 + $0x68] sm:$0xff] }
 0x82b   : > { %2497 = vadd.xlane.f32.xlu0 %v2496_v38  ;;  %v2421_v13 = vpop.f32.mrb[68].mxu1  ;;  %v2499_v32 = vadd.f32 %v8373_v16, %v8371_v19  ;;  %v7493_v38 = vld [vmem:[#allocation2 + $0x70] sm:$0xff] }
 0x82c   : > { %v2466_v63 = vadd.f32 %v8358_v33, %v2421_v13  ;;  %v2423_v57 = vpop.f32.mrb[69].mxu1 }
 0x82d   : > { %v2467_v12 = vadd.f32 %v8361_v21, %v2423_v57  ;;  %2500 = vadd.xlane.f32.xlu1 %v2499_v32  ;;  %v2425_v36 = vpop.f32.mrb[70].mxu1  ;;  %v7494_v32 = vld [vmem:[#allocation2 + $0x78] sm:$0xff] }
 0x82e   : > { %v8381_v0 = vadd.f32 %v7483_v54, %v2466_v63  ;;  %v2468_v2 = vadd.f32 %v8358_v33, %v2425_v36  ;;  %v2427_v5 = vpop.f32.mrb[71].mxu1  ;;  %v2688_v36 = vld [vmem:[%s7897_s14 + $0x8] sm:$0xff] }
 0x82f   : > { %v8384_v7 = vadd.f32 %v7484_v6, %v2467_v12  ;;  %v2469_v56 = vadd.f32 %v8361_v21, %v2427_v5  ;;  %v2687_v12 = vld [vmem:[%s7897_s14] sm:$0xff]  ;;  %v2692_v5 = vld [vmem:[%s7897_s14 + $0x28] sm:$0xff] }
 0x830   : > { %v8387_v15 = vadd.f32 %v7485_v14, %v2468_v2  ;;  %v2695_v6 = vld [vmem:[%s7897_s14 + $0x40] sm:$0xff]  ;;  %v6316_v14 = vcombine.low %v2688_v36, %v2692_v5 }
 0x831   : > { %v8389_v20 = vadd.f32 %v7486_v17, %v2469_v56  ;;  %v2502_v23 = vadd.f32 %v8384_v7, %v8381_v0  ;;  %v2699_v56 = vld [vmem:[%s7897_s14 + $0x60] sm:$0xff]  ;;  %v6317_v17 = vcombine.high %v2688_v36, %v2692_v5 }
 0x833   : > { %2503 = vadd.xlane.f32.xlu0 %v2502_v23  ;;  %v2431_v25 = vpop.f32.mrb[72].mxu1  ;;  %v2505_v52 = vadd.f32 %v8389_v20, %v8387_v15  ;;  %v6323_v23 = vcombine.high %v2695_v6, %v2699_v56  ;;  %3570 = vmatprep.subr.bf16.mxu1 %v6317_v17  ;;  %v2740_v17 = vld [vmem:[%s7897_s14 + $0x1a8] sm:$0xff] }
 0x834   : > { %v2470_v27 = vadd.f32 %v8358_v33, %v2431_v25  ;;  %v2433_v58 = vpop.f32.mrb[73].mxu1  ;;  %v2696_v25 = vld [vmem:[%s7897_s14 + $0x48] sm:$0xff]  ;;  %3571 = vmatpush1.bf16.msra.mxu1 %v6316_v14 }
 0x835   : > { %v2471_v29 = vadd.f32 %v8361_v21, %v2433_v58  ;;  %2506 = vadd.xlane.f32.xlu1 %v2505_v52  ;;  %v2435_v26 = vpop.f32.mrb[74].mxu1  ;;  %v2700_v52 = vld [vmem:[%s7897_s14 + $0x68] sm:$0xff] }
 0x836   : > { %v8397_v37 = vadd.f32 %v7487_v30, %v2470_v27  ;;  %v2472_v41 = vadd.f32 %v8358_v33, %v2435_v26  ;;  %v2437_v44 = vpop.f32.mrb[75].mxu1  ;;  %v2703_v27 = vld [vmem:[%s7897_s14 + $0x80] sm:$0xff]  ;;  %v6325_v58 = vcombine.high %v2696_v25, %v2700_v52  ;;  %v2704_v26 = vld [vmem:[%s7897_s14 + $0x88] sm:$0xff] }
 0x837   : > { %v8400_v40 = vadd.f32 %v7488_v53, %v2471_v29  ;;  %v2473_v62 = vadd.f32 %v8361_v21, %v2437_v44  ;;  %v2707_v29 = vld [vmem:[%s7897_s14 + $0xa0] sm:$0xff]  ;;  %v2708_v30 = vld [vmem:[%s7897_s14 + $0xa8] sm:$0xff]  ;;  %v6324_v44 = vcombine.low %v2696_v25, %v2700_v52 }
 0x838   : > { %v8403_v18 = vadd.f32 %v7489_v1, %v2472_v41  ;;  %v6322_v41 = vcombine.low %v2695_v6, %v2699_v56  ;;  %v6331_v53 = vcombine.high %v2703_v27, %v2707_v29  ;;  %3572 = vmatprep.subr.bf16.mxu1 %v6325_v58  ;;  %v2711_v1 = vld [vmem:[%s7897_s14 + $0xc0] sm:$0xff]  ;;  %v2736_v14 = vld [vmem:[%s7897_s14 + $0x188] sm:$0xff] }
 0x839   : > { %v8405_v49 = vadd.f32 %v7490_v46, %v2473_v62  ;;  %v2508_v34 = vadd.f32 %v8400_v40, %v8397_v37  ;;  %v6333_v62 = vcombine.high %v2704_v26, %v2708_v30  ;;  %v2715_v46 = vld [vmem:[%s7897_s14 + $0xe0] sm:$0xff]  ;;  %3573 = vmatpush1.bf16.msra.mxu1 %v6324_v44  ;;  %v6364_v44 = vcombine.low %v2736_v14, %v2740_v17 }
 0x83a   : > { %v2735_v6 = vld [vmem:[%s7897_s14 + $0x180] sm:$0xff] }
 0x83b   : > { %2509 = vadd.xlane.f32.xlu0 %v2508_v34  ;;  %v2441_v22 = vpop.f32.mrb[76].mxu1  ;;  %v2511_v24 = vadd.f32 %v8405_v49, %v8403_v18  ;;  %v2712_v34 = vld [vmem:[%s7897_s14 + $0xc8] sm:$0xff]  ;;  %3574 = vmatprep.subr.bf16.mxu1 %v6333_v62  ;;  %v2739_v56 = vld [vmem:[%s7897_s14 + $0x1a0] sm:$0xff] }
 0x83c   : > { %v2474_v28 = vadd.f32 %v8358_v33, %v2441_v22  ;;  %v2443_v35 = vpop.f32.mrb[77].mxu1  ;;  %v2716_v22 = vld [vmem:[%s7897_s14 + $0xe8] sm:$0xff]  ;;  %v6363_v52 = vcombine.high %v2735_v6, %v2739_v56  ;;  %v2743_v58 = vld [vmem:[%s7897_s14 + $0x1c0] sm:$0xff] }
 0x83d   : > { %v2475_v43 = vadd.f32 %v8361_v21, %v2443_v35  ;;  %2512 = vadd.xlane.f32.xlu1 %v2511_v24  ;;  %v2445_v55 = vpop.f32.mrb[78].mxu1  ;;  %v6330_v24 = vcombine.low %v2703_v27, %v2707_v29  ;;  %v6339_v35 = vcombine.high %v2711_v1, %v2715_v46  ;;  %v6365_v27 = vcombine.high %v2736_v14, %v2740_v17  ;;  %v2747_v29 = vld [vmem:[%s7897_s14 + $0x1e0] sm:$0xff] }
 0x83e   : > { %v8413_v51 = vadd.f32 %v7491_v39, %v2474_v28  ;;  %v2476_v59 = vadd.f32 %v8358_v33, %v2445_v55  ;;  %v2447_v3 = vpop.f32.mrb[79].mxu1  ;;  %v6332_v28 = vcombine.low %v2704_v26, %v2708_v30  ;;  %v2719_v55 = vld [vmem:[%s7897_s14 + $0x100] sm:$0xff]  ;;  %v2744_v26 = vld [vmem:[%s7897_s14 + $0x1c8] sm:$0xff] }
 0x83f   : > { %v8416_v4 = vadd.f32 %v7492_v48, %v2475_v43  ;;  %v2477_v42 = vadd.f32 %v8361_v21, %v2447_v3  ;;  %v2691_v21 = vld [vmem:[%s7897_s14 + $0x20] sm:$0xff]  ;;  %v6341_v43 = vcombine.high %v2712_v34, %v2716_v22  ;;  %v2724_v3 = vld [vmem:[%s7897_s14 + $0x128] sm:$0xff]  ;;  %v6338_v48 = vcombine.low %v2711_v1, %v2715_v46 }
 0x840   : > { %v8419_v13 = vadd.f32 %v7493_v38, %v2476_v59  ;;  %v6314_v54 = vcombine.low %v2687_v12, %v2691_v21  ;;  %v6315_v2 = vcombine.high %v2687_v12, %v2691_v21  ;;  %v2723_v39 = vld [vmem:[%s7897_s14 + $0x120] sm:$0xff]  ;;  %v2720_v59 = vld [vmem:[%s7897_s14 + $0x108] sm:$0xff]  ;;  %3575 = vmatpush1.bf16.msra.mxu1 %v6332_v28 }
 0x841   : > { %v8421_v63 = vadd.f32 %v7494_v32, %v2477_v42  ;;  %v2514_v57 = vadd.f32 %v8416_v4, %v8413_v51  ;;  %v6340_v42 = vcombine.low %v2712_v34, %v2716_v22  ;;  %v6347_v38 = vcombine.high %v2719_v55, %v2723_v39  ;;  %3576 = vmatprep.subr.bf16.mxu1 %v6341_v43  ;;  %v2728_v12 = vld [vmem:[%s7897_s14 + $0x148] sm:$0xff]  ;;  %v2751_v1 = vld [vmem:[%s7897_s14 + $0x200] sm:$0xff] }
 0x842   : > { %3497 = vmatprep.subr.bf16.mxu0 %v6315_v2  ;;  %v6349_v32 = vcombine.high %v2720_v59, %v2724_v3  ;;  %v2732_v21 = vld [vmem:[%s7897_s14 + $0x168] sm:$0xff]  ;;  %v6346_v36 = vcombine.low %v2719_v55, %v2723_v39  ;;  %v2755_v46 = vld [vmem:[%s7897_s14 + $0x220] sm:$0xff] }
 0x843   : > { %2515 = vadd.xlane.f32.xlu0 %v2514_v57  ;;  %v2517_v33 = vadd.f32 %v8421_v63, %v8419_v13  ;;  %3498 = vmatpush1.bf16.msra.mxu0 %v6314_v54  ;;  %v2727_v57 = vld [vmem:[%s7897_s14 + $0x140] sm:$0xff]  ;;  %v6348_v54 = vcombine.low %v2720_v59, %v2724_v3  ;;  %v6357_v5 = vcombine.high %v2728_v12, %v2732_v21  ;;  %v2748_v30 = vld [vmem:[%s7897_s14 + $0x1e8] sm:$0xff] }
 0x844   : > { %3499 = vmatprep.subr.bf16.mxu0 %v6323_v23  ;;  %3577 = vmatpush1.bf16.msra.mxu1 %v6340_v42  ;;  %v6356_v25 = vcombine.low %v2728_v12, %v2732_v21  ;;  %v6373_v62 = vcombine.high %v2744_v26, %v2748_v30  ;;  %v2752_v34 = vld [vmem:[%s7897_s14 + $0x208] sm:$0xff]  ;;  %v6372_v28 = vcombine.low %v2744_v26, %v2748_v30  ;;  %v2759_v55 = vld [vmem:[%s7897_s14 + $0x240] sm:$0xff] }
 0x845   : > { %2518 = vadd.xlane.f32.xlu1 %v2517_v33  ;;  %v2731_v33 = vld [vmem:[%s7897_s14 + $0x160] sm:$0xff]  ;;  %3578 = vmatprep.subr.bf16.mxu1 %v6349_v32  ;;  %v2756_v22 = vld [vmem:[%s7897_s14 + $0x228] sm:$0xff] }
 0x846   : > { %v6355_v2 = vcombine.high %v2727_v57, %v2731_v33  ;;  %v6354_v23 = vcombine.low %v2727_v57, %v2731_v33  ;;  %v6381_v43 = vcombine.high %v2752_v34, %v2756_v22  ;;  %v2763_v39 = vld [vmem:[%s7897_s14 + $0x260] sm:$0xff]  ;;  %v2760_v59 = vld [vmem:[%s7897_s14 + $0x248] sm:$0xff]  ;;  %v6380_v42 = vcombine.low %v2752_v34, %v2756_v22 }
 0x847   : > { %3500 = vmatpush1.bf16.msra.mxu0 %v6322_v41  ;;  %v6362_v41 = vcombine.low %v2735_v6, %v2739_v56  ;;  %v2764_v3 = vld [vmem:[%s7897_s14 + $0x268] sm:$0xff]  ;;  %v6386_v57 = vcombine.low %v2759_v55, %v2763_v39 }
 0x848   : > { %3501 = vmatprep.subr.bf16.mxu0 %v6331_v53  ;;  %3579 = vmatpush1.bf16.msra.mxu1 %v6348_v54  ;;  %v6371_v53 = vcombine.high %v2743_v58, %v2747_v29  ;;  %v6389_v32 = vcombine.high %v2760_v59, %v2764_v3  ;;  %v6388_v33 = vcombine.low %v2760_v59, %v2764_v3  ;;  %v2772_v59 = vld [vmem:[%s7897_s14 + $0x2a8] sm:$0xff] }
 0x849   : > { %3580 = vmatprep.subr.bf16.mxu1 %v6357_v5 }
 0x84b   : > { %3502 = vmatpush1.bf16.msra.mxu0 %v6330_v24  ;;  %v6370_v24 = vcombine.low %v2743_v58, %v2747_v29 }
 0x84c   : > { %3503 = vmatprep.subr.bf16.mxu0 %v6339_v35  ;;  %3581 = vmatpush1.bf16.msra.mxu1 %v6356_v25  ;;  %v6379_v35 = vcombine.high %v2751_v1, %v2755_v46 }
 0x84d   : > { %3582 = vmatprep.subr.bf16.mxu1 %v6365_v27 }
 0x84f   : > { %3504 = vmatpush1.bf16.msra.mxu0 %v6338_v48  ;;  %v6378_v48 = vcombine.low %v2751_v1, %v2755_v46 }
 0x850   : > { %3505 = vmatprep.subr.bf16.mxu0 %v6347_v38  ;;  %3583 = vmatpush1.bf16.msra.mxu1 %v6364_v44  ;;  %v6387_v38 = vcombine.high %v2759_v55, %v2763_v39  ;;  %v2767_v55 = vld [vmem:[%s7897_s14 + $0x280] sm:$0xff]  ;;  %v2768_v39 = vld [vmem:[%s7897_s14 + $0x288] sm:$0xff] }
 0x851   : > { %3584 = vmatprep.subr.bf16.mxu1 %v6373_v62 }
 0x853   : > { %3506 = vmatpush1.bf16.msra.mxu0 %v6346_v36 }
 0x854   : > { %3507 = vmatprep.subr.bf16.mxu0 %v6355_v2  ;;  %3585 = vmatpush1.bf16.msra.mxu1 %v6372_v28 }
 0x855   : > { %3586 = vmatprep.subr.bf16.mxu1 %v6381_v43 }
 0x857   : > { %3508 = vmatpush1.bf16.msra.mxu0 %v6354_v23 }
 0x858   : > { %3509 = vmatprep.subr.bf16.mxu0 %v6363_v52  ;;  %3587 = vmatpush1.bf16.msra.mxu1 %v6380_v42 }
 0x859   : > { %3588 = vmatprep.subr.bf16.mxu1 %v6389_v32  ;;  %v6397_v32 = vcombine.high %v2768_v39, %v2772_v59 }
 0x85b   : > { %3510 = vmatpush1.bf16.msra.mxu0 %v6362_v41 }
 0x85c   : > { %3511 = vmatprep.subr.bf16.mxu0 %v6371_v53  ;;  %3589 = vmatpush1.bf16.msra.mxu1 %v6388_v33 }
 0x85d   : > { %3590 = vmatprep.subr.bf16.mxu1 %v6397_v32 }
 0x85f   : > { %3512 = vmatpush1.bf16.msra.mxu0 %v6370_v24 }
 0x860   : > { %3513 = vmatprep.subr.bf16.mxu0 %v6379_v35 }
 0x863   : > { %3514 = vmatpush1.bf16.msra.mxu0 %v6378_v48 }
 0x864   : > { %3515 = vmatprep.subr.bf16.mxu0 %v6387_v38  ;;  %v6396_v38 = vcombine.low %v2768_v39, %v2772_v59  ;;  %v2796_v39 = vld [vmem:[%s7897_s14 + $0x368] sm:$0xff] }
 0x866   : > { %3591 = vmatpush1.bf16.msra.mxu1 %v6396_v38  ;;  %v2804_v38 = vld [vmem:[%s7897_s14 + $0x3a8] sm:$0xff] }
 0x867   : > { %3516 = vmatpush1.bf16.msra.mxu0 %v6386_v57 }
 0x8b8   : > { %v2498_v12 = vpop.xlane.xlu0 %2497 }
 0x8b9   : > { %v2521_v21 = vmul.f32 0.00390625, %v2498_v12  ;;  %v2775_v12 = vld [vmem:[%s7897_s14 + $0x2c0] sm:$0xff] }
 0x8ba   : > { %v2501_v36 = vpop.xlane.xlu1 %2500 }
 0x8bb   : > { %v8468_v54 = vsub.f32 %v8365_v45, %v2521_v21  ;;  %v8471_v2 = vsub.f32 %v8368_v60, %v2521_v21  ;;  %v2522_v5 = vmul.f32 0.00390625, %v2501_v36  ;;  %v2779_v21 = vld [vmem:[%s7897_s14 + $0x2e0] sm:$0xff]  ;;  %v2776_v36 = vld [vmem:[%s7897_s14 + $0x2c8] sm:$0xff] }
 0x8bd   : > { %v8474_v6 = vsub.f32 %v8371_v19, %v2522_v5  ;;  %v8477_v56 = vsub.f32 %v8373_v16, %v2522_v5  ;;  %v2545_v14 = vmul.f32 %v8468_v54, %v8468_v54  ;;  %v2546_v17 = vmul.f32 %v8471_v2, %v8471_v2 }
 0x8bf   : > { %v2561_v23 = vadd.f32 %v2546_v17, %v2545_v14  ;;  %v2547_v45 = vmul.f32 %v8474_v6, %v8474_v6  ;;  %v2548_v60 = vmul.f32 %v8477_v56, %v8477_v56  ;;  %v6403_v14 = vcombine.high %v2775_v12, %v2779_v21  ;;  %v2780_v17 = vld [vmem:[%s7897_s14 + $0x2e8] sm:$0xff] }
 0x8c0   : > { %v2504_v25 = vpop.xlane.xlu0 %2503 }
 0x8c1   : > { %v2523_v52 = vmul.f32 0.00390625, %v2504_v25  ;;  %2562 = vadd.xlane.f32.xlu0 %v2561_v23  ;;  %v2564_v19 = vadd.f32 %v2548_v60, %v2547_v45  ;;  %v6402_v25 = vcombine.low %v2775_v12, %v2779_v21  ;;  %v2807_v12 = vld [vmem:[%s7897_s14 + $0x3c0] sm:$0xff] }
 0x8c2   : > { %v2507_v27 = vpop.xlane.xlu1 %2506  ;;  %v2811_v21 = vld [vmem:[%s7897_s14 + $0x3e0] sm:$0xff] }
 0x8c3   : > { %v8488_v16 = vsub.f32 %v8381_v0, %v2523_v52  ;;  %v8491_v58 = vsub.f32 %v8384_v7, %v2523_v52  ;;  %v2524_v29 = vmul.f32 0.00390625, %v2507_v27  ;;  %2565 = vadd.xlane.f32.xlu1 %v2564_v19  ;;  %v6404_v52 = vcombine.low %v2776_v36, %v2780_v17 }
 0x8c4   : > { %v6405_v19 = vcombine.high %v2776_v36, %v2780_v17  ;;  %v2808_v36 = vld [vmem:[%s7897_s14 + $0x3c8] sm:$0xff]  ;;  %v6434_v17 = vcombine.low %v2807_v12, %v2811_v21 }
 0x8c5   : > { %v8494_v26 = vsub.f32 %v8387_v15, %v2524_v29  ;;  %v8497_v30 = vsub.f32 %v8389_v20, %v2524_v29  ;;  %v2549_v41 = vmul.f32 %v8488_v16, %v8488_v16  ;;  %v2550_v44 = vmul.f32 %v8491_v58, %v8491_v58 }
 0x8c6   : > { %3592 = vmatprep.subr.bf16.mxu1 %v6405_v19  ;;  %v8575_v19 = vld [vmem:[%s7897_s14 + $0x30] sm:$0xff] }
 0x8c7   : > { %v2567_v53 = vadd.f32 %v2550_v44, %v2549_v41  ;;  %v2551_v0 = vmul.f32 %v8494_v26, %v8494_v26  ;;  %v2552_v7 = vmul.f32 %v8497_v30, %v8497_v30  ;;  %v2783_v41 = vld [vmem:[%s7897_s14 + $0x300] sm:$0xff]  ;;  %3593 = vmatpush1.bf16.msra.mxu1 %v6404_v52  ;;  %v8572_v52 = vld [vmem:[%s7897_s14 + $0x10] sm:$0xff] }
 0x8c8   : > { %v2510_v15 = vpop.xlane.xlu0 %2509  ;;  %v2787_v44 = vld [vmem:[%s7897_s14 + $0x320] sm:$0xff] }
 0x8c9   : > { %v2525_v62 = vmul.f32 0.00390625, %v2510_v15  ;;  %2568 = vadd.xlane.f32.xlu0 %v2567_v53  ;;  %v2570_v20 = vadd.f32 %v2552_v7, %v2551_v0  ;;  %v2784_v53 = vld [vmem:[%s7897_s14 + $0x308] sm:$0xff]  ;;  %v6411_v0 = vcombine.high %v2783_v41, %v2787_v44 }
 0x8ca   : > { %v2513_v1 = vpop.xlane.xlu1 %2512 }
 0x8cb   : > { %v8508_v46 = vsub.f32 %v8397_v37, %v2525_v62  ;;  %v8511_v34 = vsub.f32 %v8400_v40, %v2525_v62  ;;  %v2526_v22 = vmul.f32 0.00390625, %v2513_v1  ;;  %2571 = vadd.xlane.f32.xlu1 %v2570_v20  ;;  %v2771_v37 = vld [vmem:[%s7897_s14 + $0x2a0] sm:$0xff]  ;;  %v6410_v62 = vcombine.low %v2783_v41, %v2787_v44  ;;  %v8583_v41 = vld [vmem:[%s7897_s14 + $0x38] sm:$0xff] }
 0x8cc   : > { %v6395_v40 = vcombine.high %v2767_v55, %v2771_v37  ;;  %v6394_v48 = vcombine.low %v2767_v55, %v2771_v37  ;;  %v2792_v55 = vld [vmem:[%s7897_s14 + $0x348] sm:$0xff]  ;;  %v6318_v44 = vcombine.low %v8572_v52, %v8575_v19 }
 0x8cd   : > { %v8514_v24 = vsub.f32 %v8403_v18, %v2526_v22  ;;  %v8517_v28 = vsub.f32 %v8405_v49, %v2526_v22  ;;  %v2553_v35 = vmul.f32 %v8508_v46, %v8508_v46  ;;  %v2554_v43 = vmul.f32 %v8511_v34, %v8511_v34 }
 0x8ce   : > { %3517 = vmatprep.subr.bf16.mxu0 %v6395_v40  ;;  %v6420_v59 = vcombine.low %v2792_v55, %v2796_v39 }
 0x8cf   : > { %v2573_v3 = vadd.f32 %v2554_v43, %v2553_v35  ;;  %v2555_v18 = vmul.f32 %v8514_v24, %v8514_v24  ;;  %v2556_v49 = vmul.f32 %v8517_v28, %v8517_v28  ;;  %3518 = vmatpush1.bf16.msra.mxu0 %v6394_v48  ;;  %v2791_v35 = vld [vmem:[%s7897_s14 + $0x340] sm:$0xff]  ;;  %v2800_v48 = vld [vmem:[%s7897_s14 + $0x388] sm:$0xff] }
 0x8d0   : > { %v2516_v42 = vpop.xlane.xlu0 %2515  ;;  %3519 = vmatprep.subr.bf16.mxu0 %v6403_v14  ;;  %v2795_v43 = vld [vmem:[%s7897_s14 + $0x360] sm:$0xff]  ;;  %v2812_v14 = vld [vmem:[%s7897_s14 + $0x3e8] sm:$0xff] }
 0x8d1   : > { %v2527_v57 = vmul.f32 0.00390625, %v2516_v42  ;;  %2574 = vadd.xlane.f32.xlu0 %v2573_v3  ;;  %v2576_v33 = vadd.f32 %v2556_v49, %v2555_v18  ;;  %v6419_v37 = vcombine.high %v2791_v35, %v2795_v43  ;;  %v6418_v40 = vcombine.low %v2791_v35, %v2795_v43  ;;  %v2799_v18 = vld [vmem:[%s7897_s14 + $0x380] sm:$0xff] }
 0x8d2   : > { %v2519_v5 = vpop.xlane.xlu1 %2518  ;;  %v6421_v3 = vcombine.high %v2792_v55, %v2796_v39  ;;  %v2803_v49 = vld [vmem:[%s7897_s14 + $0x3a0] sm:$0xff] }
 0x8d3   : > { %v8536_v23 = vsub.f32 %v8413_v51, %v2527_v57  ;;  %v8539_v45 = vsub.f32 %v8416_v4, %v2527_v57  ;;  %v2528_v60 = vmul.f32 0.00390625, %v2519_v5  ;;  %2577 = vadd.xlane.f32.xlu1 %v2576_v33  ;;  %3520 = vmatpush1.bf16.msra.mxu0 %v6402_v25  ;;  %v6427_v42 = vcombine.high %v2799_v18, %v2803_v49  ;;  %v2494_v43 = vld [vmem:[%s10327_s27] sm:$0x3] }
 0x8d4   : > { %3521 = vmatprep.subr.bf16.mxu0 %v6411_v0  ;;  %v6426_v32 = vcombine.low %v2799_v18, %v2803_v49  ;;  %v6428_v57 = vcombine.low %v2800_v48, %v2804_v38  ;;  %v6429_v33 = vcombine.high %v2800_v48, %v2804_v38  ;;  %v6435_v5 = vcombine.high %v2807_v12, %v2811_v21 }
 0x8d5   : > { %v8542_v27 = vsub.f32 %v8419_v13, %v2528_v60  ;;  %v8545_v29 = vsub.f32 %v8421_v63, %v2528_v60  ;;  %v2557_v51 = vmul.f32 %v8536_v23, %v8536_v23  ;;  %v2558_v4 = vmul.f32 %v8539_v45, %v8539_v45  ;;  %v2788_v13 = vld [vmem:[%s7897_s14 + $0x328] sm:$0xff] }
 0x8d6   : > { %v6412_v20 = vcombine.low %v2784_v53, %v2788_v13  ;;  %v6413_v1 = vcombine.high %v2784_v53, %v2788_v13  ;;  %v6436_v60 = vcombine.low %v2808_v36, %v2812_v14  ;;  %v6437_v25 = vcombine.high %v2808_v36, %v2812_v14 }
 0x8d7   : > { %v2579_v7 = vadd.f32 %v2558_v4, %v2557_v51  ;;  %v2559_v63 = vmul.f32 %v8542_v27, %v8542_v27  ;;  %v2560_v15 = vmul.f32 %v8545_v29, %v8545_v29  ;;  %3522 = vmatpush1.bf16.msra.mxu0 %v6410_v62  ;;  %v8578_v51 = vld [vmem:[%s7897_s14 + $0x18] sm:$0xff]  ;;  %v6319_v4 = vcombine.high %v8572_v52, %v8575_v19  ;;  %v2713_v19 = vld [vmem:[%s7897_s14 + $0xd0] sm:$0xff] }
 0x8d8   : > { %3594 = vmatprep.subr.bf16.mxu1 %v6413_v1  ;;  %3523 = vmatprep.subr.bf16.mxu0 %v6419_v37  ;;  %v6320_v53 = vcombine.low %v8578_v51, %v8583_v41  ;;  %v6321_v0 = vcombine.high %v8578_v51, %v8583_v41 }
 0x8d9   : > { %2580 = vadd.xlane.f32.xlu0 %v2579_v7  ;;  %v2582_v22 = vadd.f32 %v2560_v15, %v2559_v63  ;;  %3595 = vmatpush1.bf16.msra.mxu1 %v6412_v20 }
 0x8da   : > { %3596 = vmatprep.subr.bf16.mxu1 %v6421_v3  ;;  %v8605_v3 = vrot.slane %v2494_v43, %v8106_v9 }
 0x8db   : > { %2583 = vadd.xlane.f32.xlu1 %v2582_v22  ;;  %3524 = vmatpush1.bf16.msra.mxu0 %v6418_v40  ;;  %v8597_v40 = vrot.slane %v2494_v43, %v8100_v11 }
 0x8dc   : > { %3525 = vmatprep.subr.bf16.mxu0 %v6427_v42 }
 0x8dd   : > { %3597 = vmatpush1.bf16.msra.mxu1 %v6420_v59  ;;  %v2495_v59 = vld [vmem:[%s10328_s30] sm:$0x3] }
 0x8de   : > { %3598 = vmatprep.subr.bf16.mxu1 %v6429_v33  ;;  %v8613_v33 = vrot.slane %v2495_v59, %v8106_v9 }
 0x8df   : > { %3526 = vmatpush1.bf16.msra.mxu0 %v6426_v32 }
 0x8e0   : > { %3527 = vmatprep.subr.bf16.mxu0 %v6435_v5 }
 0x8e1   : > { %3599 = vmatpush1.bf16.msra.mxu1 %v6428_v57  ;;  %v8610_v57 = vrot.slane %v2495_v59, %v8100_v11 }
 0x8e2   : > { %3600 = vmatprep.subr.bf16.mxu1 %v6437_v25 }
 0x8e3   : > { %3528 = vmatpush1.bf16.msra.mxu0 %v6434_v17 }
 0x8e4   : > { %3643 = vmatprep.subr.bf16.mxu0 %v6319_v4  ;;  %v2697_v4 = vld [vmem:[%s7897_s14 + $0x50] sm:$0xff] }
 0x8e5   : > { %3601 = vmatpush1.bf16.msra.mxu1 %v6436_v60 }
 0x8e6   : > { %3716 = vmatprep.subr.bf16.mxu1 %v6321_v0 }
 0x94e   : > { %v2563_v13 = vpop.xlane.xlu0 %2562 }
 0x94f   : > { %v2585_v7 = vmul.f32 0.00390625, %v2563_v13 }
 0x950   : > { %v2566_v63 = vpop.xlane.xlu1 %2565 }
 0x951   : > { %v2593_v15 = vadd.f32 1e-12, %v2585_v7  ;;  %v2586_v62 = vmul.f32 0.00390625, %v2566_v63  ;;  %v2701_v7 = vld [vmem:[%s7897_s14 + $0x70] sm:$0xff]  ;;  %v2698_v63 = vld [vmem:[%s7897_s14 + $0x58] sm:$0xff] }
 0x953   : > { %7319 = vrsqrt.f32 %v2593_v15  ;;  %v2594_v20 = vadd.f32 1e-12, %v2586_v62  ;;  %v2702_v15 = vld [vmem:[%s7897_s14 + $0x78] sm:$0xff] }
 0x954   : > { %v6329_v59 = vcombine.high %v2698_v63, %v2702_v15 }
 0x955   : > { %7321 = vrsqrt.f32 %v2594_v20 }
 0x956   : > { %v2569_v1 = vpop.xlane.xlu0 %2568 }
 0x957   : > { %v2587_v22 = vmul.f32 0.00390625, %v2569_v1 }
 0x958   : > { %v2572_v35 = vpop.xlane.xlu1 %2571 }
 0x959   : > { %v2595_v55 = vadd.f32 1e-12, %v2587_v22  ;;  %v2588_v37 = vmul.f32 0.00390625, %v2572_v35 }
 0x95b   : > { %7323 = vrsqrt.f32 %v2595_v55  ;;  %v2596_v39 = vadd.f32 1e-12, %v2588_v37 }
 0x95d   : > { %v7320_v18 = vpop.eup %7319  ;;  %7325 = vrsqrt.f32 %v2596_v39  ;;  %v6327_v39 = vcombine.high %v2697_v4, %v2701_v7 }
 0x95e   : > { %v2609_v49 = vmul.f32 %v7320_v18, %v8468_v54  ;;  %v2610_v48 = vmul.f32 %v7320_v18, %v8471_v2  ;;  %v2575_v42 = vpop.xlane.xlu0 %2574  ;;  %v8648_v18 = vld [vmem:[%s7897_s14 + $0x90] sm:$0xff] }
 0x95f   : > { %v7322_v38 = vpop.eup %7321  ;;  %v2589_v32 = vmul.f32 0.00390625, %v2575_v42  ;;  %v2709_v42 = vld [vmem:[%s7897_s14 + $0xb0] sm:$0xff] }
 0x960   : > { %v2636_v12 = vmul.f32 %v8597_v40, %v2609_v49  ;;  %v2611_v21 = vmul.f32 %v7322_v38, %v8474_v6  ;;  %v2612_v54 = vmul.f32 %v7322_v38, %v8477_v56  ;;  %v2578_v2 = vpop.xlane.xlu1 %2577  ;;  %v2637_v36 = vmul.f32 %v8605_v3, %v2610_v48  ;;  %v2706_v38 = vld [vmem:[%s7897_s14 + $0x98] sm:$0xff] }
 0x961   : > { %v2597_v5 = vadd.f32 1e-12, %v2589_v32  ;;  %v2590_v14 = vmul.f32 0.00390625, %v2578_v2  ;;  %v2710_v32 = vld [vmem:[%s7897_s14 + $0xb8] sm:$0xff] }
 0x962   : > { %v2638_v17 = vmul.f32 %v8597_v40, %v2611_v21  ;;  %v2639_v60 = vmul.f32 %v8605_v3, %v2612_v54  ;;  %v8623_v0 = vadd.f32 %v8613_v33, %v2637_v36  ;;  %v8629_v56 = vadd.f32 %v8610_v57, %v2636_v12 }
 0x963   : > { %7327 = vrsqrt.f32 %v2597_v5  ;;  %v2598_v25 = vadd.f32 1e-12, %v2590_v14  ;;  %v6328_v54 = vcombine.low %v2698_v63, %v2702_v15  ;;  %v6335_v14 = vcombine.high %v8648_v18, %v2709_v42 }
 0x964   : > { %10329 = vst [vmem:[#allocation18_spill] sm:$0xff] %v8623_v0  ;;  %v8626_v6 = vadd.f32 %v8613_v33, %v2639_v60  ;;  %10331 = vst [vmem:[#allocation20_spill] sm:$0xff] %v8629_v56  ;;  %v8632_v13 = vadd.f32 %v8610_v57, %v2638_v17  ;;  %v6337_v52 = vcombine.high %v2706_v38, %v2710_v32  ;;  %v2714_v17 = vld [vmem:[%s7897_s14 + $0xd8] sm:$0xff] }
 0x965   : > { %v7324_v62 = vpop.eup %7323  ;;  %7329 = vrsqrt.f32 %v2598_v25  ;;  %v2718_v60 = vld [vmem:[%s7897_s14 + $0xf8] sm:$0xff] }
 0x966   : > { %10330 = vst [vmem:[#allocation19_spill] sm:$0xff] %v8626_v6  ;;  %10332 = vst [vmem:[#allocation21_spill] sm:$0xff] %v8632_v13  ;;  %v2613_v20 = vmul.f32 %v7324_v62, %v8488_v16  ;;  %v2614_v1 = vmul.f32 %v7324_v62, %v8491_v58  ;;  %v2581_v22 = vpop.xlane.xlu0 %2580  ;;  %v8641_v35 = vpack.c.bf16 %v8626_v6, %v8623_v0 }
 0x967   : > { %v8645_v43 = vpack.c.bf16 %v8632_v13, %v8629_v56  ;;  %v7326_v55 = vpop.eup %7325  ;;  %v2591_v37 = vmul.f32 0.00390625, %v2581_v22 }
 0x968   : > { %v2615_v16 = vmul.f32 %v7326_v55, %v8494_v26  ;;  %v2616_v58 = vmul.f32 %v7326_v55, %v8497_v30  ;;  %3529 = vmatprep.mubr.bf16.mxu0 %v8641_v35  ;;  %3602 = vmatprep.mubr.bf16.mxu1 %v8641_v35  ;;  %v2584_v49 = vpop.xlane.xlu1 %2583  ;;  %v2641_v48 = vmul.f32 %v8605_v3, %v2614_v1 }
 0x969   : > { %v2599_v12 = vadd.f32 1e-12, %v2591_v37  ;;  %v2592_v21 = vmul.f32 0.00390625, %v2584_v49  ;;  %3530 = vmatmul.mubr.bf16.vlgmr.msra.gmra.mrb[16].mxu0 %v8645_v43  ;;  %3603 = vmatmul.mubr.bf16.vlgmr.msra.gmra.mrb[80].mxu1 %v8645_v43  ;;  %v6326_v26 = vcombine.low %v2697_v4, %v2701_v7  ;;  %v2640_v30 = vmul.f32 %v8597_v40, %v2613_v20  ;;  %v2721_v37 = vld [vmem:[%s7897_s14 + $0x110] sm:$0xff] }
 0x96a   : > { %3644 = vmatpush1.bf16.msra.mxu0 %v6318_v44  ;;  %3717 = vmatpush1.bf16.msra.mxu1 %v6320_v53  ;;  %v2643_v2 = vmul.f32 %v8605_v3, %v2616_v58  ;;  %v2642_v36 = vmul.f32 %v8597_v40, %v2615_v16  ;;  %v8672_v44 = vadd.f32 %v8613_v33, %v2641_v48  ;;  %v2717_v53 = vld [vmem:[%s7897_s14 + $0xf0] sm:$0xff]  ;;  %v2722_v16 = vld [vmem:[%s7897_s14 + $0x118] sm:$0xff] }
 0x96b   : > { %7331 = vrsqrt.f32 %v2599_v12  ;;  %v2600_v5 = vadd.f32 1e-12, %v2592_v21  ;;  %3645 = vmatprep.subr.bf16.mxu0 %v6327_v39  ;;  %3718 = vmatprep.subr.bf16.mxu1 %v6329_v59  ;;  %v6334_v4 = vcombine.low %v8648_v18, %v2709_v42  ;;  %v6336_v7 = vcombine.low %v2706_v38, %v2710_v32  ;;  %v2725_v18 = vld [vmem:[%s7897_s14 + $0x130] sm:$0xff]  ;;  %v2726_v58 = vld [vmem:[%s7897_s14 + $0x138] sm:$0xff] }
 0x96c   : > { %10333 = vst [vmem:[#allocation22_spill] sm:$0xff] %v8672_v44  ;;  %v8675_v51 = vadd.f32 %v8613_v33, %v2643_v2  ;;  %v8678_v41 = vadd.f32 %v8610_v57, %v2642_v36  ;;  %v8685_v63 = vadd.f32 %v8610_v57, %v2640_v30  ;;  %v6343_v55 = vcombine.high %v2713_v19, %v2717_v53  ;;  %v2729_v12 = vld [vmem:[%s7897_s14 + $0x150] sm:$0xff]  ;;  %v2730_v2 = vld [vmem:[%s7897_s14 + $0x158] sm:$0xff] }
 0x96d   : > { %v7328_v25 = vpop.eup %7327  ;;  %7333 = vrsqrt.f32 %v2600_v5  ;;  %v6342_v49 = vcombine.low %v2713_v19, %v2717_v53  ;;  %v6351_v38 = vcombine.high %v2721_v37, %v2725_v18  ;;  %v6353_v32 = vcombine.high %v2722_v16, %v2726_v58  ;;  %v2734_v36 = vld [vmem:[%s7897_s14 + $0x178] sm:$0xff] }
 0x96e   : > { %10334 = vst [vmem:[#allocation23_spill] sm:$0xff] %v8675_v51  ;;  %10335 = vst [vmem:[#allocation24_spill] sm:$0xff] %v8678_v41  ;;  %v2617_v15 = vmul.f32 %v7328_v25, %v8508_v46  ;;  %v2618_v62 = vmul.f32 %v7328_v25, %v8511_v34  ;;  %3646 = vmatpush1.bf16.msra.mxu0 %v6326_v26  ;;  %3719 = vmatpush1.bf16.msra.mxu1 %v6328_v54  ;;  %v2733_v54 = vld [vmem:[%s7897_s14 + $0x170] sm:$0xff] }
 0x96f   : > { %10336 = vst [vmem:[#allocation25_spill] sm:$0xff] %v8685_v63  ;;  %v8691_v20 = vpack.c.bf16 %v8675_v51, %v8672_v44  ;;  %v7330_v1 = vpop.eup %7329  ;;  %3647 = vmatprep.subr.bf16.mxu0 %v6335_v14  ;;  %3720 = vmatprep.subr.bf16.mxu1 %v6337_v52  ;;  %v8695_v22 = vpack.c.bf16 %v8678_v41, %v8685_v63 }
 0x970   : > { %v6345_v46 = vcombine.high %v2714_v17, %v2718_v60  ;;  %v2619_v34 = vmul.f32 %v7330_v1, %v8514_v24  ;;  %v2620_v39 = vmul.f32 %v7330_v1, %v8517_v28  ;;  %v2645_v59 = vmul.f32 %v8605_v3, %v2618_v62 }
 0x971   : > { %3539 = vmatprep.mubr.bf16.mxu0 %v8691_v20  ;;  %3612 = vmatprep.mubr.bf16.mxu1 %v8691_v20  ;;  %v2644_v24 = vmul.f32 %v8597_v40, %v2617_v15  ;;  %v6344_v28 = vcombine.low %v2714_v17, %v2718_v60  ;;  %v6350_v14 = vcombine.low %v2721_v37, %v2725_v18  ;;  %v2737_v15 = vld [vmem:[%s7897_s14 + $0x190] sm:$0xff]  ;;  %v2742_v37 = vld [vmem:[%s7897_s14 + $0x1b8] sm:$0xff] }
 0x972   : > { %3540 = vmatmul.mubr.bf16.gmra.mrb[20].mxu0 %v8695_v22  ;;  %3613 = vmatmul.mubr.bf16.gmra.mrb[84].mxu1 %v8695_v22  ;;  %v2647_v48 = vmul.f32 %v8605_v3, %v2620_v39  ;;  %v2646_v42 = vmul.f32 %v8597_v40, %v2619_v34  ;;  %v8713_v21 = vadd.f32 %v8613_v33, %v2645_v59 }
 0x973   : > { %3648 = vmatpush1.bf16.msra.mxu0 %v6334_v4  ;;  %3721 = vmatpush1.bf16.msra.mxu1 %v6336_v7  ;;  %v6352_v52 = vcombine.low %v2722_v16, %v2726_v58  ;;  %v8725_v19 = vadd.f32 %v8610_v57, %v2644_v24  ;;  %v6359_v7 = vcombine.high %v2729_v12, %v2733_v54 }
 0x974   : > { %3649 = vmatprep.subr.bf16.mxu0 %v6343_v55  ;;  %3722 = vmatprep.subr.bf16.mxu1 %v6345_v46  ;;  %10337 = vst [vmem:[#allocation26_spill] sm:$0xff] %v8713_v21  ;;  %v8716_v26 = vadd.f32 %v8613_v33, %v2647_v48  ;;  %v8719_v30 = vadd.f32 %v8610_v57, %v2646_v42  ;;  %v2741_v55 = vld [vmem:[%s7897_s14 + $0x1b0] sm:$0xff]  ;;  %v2738_v46 = vld [vmem:[%s7897_s14 + $0x198] sm:$0xff] }
 0x975   : > { %v7332_v5 = vpop.eup %7331  ;;  %10340 = vst [vmem:[#allocation29_spill] sm:$0xff] %v8725_v19  ;;  %v6358_v34 = vcombine.low %v2729_v12, %v2733_v54  ;;  %v6367_v18 = vcombine.high %v2737_v15, %v2741_v55  ;;  %v6369_v16 = vcombine.high %v2738_v46, %v2742_v37  ;;  %v6366_v48 = vcombine.low %v2737_v15, %v2741_v55  ;;  %v2746_v42 = vld [vmem:[%s7897_s14 + $0x1d8] sm:$0xff] }
 0x976   : > { %10338 = vst [vmem:[#allocation27_spill] sm:$0xff] %v8716_v26  ;;  %10339 = vst [vmem:[#allocation28_spill] sm:$0xff] %v8719_v30  ;;  %v2621_v53 = vmul.f32 %v7332_v5, %v8536_v23  ;;  %v2622_v17 = vmul.f32 %v7332_v5, %v8539_v45  ;;  %v8731_v60 = vpack.c.bf16 %v8716_v26, %v8713_v21  ;;  %v2754_v5 = vld [vmem:[%s7897_s14 + $0x218] sm:$0xff] }
 0x977   : > { %3650 = vmatpush1.bf16.msra.mxu0 %v6342_v49  ;;  %3723 = vmatpush1.bf16.msra.mxu1 %v6344_v28  ;;  %v7334_v25 = vpop.eup %7333  ;;  %v8735_v4 = vpack.c.bf16 %v8719_v30, %v8725_v19  ;;  %v6361_v23 = vcombine.high %v2730_v2, %v2734_v36  ;;  %v2762_v15 = vld [vmem:[%s7897_s14 + $0x258] sm:$0xff] }
 0x978   : > { %3651 = vmatprep.subr.bf16.mxu0 %v6351_v38  ;;  %3724 = vmatprep.subr.bf16.mxu1 %v6353_v32  ;;  %v2623_v45 = vmul.f32 %v7334_v25, %v8542_v27  ;;  %v2624_v62 = vmul.f32 %v7334_v25, %v8545_v29  ;;  %v2649_v1 = vmul.f32 %v8605_v3, %v2622_v17  ;;  %v2750_v38 = vld [vmem:[%s7897_s14 + $0x1f8] sm:$0xff] }
 0x979   : > { %3549 = vmatprep.mubr.bf16.mxu0 %v8731_v60  ;;  %3622 = vmatprep.mubr.bf16.mxu1 %v8731_v60  ;;  %v2648_v39 = vmul.f32 %v8597_v40, %v2621_v53  ;;  %v6360_v27 = vcombine.low %v2730_v2, %v2734_v36  ;;  %v6368_v32 = vcombine.low %v2738_v46, %v2742_v37  ;;  %v2757_v36 = vld [vmem:[%s7897_s14 + $0x230] sm:$0xff] }
 0x97a   : > { %3550 = vmatmul.mubr.bf16.gmra.mrb[24].mxu0 %v8735_v4  ;;  %3623 = vmatmul.mubr.bf16.gmra.mrb[88].mxu1 %v8735_v4  ;;  %v2651_v29 = vmul.f32 %v8605_v3, %v2624_v62  ;;  %v2650_v59 = vmul.f32 %v8597_v40, %v2623_v45  ;;  %v8752_v58 = vadd.f32 %v8613_v33, %v2649_v1  ;;  %v2745_v3 = vld [vmem:[%s7897_s14 + $0x1d0] sm:$0xff]  ;;  %v2766_v45 = vld [vmem:[%s7897_s14 + $0x278] sm:$0xff] }
 0x97b   : > { %3652 = vmatpush1.bf16.msra.mxu0 %v6350_v14  ;;  %3725 = vmatpush1.bf16.msra.mxu1 %v6352_v52  ;;  %v8758_v24 = vadd.f32 %v8610_v57, %v2648_v39  ;;  %v2749_v40 = vld [vmem:[%s7897_s14 + $0x1f0] sm:$0xff]  ;;  %v6377_v2 = vcombine.high %v2746_v42, %v2750_v38  ;;  %v2758_v14 = vld [vmem:[%s7897_s14 + $0x238] sm:$0xff]  ;;  %v6376_v53 = vcombine.low %v2746_v42, %v2750_v38 }
 0x97c   : > { %3653 = vmatprep.subr.bf16.mxu0 %v6359_v7  ;;  %3726 = vmatprep.subr.bf16.mxu1 %v6361_v23  ;;  %10341 = vst [vmem:[#allocation30_spill] sm:$0xff] %v8752_v58  ;;  %v8755_v49 = vadd.f32 %v8613_v33, %v2651_v29  ;;  %v8761_v28 = vadd.f32 %v8610_v57, %v2650_v59  ;;  %v2753_v57 = vld [vmem:[%s7897_s14 + $0x210] sm:$0xff]  ;;  %v2774_v39 = vld [vmem:[%s7897_s14 + $0x2b8] sm:$0xff] }
 0x97d   : > { %10343 = vst [vmem:[#allocation32_spill] sm:$0xff] %v8758_v24  ;;  %v6375_v54 = vcombine.high %v2745_v3, %v2749_v40  ;;  %v6374_v52 = vcombine.low %v2745_v3, %v2749_v40  ;;  %v6383_v17 = vcombine.high %v2753_v57, %v2757_v36  ;;  %v6385_v25 = vcombine.high %v2754_v5, %v2758_v14  ;;  %v2761_v7 = vld [vmem:[%s7897_s14 + $0x250] sm:$0xff]  ;;  %v2782_v40 = vld [vmem:[%s7897_s14 + $0x2f8] sm:$0xff] }
 0x97e   : > { %10342 = vst [vmem:[#allocation31_spill] sm:$0xff] %v8755_v49  ;;  %10344 = vst [vmem:[#allocation33_spill] sm:$0xff] %v8761_v28  ;;  %v8769_v33 = vpack.c.bf16 %v8755_v49, %v8752_v58  ;;  %v8773_v12 = vpack.c.bf16 %v8761_v28, %v8758_v24  ;;  %v2765_v23 = vld [vmem:[%s7897_s14 + $0x270] sm:$0xff]  ;;  %v6382_v62 = vcombine.low %v2753_v57, %v2757_v36  ;;  %v2786_v36 = vld [vmem:[%s7897_s14 + $0x318] sm:$0xff] }
 0x97f   : > { %3654 = vmatpush1.bf16.msra.mxu0 %v6358_v34  ;;  %3727 = vmatpush1.bf16.msra.mxu1 %v6360_v27  ;;  %v6384_v1 = vcombine.low %v2754_v5, %v2758_v14  ;;  %v6393_v55 = vcombine.high %v2762_v15, %v2766_v45  ;;  %v2769_v46 = vld [vmem:[%s7897_s14 + $0x290] sm:$0xff]  ;;  %v2770_v34 = vld [vmem:[%s7897_s14 + $0x298] sm:$0xff]  ;;  %v6390_v27 = vcombine.low %v2761_v7, %v2765_v23 }
 0x980   : > { %3655 = vmatprep.subr.bf16.mxu0 %v6367_v18  ;;  %3728 = vmatprep.subr.bf16.mxu1 %v6369_v16  ;;  %v2773_v37 = vld [vmem:[%s7897_s14 + $0x2b0] sm:$0xff]  ;;  %v6392_v29 = vcombine.low %v2762_v15, %v2766_v45  ;;  %v6401_v18 = vcombine.high %v2770_v34, %v2774_v39  ;;  %v6400_v38 = vcombine.low %v2770_v34, %v2774_v39  ;;  %v2790_v5 = vld [vmem:[%s7897_s14 + $0x338] sm:$0xff] }
 0x981   : > { %3559 = vmatprep.mubr.bf16.mxu0 %v8769_v33  ;;  %3632 = vmatprep.mubr.bf16.mxu1 %v8769_v33  ;;  %v6399_v59 = vcombine.high %v2769_v46, %v2773_v37  ;;  %v2777_v16 = vld [vmem:[%s7897_s14 + $0x2d0] sm:$0xff]  ;;  %v6398_v42 = vcombine.low %v2769_v46, %v2773_v37  ;;  %v2798_v15 = vld [vmem:[%s7897_s14 + $0x378] sm:$0xff] }
 0x982   : > { %3560 = vmatmul.mubr.bf16.gmra.mrb[28].mxu0 %v8773_v12  ;;  %3633 = vmatmul.mubr.bf16.gmra.mrb[92].mxu1 %v8773_v12  ;;  %v2781_v3 = vld [vmem:[%s7897_s14 + $0x2f0] sm:$0xff]  ;;  %v2802_v37 = vld [vmem:[%s7897_s14 + $0x398] sm:$0xff] }
 0x983   : > { %3656 = vmatpush1.bf16.msra.mxu0 %v6366_v48  ;;  %3729 = vmatpush1.bf16.msra.mxu1 %v6368_v32  ;;  %v2778_v48 = vld [vmem:[%s7897_s14 + $0x2d8] sm:$0xff]  ;;  %v6407_v32 = vcombine.high %v2777_v16, %v2781_v3  ;;  %v6406_v14 = vcombine.low %v2777_v16, %v2781_v3  ;;  %v2805_v46 = vld [vmem:[%s7897_s14 + $0x3b0] sm:$0xff] }
 0x984   : > { %3675 = vmatprep.mubr.bf16.mxu0 %v8641_v35  ;;  %3748 = vmatprep.mubr.bf16.mxu1 %v8641_v35  ;;  %v6391_v35 = vcombine.high %v2761_v7, %v2765_v23  ;;  %v6409_v57 = vcombine.high %v2778_v48, %v2782_v40  ;;  %v2797_v7 = vld [vmem:[%s7897_s14 + $0x370] sm:$0xff]  ;;  %v2794_v23 = vld [vmem:[%s7897_s14 + $0x358] sm:$0xff] }
 0x985   : > { %3657 = vmatprep.subr.bf16.mxu0 %v6375_v54  ;;  %3730 = vmatprep.subr.bf16.mxu1 %v6377_v2  ;;  %v2785_v54 = vld [vmem:[%s7897_s14 + $0x310] sm:$0xff]  ;;  %v2806_v34 = vld [vmem:[%s7897_s14 + $0x3b8] sm:$0xff] }
 0x986   : > { %v2789_v2 = vld [vmem:[%s7897_s14 + $0x330] sm:$0xff]  ;;  %v2810_v3 = vld [vmem:[%s7897_s14 + $0x3d8] sm:$0xff] }
 0x987   : > { %3658 = vmatpush1.bf16.msra.mxu0 %v6374_v52  ;;  %3731 = vmatpush1.bf16.msra.mxu1 %v6376_v53  ;;  %v6408_v52 = vcombine.low %v2778_v48, %v2782_v40  ;;  %v6415_v53 = vcombine.high %v2785_v54, %v2789_v2  ;;  %v6414_v45 = vcombine.low %v2785_v54, %v2789_v2  ;;  %v2813_v16 = vld [vmem:[%s7897_s14 + $0x3f0] sm:$0xff]  ;;  %v2814_v48 = vld [vmem:[%s7897_s14 + $0x3f8] sm:$0xff]  ;;  %v7065_v2 = vld [vmem:[%s7862_s20 + $0x4] ss:$8 sps:$4 sm:$0xff]  }
 0x988   : > { %3659 = vmatprep.subr.bf16.mxu0 %v6383_v17  ;;  %3732 = vmatprep.subr.bf16.mxu1 %v6385_v25  ;;  %v6417_v17 = vcombine.high %v2786_v36, %v2790_v5  ;;  %v2793_v25 = vld [vmem:[%s7897_s14 + $0x350] sm:$0xff]  ;;  %v6440_v54 = vcombine.low %v2810_v3, %v2814_v48 }
 0x989   : > { %v6422_v39 = vcombine.low %v2793_v25, %v2797_v7 }
 0x98b   : > { %3660 = vmatpush1.bf16.msra.mxu0 %v6382_v62  ;;  %3733 = vmatpush1.bf16.msra.mxu1 %v6384_v1  ;;  %v6416_v62 = vcombine.low %v2786_v36, %v2790_v5  ;;  %v6423_v1 = vcombine.high %v2793_v25, %v2797_v7  ;;  %v7063_v36 = vld [vmem:[%s7862_s20] ss:$8 sps:$4 sm:$0xff]   ;;  %v7068_v5 = vld [vmem:[%s7862_s20 + $0x14] ss:$8 sps:$4 sm:$0xff]  }
 0x98c   : > { %3661 = vmatprep.subr.bf16.mxu0 %v6391_v35  ;;  %3734 = vmatprep.subr.bf16.mxu1 %v6393_v55  ;;  %v6425_v35 = vcombine.high %v2794_v23, %v2798_v15  ;;  %v2801_v55 = vld [vmem:[%s7897_s14 + $0x390] sm:$0xff]  ;;  %v7075_v25 = vld [vmem:[%s7862_s20 + $0x40] ss:$8 sps:$4 sm:$0xff]  }
 0x98d   : > { %v6430_v40 = vcombine.low %v2801_v55, %v2805_v46  ;;  %v7080_v7 = vld [vmem:[%s7862_s20 + $0x54] ss:$8 sps:$4 sm:$0xff]  }
 0x98f   : > { %3662 = vmatpush1.bf16.msra.mxu0 %v6390_v27  ;;  %3735 = vmatpush1.bf16.msra.mxu1 %v6392_v29  ;;  %v6424_v27 = vcombine.low %v2794_v23, %v2798_v15  ;;  %v6431_v29 = vcombine.high %v2801_v55, %v2805_v46  ;;  %v7081_v23 = vld [vmem:[%s7862_s20 + $0x60] ss:$8 sps:$4 sm:$0xff]   ;;  %v7086_v15 = vld [vmem:[%s7862_s20 + $0x74] ss:$8 sps:$4 sm:$0xff]   ;;  %v7096_v46 = vld [vmem:[%s7862_s20 + $0xb0] ss:$8 sps:$4 sm:$0xff]  }
 0x990   : > { %3663 = vmatprep.subr.bf16.mxu0 %v6399_v59  ;;  %3736 = vmatprep.subr.bf16.mxu1 %v6401_v18  ;;  %v6433_v59 = vcombine.high %v2802_v37, %v2806_v34  ;;  %v2809_v18 = vld [vmem:[%s7897_s14 + $0x3d0] sm:$0xff] }
 0x991   : > { %v7098_v55 = vld [vmem:[%s7862_s20 + $0xb4] ss:$8 sps:$4 sm:$0xff]  }
 0x993   : > { %3664 = vmatpush1.bf16.msra.mxu0 %v6398_v42  ;;  %3737 = vmatpush1.bf16.msra.mxu1 %v6400_v38  ;;  %v6432_v42 = vcombine.low %v2802_v37, %v2806_v34  ;;  %v6439_v38 = vcombine.high %v2809_v18, %v2813_v16  ;;  %v7101_v37 = vld [vmem:[%s7862_s20 + $0xc4] ss:$8 sps:$4 sm:$0xff]   ;;  %v7099_v34 = vld [vmem:[%s7862_s20 + $0xc0] ss:$8 sps:$4 sm:$0xff]  }
 0x994   : > { %3665 = vmatprep.subr.bf16.mxu0 %v6407_v32  ;;  %3738 = vmatprep.subr.bf16.mxu1 %v6409_v57  ;;  %v6441_v32 = vcombine.high %v2810_v3, %v2814_v48  ;;  %v6438_v57 = vcombine.low %v2809_v18, %v2813_v16  ;;  %v7110_v18 = vld [vmem:[%s7862_s20 + $0xf4] ss:$8 sps:$4 sm:$0xff]   ;;  %v7108_v16 = vld [vmem:[%s7862_s20 + $0xf0] ss:$8 sps:$4 sm:$0xff]   ;;  %v7113_v3 = vld [vmem:[%s7862_s20 + $0x104] ss:$8 sps:$4 sm:$0xff]  }
 0x995   : > { %v2815_v48 = vld [vmem:[%s7902_s17] sm:$0xff]  ;;  %s10438_s17 = sld [smem:[#allocation73_spill]] (!%p6570_p8) }
 0x997   : > { %3666 = vmatpush1.bf16.msra.mxu0 %v6406_v14  ;;  %3739 = vmatpush1.bf16.msra.mxu1 %v6408_v52  ;;  %v7066_v14 = vld [vmem:[%s7862_s20 + $0x10] ss:$8 sps:$4 sm:$0xff]   ;;  %v7071_v52 = vld [vmem:[%s7862_s20 + $0x24] ss:$8 sps:$4 sm:$0xff]  }
 0x998   : > { %3667 = vmatprep.subr.bf16.mxu0 %v6415_v53  ;;  %3740 = vmatprep.subr.bf16.mxu1 %v6417_v17  ;;  %v7069_v53 = vld [vmem:[%s7862_s20 + $0x20] ss:$8 sps:$4 sm:$0xff]   ;;  %v7074_v17 = vld [vmem:[%s7862_s20 + $0x34] ss:$8 sps:$4 sm:$0xff]  }
 0x99b   : > { %3668 = vmatpush1.bf16.msra.mxu0 %v6414_v45  ;;  %3741 = vmatpush1.bf16.msra.mxu1 %v6416_v62  ;;  %v7087_v45 = vld [vmem:[%s7862_s20 + $0x80] ss:$8 sps:$4 sm:$0xff]   ;;  %v7092_v62 = vld [vmem:[%s7862_s20 + $0x94] ss:$8 sps:$4 sm:$0xff]  }
 0x99c   : > { %3669 = vmatprep.subr.bf16.mxu0 %v6423_v1  ;;  %3742 = vmatprep.subr.bf16.mxu1 %v6425_v35  ;;  %v7090_v1 = vld [vmem:[%s7862_s20 + $0x90] ss:$8 sps:$4 sm:$0xff]   ;;  %v7095_v35 = vld [vmem:[%s7862_s20 + $0xa4] ss:$8 sps:$4 sm:$0xff]  }
 0x99f   : > { %3670 = vmatpush1.bf16.msra.mxu0 %v6422_v39  ;;  %3743 = vmatpush1.bf16.msra.mxu1 %v6424_v27  ;;  %v7104_v39 = vld [vmem:[%s7862_s20 + $0xd4] ss:$8 sps:$4 sm:$0xff]   ;;  %v7102_v27 = vld [vmem:[%s7862_s20 + $0xd0] ss:$8 sps:$4 sm:$0xff]  }
 0x9a0   : > { %3671 = vmatprep.subr.bf16.mxu0 %v6431_v29  ;;  %3744 = vmatprep.subr.bf16.mxu1 %v6433_v59  ;;  %v7107_v29 = vld [vmem:[%s7862_s20 + $0xe4] ss:$8 sps:$4 sm:$0xff]   ;;  %v7105_v59 = vld [vmem:[%s7862_s20 + $0xe0] ss:$8 sps:$4 sm:$0xff]  }
 0x9a3   : > { %3672 = vmatpush1.bf16.msra.mxu0 %v6430_v40  ;;  %3745 = vmatpush1.bf16.msra.mxu1 %v6432_v42  ;;  %v8862_v40 = vrot.slane %v2815_v48, %v8100_v11  ;;  %v8866_v42 = vrot.slane %v2815_v48, %v892_v61 }
 0x9a4   : > { %3673 = vmatprep.subr.bf16.mxu0 %v6439_v38  ;;  %3746 = vmatprep.subr.bf16.mxu1 %v6441_v32  ;;  %v2843_v38 = vsub.s32 6, %v8097_v10  ;;  %v8870_v32 = vrot.slane %v2815_v48, %v8106_v9 }
 0x9a7   : > { %3674 = vmatpush1.bf16.msra.mxu0 %v6438_v57  ;;  %3747 = vmatpush1.bf16.msra.mxu1 %v6440_v54  ;;  %v8874_v57 = vrot.slane %v2815_v48, %v896_v31  ;;  %v2847_v54 = vsub.s32 7, %v8097_v10 }
 0x9a8   : > { %5177 = vmatprep.subr.bf16.mxu0 %v7065_v2 }
 0x9aa   : > { %3676 = vmatmul.mubr.bf16.vlgmr.msra.gmra.mrb[32].mxu0 %v8645_v43  ;;  %3749 = vmatmul.mubr.bf16.vlgmr.msra.gmra.mrb[96].mxu1 %v8645_v43  ;;  %v7072_v43 = vld [vmem:[%s7862_s20 + $0x30] ss:$8 sps:$4 sm:$0xff]  }
 0x9ab   : > { %3685 = vmatprep.mubr.bf16.mxu0 %v8691_v20  ;;  %3758 = vmatprep.mubr.bf16.mxu1 %v8691_v20  ;;  %v7077_v20 = vld [vmem:[%s7862_s20 + $0x44] ss:$8 sps:$4 sm:$0xff]  }
 0x9ac   : > { %5178 = vmatpush1.bf16.msra.mxu0 %v7063_v36 }
 0x9ad   : > { %5179 = vmatprep.subr.bf16.mxu0 %v7068_v5 }
 0x9b0   : > { %5180 = vmatpush1.bf16.msra.mxu0 %v7066_v14 }
 0x9b1   : > { %5181 = vmatprep.subr.bf16.mxu0 %v7071_v52 }
 0x9b2   : > { %3686 = vmatmul.mubr.bf16.gmra.mrb[36].mxu0 %v8695_v22  ;;  %3759 = vmatmul.mubr.bf16.gmra.mrb[100].mxu1 %v8695_v22  ;;  %v7078_v22 = vld [vmem:[%s7862_s20 + $0x50] ss:$8 sps:$4 sm:$0xff]  }
 0x9b3   : > { %3695 = vmatprep.mubr.bf16.mxu0 %v8731_v60  ;;  %3768 = vmatprep.mubr.bf16.mxu1 %v8731_v60  ;;  %v7083_v60 = vld [vmem:[%s7862_s20 + $0x64] ss:$8 sps:$4 sm:$0xff]  }
 0x9b4   : > { %5182 = vmatpush1.bf16.msra.mxu0 %v7069_v53  ;;  %v8885_v53 = vrot.slane %v2815_v48, %v900_v47 }
 0x9b5   : > { %5183 = vmatprep.subr.bf16.mxu0 %v7074_v17  ;;  %v8887_v17 = vrot.slane %v2815_v48, %v2843_v38 }
 0x9b8   : > { %5184 = vmatpush1.bf16.msra.mxu0 %v7072_v43 }
 0x9b9   : > { %5185 = vmatprep.subr.bf16.mxu0 %v7077_v20 }
 0x9ba   : > { %3696 = vmatmul.mubr.bf16.gmra.mrb[40].mxu0 %v8735_v4  ;;  %3769 = vmatmul.mubr.bf16.gmra.mrb[104].mxu1 %v8735_v4  ;;  %v7084_v4 = vld [vmem:[%s7862_s20 + $0x70] ss:$8 sps:$4 sm:$0xff]  }
 0x9bb   : > { %3705 = vmatprep.mubr.bf16.mxu0 %v8769_v33  ;;  %3778 = vmatprep.mubr.bf16.mxu1 %v8769_v33  ;;  %v7089_v33 = vld [vmem:[%s7862_s20 + $0x84] ss:$8 sps:$4 sm:$0xff]  }
 0x9bc   : > { %5186 = vmatpush1.bf16.msra.mxu0 %v7075_v25 }
 0x9bd   : > { %5187 = vmatprep.subr.bf16.mxu0 %v7080_v7  ;;  %v8897_v7 = vrot.slane %v2815_v48, %v904_v50 }
 0x9c0   : > { %5188 = vmatpush1.bf16.msra.mxu0 %v7078_v22  ;;  %v8899_v22 = vrot.slane %v2815_v48, %v2847_v54 }
 0x9c1   : > { %5189 = vmatprep.subr.bf16.mxu0 %v7083_v60 }
 0x9c2   : > { %3706 = vmatmul.mubr.bf16.gmra.mrb[44].mxu0 %v8773_v12  ;;  %3779 = vmatmul.mubr.bf16.gmra.mrb[108].mxu1 %v8773_v12  ;;  %v7093_v12 = vld [vmem:[%s7862_s20 + $0xa0] ss:$8 sps:$4 sm:$0xff]  }
 0x9c4   : > { %5190 = vmatpush1.bf16.msra.mxu0 %v7081_v23 }
 0x9c5   : > { %5191 = vmatprep.subr.bf16.mxu0 %v7086_v15 }
 0x9c8   : > { %5192 = vmatpush1.bf16.msra.mxu0 %v7084_v4 }
 0x9c9   : > { %5193 = vmatprep.subr.bf16.mxu0 %v7089_v33 }
 0x9cc   : > { %5194 = vmatpush1.bf16.msra.mxu0 %v7087_v45 }
 0x9cd   : > { %5195 = vmatprep.subr.bf16.mxu0 %v7092_v62 }
 0x9d0   : > { %5196 = vmatpush1.bf16.msra.mxu0 %v7090_v1 }
 0x9d1   : > { %5197 = vmatprep.subr.bf16.mxu0 %v7095_v35 }
 0x9d4   : > { %5198 = vmatpush1.bf16.msra.mxu0 %v7093_v12 }
 0x9d5   : > { %5199 = vmatprep.subr.bf16.mxu0 %v7098_v55 }
 0x9d8   : > { %5200 = vmatpush1.bf16.msra.mxu0 %v7096_v46 }
 0x9d9   : > { %5201 = vmatprep.subr.bf16.mxu0 %v7101_v37 }
 0x9dc   : > { %5202 = vmatpush1.bf16.msra.mxu0 %v7099_v34 }
 0x9dd   : > { %5203 = vmatprep.subr.bf16.mxu0 %v7104_v39 }
 0x9e0   : > { %5204 = vmatpush1.bf16.msra.mxu0 %v7102_v27 }
 0x9e1   : > { %5205 = vmatprep.subr.bf16.mxu0 %v7107_v29 }
 0x9e4   : > { %5206 = vmatpush1.bf16.msra.mxu0 %v7105_v59 }
 0x9e5   : > { %5207 = vmatprep.subr.bf16.mxu0 %v7110_v18 }
 0x9e8   : > { %5208 = vmatpush1.bf16.msra.mxu0 %v7108_v16 }
 0x9e9   : > { %5250 = vmatprep.subr.bf16.mxu0 %v7113_v3 }
 0xa3c   : > { %v3531_v2 = vpop.f32.mrb[16].mxu0  ;;  %v3604_v36 = vpop.f32.mrb[80].mxu1 }
 0xa3d   : > { %v8878_v5 = vadd.f32 %v3531_v2, %v8862_v40  ;;  %v8881_v14 = vadd.f32 %v3604_v36, %v8866_v42  ;;  %v3533_v61 = vpop.f32.mrb[17].mxu0  ;;  %v3606_v52 = vpop.f32.mrb[81].mxu1 }
 0xa3e   : > { %v8890_v31 = vadd.f32 %v3533_v61, %v8870_v32  ;;  %v8893_v43 = vadd.f32 %v3606_v52, %v8874_v57  ;;  %v3535_v20 = vpop.f32.mrb[18].mxu0  ;;  %v3608_v25 = vpop.f32.mrb[82].mxu1 }
 0xa3f   : > { %v3789_v47 = vmul.f32 %v8878_v5, %v8878_v5  ;;  %v3791_v60 = vmul.f32 %v8881_v14, %v8881_v14  ;;  %v8906_v23 = vadd.f32 %v3535_v20, %v8862_v40  ;;  %v8909_v15 = vadd.f32 %v3608_v25, %v8866_v42  ;;  %v3537_v4 = vpop.f32.mrb[19].mxu0  ;;  %v3610_v33 = vpop.f32.mrb[83].mxu1 }
 0xa40   : > { %v3790_v10 = vmul.f32 %v8890_v31, %v8890_v31  ;;  %v3792_v50 = vmul.f32 %v8893_v43, %v8893_v43  ;;  %v8916_v45 = vadd.f32 %v3537_v4, %v8870_v32  ;;  %v8919_v62 = vadd.f32 %v3610_v33, %v8874_v57 }
 0xa41   : > { %v3853_v1 = vmul.f32 %v3789_v47, %v8878_v5  ;;  %v3855_v35 = vmul.f32 %v3791_v60, %v8881_v14  ;;  %v3797_v12 = vmul.f32 %v8906_v23, %v8906_v23  ;;  %v3799_v55 = vmul.f32 %v8909_v15, %v8909_v15 }
 0xa42   : > { %v3854_v46 = vmul.f32 %v3790_v10, %v8890_v31  ;;  %v3856_v37 = vmul.f32 %v3792_v50, %v8893_v43  ;;  %v3798_v34 = vmul.f32 %v8916_v45, %v8916_v45  ;;  %v3800_v39 = vmul.f32 %v8919_v62, %v8919_v62 }
 0xa43   : > { %v3917_v27 = vmul.f32 0.044715, %v3853_v1  ;;  %v3919_v29 = vmul.f32 0.044715, %v3855_v35  ;;  %v3861_v59 = vmul.f32 %v3797_v12, %v8906_v23  ;;  %v3863_v18 = vmul.f32 %v3799_v55, %v8909_v15 }
 0xa44   : > { %v3918_v16 = vmul.f32 0.044715, %v3854_v46  ;;  %v3920_v3 = vmul.f32 0.044715, %v3856_v37  ;;  %v3862_v48 = vmul.f32 %v3798_v34, %v8916_v45  ;;  %v3864_v38 = vmul.f32 %v3800_v39, %v8919_v62 }
 0xa45   : > { %v3541_v54 = vpop.f32.mrb[20].mxu0  ;;  %v3614_v2 = vpop.f32.mrb[84].mxu1  ;;  %v3981_v36 = vadd.f32 %v3917_v27, %v8878_v5  ;;  %v3983_v61 = vadd.f32 %v3919_v29, %v8881_v14  ;;  %v3925_v52 = vmul.f32 0.044715, %v3861_v59  ;;  %v3927_v20 = vmul.f32 0.044715, %v3863_v18 }
 0xa46   : > { %v3543_v25 = vpop.f32.mrb[21].mxu0  ;;  %v3616_v47 = vpop.f32.mrb[85].mxu1  ;;  %v3982_v60 = vadd.f32 %v3918_v16, %v8890_v31  ;;  %v3984_v4 = vadd.f32 %v3920_v3, %v8893_v43  ;;  %v3926_v33 = vmul.f32 0.044715, %v3862_v48  ;;  %v3928_v10 = vmul.f32 0.044715, %v3864_v38 }
 0xa47   : > { %v3545_v50 = vpop.f32.mrb[22].mxu0  ;;  %v3618_v1 = vpop.f32.mrb[86].mxu1  ;;  %v4045_v35 = vmul.f32 0.7978846, %v3981_v36  ;;  %v4047_v12 = vmul.f32 0.7978846, %v3983_v61  ;;  %v3989_v55 = vadd.f32 %v3925_v52, %v8906_v23  ;;  %v3991_v46 = vadd.f32 %v3927_v20, %v8909_v15 }
 0xa48   : > { %v3547_v37 = vpop.f32.mrb[23].mxu0  ;;  %v3620_v34 = vpop.f32.mrb[87].mxu1  ;;  %v4046_v39 = vmul.f32 0.7978846, %v3982_v60  ;;  %v4048_v27 = vmul.f32 0.7978846, %v3984_v4  ;;  %v3990_v29 = vadd.f32 %v3926_v33, %v8916_v45  ;;  %v3992_v59 = vadd.f32 %v3928_v10, %v8919_v62 }
 0xa49   : > { %7335 = vtanh.f32 %v4045_v35  ;;  %v4053_v18 = vmul.f32 0.7978846, %v3989_v55  ;;  %v4055_v16 = vmul.f32 0.7978846, %v3991_v46  ;;  %v8946_v3 = vadd.f32 %v3541_v54, %v8862_v40 }
 0xa4a   : > { %7337 = vtanh.f32 %v4047_v12  ;;  %v4054_v48 = vmul.f32 0.7978846, %v3990_v29  ;;  %v4056_v38 = vmul.f32 0.7978846, %v3992_v59  ;;  %v8949_v36 = vadd.f32 %v3614_v2, %v8866_v42 }
 0xa4b   : > { %7339 = vtanh.f32 %v4046_v39  ;;  %v3805_v61 = vmul.f32 %v8946_v3, %v8946_v3  ;;  %v8954_v52 = vadd.f32 %v3543_v25, %v8870_v32  ;;  %v8957_v20 = vadd.f32 %v3616_v47, %v8874_v57 }
 0xa4c   : > { %10345 = vst [vmem:[#allocation34_spill] sm:$0xff] %v8949_v36  ;;  %7341 = vtanh.f32 %v4048_v27  ;;  %v3807_v54 = vmul.f32 %v8949_v36, %v8949_v36  ;;  %v8962_v60 = vadd.f32 %v3545_v50, %v8862_v40  ;;  %v8965_v2 = vadd.f32 %v3618_v1, %v8866_v42 }
 0xa4d   : > { %v8967_v4 = vpop.f32.mrb[24].mxu0  ;;  %v8969_v33 = vpop.f32.mrb[88].mxu1  ;;  %7343 = vtanh.f32 %v4053_v18  ;;  %v3869_v25 = vmul.f32 %v3805_v61, %v8946_v3  ;;  %v3806_v47 = vmul.f32 %v8954_v52, %v8954_v52  ;;  %v3808_v10 = vmul.f32 %v8957_v20, %v8957_v20 }
 0xa4e   : > { %10346 = vst [vmem:[#allocation35_spill] sm:$0xff] %v8965_v2  ;;  %v8976_v35 = vpop.f32.mrb[25].mxu0  ;;  %v8978_v50 = vpop.f32.mrb[89].mxu1  ;;  %7345 = vtanh.f32 %v4055_v16  ;;  %v3871_v1 = vmul.f32 %v3807_v54, %v8949_v36  ;;  %v3813_v12 = vmul.f32 %v8962_v60, %v8962_v60  ;;  %v3815_v55 = vmul.f32 %v8965_v2, %v8965_v2 }
 0xa4f   : > { %v8985_v46 = vpop.f32.mrb[26].mxu0  ;;  %v8987_v39 = vpop.f32.mrb[90].mxu1  ;;  %7347 = vtanh.f32 %v4054_v48  ;;  %v3933_v27 = vmul.f32 0.044715, %v3869_v25  ;;  %v3870_v29 = vmul.f32 %v3806_v47, %v8954_v52  ;;  %v3872_v59 = vmul.f32 %v3808_v10, %v8957_v20 }
 0xa50   : > { %v8991_v18 = vpop.f32.mrb[27].mxu0  ;;  %v8993_v16 = vpop.f32.mrb[91].mxu1  ;;  %7349 = vtanh.f32 %v4056_v38  ;;  %v3935_v61 = vmul.f32 0.044715, %v3871_v1  ;;  %v3877_v54 = vmul.f32 %v3813_v12, %v8962_v60  ;;  %v3879_v8 = vmul.f32 %v3815_v55, %v8965_v2 }
 0xa51   : > { %v3997_v49 = vadd.f32 %v3933_v27, %v8946_v3  ;;  %v3934_v28 = vmul.f32 0.044715, %v3870_v29  ;;  %v3936_v58 = vmul.f32 0.044715, %v3872_v59  ;;  %v8999_v48 = vadd.f32 %v3547_v37, %v8870_v32 }
 0xa52   : > { %v3999_v25 = vadd.f32 %v3935_v61, %v8949_v36  ;;  %v3941_v47 = vmul.f32 0.044715, %v3877_v54  ;;  %v3943_v10 = vmul.f32 0.044715, %v3879_v8  ;;  %v9003_v24 = vadd.f32 %v3620_v34, %v8874_v57 }
 0xa53   : > { %v7336_v38 = vpop.eup %7335  ;;  %v4061_v1 = vmul.f32 0.7978846, %v3997_v49  ;;  %v3998_v12 = vadd.f32 %v3934_v28, %v8954_v52  ;;  %v4000_v55 = vadd.f32 %v3936_v58, %v8957_v20  ;;  %v3814_v27 = vmul.f32 %v8999_v48, %v8999_v48 }
 0xa54   : > { %v7338_v29 = vpop.eup %7337  ;;  %v4173_v59 = vadd.f32 1.0, %v7336_v38  ;;  %v4063_v37 = vmul.f32 0.7978846, %v3999_v25  ;;  %v4005_v26 = vadd.f32 %v3941_v47, %v8962_v60  ;;  %v4007_v61 = vadd.f32 %v3943_v10, %v8965_v2 }
 0xa55   : > { %v9011_v8 = vpop.f32.mrb[28].mxu0  ;;  %v9013_v34 = vpop.f32.mrb[92].mxu1  ;;  %v4175_v49 = vadd.f32 1.0, %v7338_v29  ;;  %7351 = vtanh.f32 %v4061_v1  ;;  %v4062_v28 = vmul.f32 0.7978846, %v3998_v12  ;;  %v3878_v41 = vmul.f32 %v3814_v27, %v8999_v48 }
 0xa56   : > { %v9015_v54 = vpop.eup %7339  ;;  %v4064_v58 = vmul.f32 0.7978846, %v4000_v55  ;;  %v9017_v30 = vpop.f32.mrb[29].mxu0  ;;  %v4237_v38 = vmul.f32 0.5, %v4173_v59  ;;  %7353 = vtanh.f32 %v4063_v37  ;;  %v4069_v25 = vmul.f32 0.7978846, %v4005_v26 }
 0xa57   : > { %v9019_v21 = vpop.eup %7341  ;;  %v4071_v47 = vmul.f32 0.7978846, %v4007_v61  ;;  %v9021_v19 = vpop.f32.mrb[93].mxu1  ;;  %v4239_v51 = vmul.f32 0.5, %v4175_v49  ;;  %7355 = vtanh.f32 %v4062_v28  ;;  %v3816_v1 = vmul.f32 %v9003_v24, %v9003_v24 }
 0xa58   : > { %v7344_v10 = vpop.eup %7343  ;;  %v9026_v12 = vpop.f32.mrb[30].mxu0  ;;  %v9031_v59 = vmul.f32 %v4237_v38, %v8878_v5  ;;  %7357 = vtanh.f32 %v4064_v58  ;;  %v9035_v37 = vadd.f32 %v8967_v4, %v8862_v40  ;;  %v3942_v63 = vmul.f32 0.044715, %v3878_v41 }
 0xa59   : > { %v9028_v55 = vpop.f32.mrb[94].mxu1  ;;  %v7346_v29 = vpop.eup %7345  ;;  %v4181_v26 = vadd.f32 1.0, %v7344_v10  ;;  %v9044_v28 = vmul.f32 %v4239_v51, %v8881_v14  ;;  %7359 = vtanh.f32 %v4069_v25  ;;  %v3880_v58 = vmul.f32 %v3816_v1, %v9003_v24 }
 0xa5a   : > { %v9037_v61 = vpop.f32.mrb[31].mxu0  ;;  %v9039_v27 = vpop.f32.mrb[95].mxu1  ;;  %v4183_v44 = vadd.f32 1.0, %v7346_v29  ;;  %7361 = vtanh.f32 %v4071_v47  ;;  %v3821_v4 = vmul.f32 %v9035_v37, %v9035_v37  ;;  %v4006_v6 = vadd.f32 %v3942_v63, %v8999_v48 }
 0xa5b   : > { %v9041_v49 = vpop.eup %7347  ;;  %v4245_v38 = vmul.f32 0.5, %v4181_v26  ;;  %v9054_v13 = vadd.f32 %v8969_v33, %v8866_v42  ;;  %v9058_v51 = vadd.f32 %v8976_v35, %v8870_v32  ;;  %v3944_v14 = vmul.f32 0.044715, %v3880_v58 }
 0xa5c   : > { %v9046_v5 = vpop.eup %7349  ;;  %v4247_v10 = vmul.f32 0.5, %v4183_v44  ;;  %v3885_v25 = vmul.f32 %v3821_v4, %v9035_v37  ;;  %v9066_v47 = vadd.f32 %v8978_v50, %v8874_v57  ;;  %v4070_v63 = vmul.f32 0.7978846, %v4006_v6 }
 0xa5d   : > { %10347 = vst [vmem:[#allocation36_spill] sm:$0xff] %v9054_v13  ;;  %v9061_v41 = vmul.f32 %v4245_v38, %v8906_v23  ;;  %v3823_v33 = vmul.f32 %v9054_v13, %v9054_v13  ;;  %v3822_v35 = vmul.f32 %v9058_v51, %v9058_v51  ;;  %v4008_v1 = vadd.f32 %v3944_v14, %v9003_v24 }
 0xa5e   : > { %10348 = vst [vmem:[#allocation37_spill] sm:$0xff] %v9066_v47  ;;  %v9069_v44 = vmul.f32 %v4247_v10, %v8909_v15  ;;  %v3949_v29 = vmul.f32 0.044715, %v3885_v25  ;;  %v3824_v50 = vmul.f32 %v9066_v47, %v9066_v47  ;;  %7363 = vtanh.f32 %v4070_v63 }
 0xa5f   : > { %v9080_v26 = vpop.eup %7351  ;;  %v3887_v15 = vmul.f32 %v3823_v33, %v9054_v13  ;;  %v3886_v38 = vmul.f32 %v3822_v35, %v9058_v51  ;;  %v4072_v4 = vmul.f32 0.7978846, %v4008_v1  ;;  %v9092_v25 = vadd.f32 %v8985_v46, %v8862_v40 }
 0xa60   : > { %v9086_v58 = vpop.eup %7353  ;;  %v4013_v10 = vadd.f32 %v3949_v29, %v9035_v37  ;;  %v3888_v14 = vmul.f32 %v3824_v50, %v9066_v47  ;;  %v9098_v63 = vadd.f32 %v8987_v39, %v8866_v42  ;;  %v9102_v33 = vadd.f32 %v8991_v18, %v8870_v32 }
 0xa61   : > { %v9094_v23 = vpop.eup %7355  ;;  %v3951_v0 = vmul.f32 0.044715, %v3887_v15  ;;  %v3950_v6 = vmul.f32 0.044715, %v3886_v38  ;;  %7365 = vtanh.f32 %v4072_v4  ;;  %v3829_v46 = vmul.f32 %v9092_v25, %v9092_v25 }
 0xa62   : > { %10349 = vst [vmem:[#allocation38_spill] sm:$0xff] %v9098_v63  ;;  %v9104_v35 = vpop.eup %7357  ;;  %v4077_v1 = vmul.f32 0.7978846, %v4013_v10  ;;  %v3952_v29 = vmul.f32 0.044715, %v3888_v14  ;;  %v3831_v39 = vmul.f32 %v9098_v63, %v9098_v63  ;;  %v3830_v18 = vmul.f32 %v9102_v33, %v9102_v33 }
 0xa63   : > { %v9108_v50 = vpop.eup %7359  ;;  %v4015_v15 = vadd.f32 %v3951_v0, %v9054_v13  ;;  %v4014_v38 = vadd.f32 %v3950_v6, %v9058_v51  ;;  %v3893_v10 = vmul.f32 %v3829_v46, %v9092_v25  ;;  %v9122_v14 = vadd.f32 %v8993_v16, %v8874_v57 }
 0xa64   : > { %v9116_v56 = vpop.eup %7361  ;;  %7367 = vtanh.f32 %v4077_v1  ;;  %v4016_v4 = vadd.f32 %v3952_v29, %v9066_v47  ;;  %v3895_v6 = vmul.f32 %v3831_v39, %v9098_v63  ;;  %v3894_v11 = vmul.f32 %v3830_v18, %v9102_v33 }
 0xa65   : > { %10350 = vst [vmem:[#allocation39_spill] sm:$0xff] %v9122_v14  ;;  %v4079_v0 = vmul.f32 0.7978846, %v4015_v15  ;;  %v4078_v9 = vmul.f32 0.7978846, %v4014_v38  ;;  %v3832_v36 = vmul.f32 %v9122_v14, %v9122_v14  ;;  %v9130_v1 = vadd.f32 %v9011_v8, %v8862_v40 }
 0xa66   : > { %v4080_v13 = vmul.f32 0.7978846, %v4016_v4  ;;  %v3957_v2 = vmul.f32 0.044715, %v3893_v10  ;;  %v3959_v29 = vmul.f32 0.044715, %v3895_v6  ;;  %v9134_v16 = vadd.f32 %v9013_v34, %v8866_v42 }
 0xa67   : > { %7369 = vtanh.f32 %v4079_v0  ;;  %v3958_v46 = vmul.f32 0.044715, %v3894_v11  ;;  %v3896_v38 = vmul.f32 %v3832_v36, %v9122_v14  ;;  %v3837_v39 = vmul.f32 %v9130_v1, %v9130_v1 }
 0xa68   : > { %10351 = vst [vmem:[#allocation40_spill] sm:$0xff] %v9134_v16  ;;  %7371 = vtanh.f32 %v4078_v9  ;;  %v4021_v15 = vadd.f32 %v3957_v2, %v9092_v25  ;;  %v9140_v18 = vpop.eup %7363  ;;  %v4023_v8 = vadd.f32 %v3959_v29, %v9098_v63  ;;  %v3839_v11 = vmul.f32 %v9134_v16, %v9134_v16 }
 0xa69   : > { %7373 = vtanh.f32 %v4080_v13  ;;  %v4022_v4 = vadd.f32 %v3958_v46, %v9102_v33  ;;  %v3960_v10 = vmul.f32 0.044715, %v3896_v38  ;;  %v3901_v9 = vmul.f32 %v3837_v39, %v9130_v1 }
 0xa6a   : > { %v4085_v34 = vmul.f32 0.7978846, %v4021_v15  ;;  %v9149_v36 = vadd.f32 %v9017_v30, %v8870_v32  ;;  %v4087_v2 = vmul.f32 0.7978846, %v4023_v8  ;;  %v3903_v6 = vmul.f32 %v3839_v11, %v9134_v16 }
 0xa6b   : > { %v4086_v0 = vmul.f32 0.7978846, %v4022_v4  ;;  %v9154_v13 = vadd.f32 %v9021_v19, %v8874_v57  ;;  %v9156_v29 = vpop.eup %7365  ;;  %v4024_v46 = vadd.f32 %v3960_v10, %v9122_v14  ;;  %v3965_v15 = vmul.f32 0.044715, %v3901_v9 }
 0xa6c   : > { %7375 = vtanh.f32 %v4085_v34  ;;  %v3838_v38 = vmul.f32 %v9149_v36, %v9149_v36  ;;  %v3967_v30 = vmul.f32 0.044715, %v3903_v6  ;;  %v9165_v8 = vadd.f32 %v9026_v12, %v8862_v40 }
 0xa6d   : > { %10352 = vst [vmem:[#allocation41_spill] sm:$0xff] %v9154_v13  ;;  %7377 = vtanh.f32 %v4087_v2  ;;  %v3840_v39 = vmul.f32 %v9154_v13, %v9154_v13  ;;  %v4088_v4 = vmul.f32 0.7978846, %v4024_v46  ;;  %v4029_v11 = vadd.f32 %v3965_v15, %v9130_v1 }
 0xa6e   : > { %v9167_v19 = vpop.eup %7367  ;;  %7379 = vtanh.f32 %v4086_v0  ;;  %v3902_v34 = vmul.f32 %v3838_v38, %v9149_v36  ;;  %v4031_v10 = vadd.f32 %v3967_v30, %v9134_v16  ;;  %v3845_v2 = vmul.f32 %v9165_v8, %v9165_v8 }
 0xa6f   : > { %v3904_v9 = vmul.f32 %v3840_v39, %v9154_v13  ;;  %v9177_v6 = vadd.f32 %v9028_v55, %v8866_v42  ;;  %7381 = vtanh.f32 %v4088_v4  ;;  %v4093_v40 = vmul.f32 0.7978846, %v4029_v11 }
 0xa70   : > { %v3966_v12 = vmul.f32 0.044715, %v3902_v34  ;;  %v9181_v0 = vadd.f32 %v9037_v61, %v8870_v32  ;;  %v4095_v15 = vmul.f32 0.7978846, %v4031_v10  ;;  %v3909_v30 = vmul.f32 %v3845_v2, %v9165_v8 }
 0xa71   : > { %10353 = vst [vmem:[#allocation42_spill] sm:$0xff] %v9177_v6  ;;  %v9183_v46 = vpop.eup %7369  ;;  %v3968_v38 = vmul.f32 0.044715, %v3904_v9  ;;  %v3847_v39 = vmul.f32 %v9177_v6, %v9177_v6  ;;  %7383 = vtanh.f32 %v4093_v40  ;;  %v9193_v32 = vadd.f32 %v9039_v27, %v8874_v57 }
 0xa72   : > { %v7372_v16 = vpop.eup %7371  ;;  %v4030_v42 = vadd.f32 %v3966_v12, %v9149_v36  ;;  %v3846_v55 = vmul.f32 %v9181_v0, %v9181_v0  ;;  %7385 = vtanh.f32 %v4095_v15  ;;  %v3973_v11 = vmul.f32 0.044715, %v3909_v30 }
 0xa73   : > { %10354 = vst [vmem:[#allocation43_spill] sm:$0xff] %v9193_v32  ;;  %v9195_v61 = vpop.eup %7373  ;;  %v4032_v4 = vadd.f32 %v3968_v38, %v9154_v13  ;;  %v3911_v34 = vmul.f32 %v3847_v39, %v9177_v6  ;;  %v3848_v2 = vmul.f32 %v9193_v32, %v9193_v32  ;;  %v4174_v40 = vadd.f32 1.0, %v9015_v54 }
 0xa74   : > { %v4094_v10 = vmul.f32 0.7978846, %v4030_v42  ;;  %v3910_v9 = vmul.f32 %v3846_v55, %v9181_v0  ;;  %v4037_v57 = vadd.f32 %v3973_v11, %v9165_v8  ;;  %v4182_v63 = vadd.f32 1.0, %v9041_v49 }
 0xa75   : > { %v4096_v12 = vmul.f32 0.7978846, %v4032_v4  ;;  %v3975_v27 = vmul.f32 0.044715, %v3911_v34  ;;  %v3912_v30 = vmul.f32 %v3848_v2, %v9193_v32  ;;  %v4238_v39 = vmul.f32 0.5, %v4174_v40 }
 0xa76   : > { %v7376_v15 = vpop.eup %7375  ;;  %7387 = vtanh.f32 %v4094_v10  ;;  %v3974_v38 = vmul.f32 0.044715, %v3910_v9  ;;  %v4101_v55 = vmul.f32 0.7978846, %v4037_v57  ;;  %v4246_v14 = vmul.f32 0.5, %v4182_v63 }
 0xa77   : > { %v9206_v42 = vpop.eup %7377  ;;  %7389 = vtanh.f32 %v4096_v12  ;;  %v4039_v13 = vadd.f32 %v3975_v27, %v9177_v6  ;;  %v3976_v11 = vmul.f32 0.044715, %v3912_v30  ;;  %v4302_v49 = vmul.f32 %v4238_v39, %v8890_v31  ;;  %v7111_v30 = vld [vmem:[%s7862_s20 + $0x100] ss:$8 sps:$4 sm:$0xff]   ;;  %v7116_v31 = vld [vmem:[%s7862_s20 + $0x114] ss:$8 sps:$4 sm:$0xff]  }
 0xa78   : > { %10355 = vst [vmem:[#allocation44_spill] sm:$0xff] %v9206_v42  ;;  %v7380_v54 = vpop.eup %7379  ;;  %v4038_v4 = vadd.f32 %v3974_v38, %v9181_v0  ;;  %v4190_v34 = vadd.f32 1.0, %v9094_v23  ;;  %7391 = vtanh.f32 %v4101_v55  ;;  %v4310_v9 = vmul.f32 %v4246_v14, %v8916_v45  ;;  %v7140_v42 = vld [vmem:[%s7862_s20 + $0x194] ss:$8 sps:$4 sm:$0xff]  }
 0xa79   : > { %v4103_v10 = vmul.f32 0.7978846, %v4039_v13  ;;  %v4198_v2 = vadd.f32 1.0, %v9140_v18  ;;  %v9214_v40 = vpop.eup %7381  ;;  %v4040_v63 = vadd.f32 %v3976_v11, %v9193_v32  ;;  %v4189_v27 = vadd.f32 1.0, %v9080_v26 }
 0xa7a   : > { %v4102_v12 = vmul.f32 0.7978846, %v4038_v4  ;;  %v4254_v57 = vmul.f32 0.5, %v4190_v34  ;;  %v4366_v38 = vpack.c.bf16 %v4310_v9, %v4302_v49  ;;  %v4197_v23 = vadd.f32 1.0, %v9108_v50 }
 0xa7b   : > { %7393 = vtanh.f32 %v4103_v10  ;;  %v4262_v39 = vmul.f32 0.5, %v4198_v2  ;;  %v7384_v13 = vpop.eup %7383  ;;  %v4104_v45 = vmul.f32 0.7978846, %v4040_v63  ;;  %v4253_v18 = vmul.f32 0.5, %v4189_v27 }
 0xa7c   : > { %7395 = vtanh.f32 %v4102_v12  ;;  %v4318_v14 = vmul.f32 %v4254_v57, %v8954_v52  ;;  %v9222_v6 = vpop.eup %7385  ;;  %5209 = vmatprep.mubr.bf16.mxu0 %v4366_v38  ;;  %v4261_v11 = vmul.f32 0.5, %v4197_v23  ;;  %v4206_v49 = vadd.f32 1.0, %v7372_v16 }
 0xa7d   : > { %v3677_v55 = vpop.f32.mrb[32].mxu0  ;;  %v3750_v4 = vpop.f32.mrb[96].mxu1  ;;  %10356 = vst [vmem:[#allocation45_spill] sm:$0xff] %v9222_v6  ;;  %v4326_v26 = vmul.f32 %v4262_v39, %v8999_v48  ;;  %v4214_v34 = vadd.f32 1.0, %v7380_v54  ;;  %7397 = vtanh.f32 %v4104_v45  ;;  %v10357_v50 = vpack.c.bf16 %v9061_v41, %v9031_v59  ;;  %v7114_v48 = vld [vmem:[%s7862_s20 + $0x110] ss:$8 sps:$4 sm:$0xff]  }
 0xa7e   : > { %v3679_v10 = vpop.f32.mrb[33].mxu0  ;;  %v3752_v9 = vpop.f32.mrb[97].mxu1  ;;  %v4317_v52 = vmul.f32 %v4253_v18, %v8946_v3  ;;  %v4205_v2 = vadd.f32 1.0, %v9167_v19  ;;  %v4213_v12 = vadd.f32 1.0, %v7376_v15  ;;  %v4325_v54 = vmul.f32 %v4261_v11, %v8962_v60  ;;  %v7119_v3 = vld [vmem:[%s7862_s20 + $0x124] ss:$8 sps:$4 sm:$0xff]  }
 0xa7f   : > { %5210 = vmatmul.mubr.bf16.vlgmr.msra.gmra.mrb[48].mxu0 %v10357_v50  ;;  %v9230_v63 = vpop.f32.mrb[34].mxu0  ;;  %v9232_v57 = vpop.f32.mrb[98].mxu1  ;;  %v4374_v16 = vpack.c.bf16 %v4326_v26, %v4318_v14  ;;  %v4270_v27 = vmul.f32 0.5, %v4206_v49  ;;  %v4278_v38 = vmul.f32 0.5, %v4214_v34  ;;  %v4221_v23 = vadd.f32 1.0, %v7384_v13 }
 0xa80   : > { %5251 = vmatpush1.bf16.msra.mxu0 %v7111_v30  ;;  %v9236_v39 = vpop.f32.mrb[35].mxu0  ;;  %v9238_v59 = vpop.f32.mrb[99].mxu1  ;;  %v4269_v19 = vmul.f32 0.5, %v4205_v2  ;;  %v4277_v15 = vmul.f32 0.5, %v4213_v12  ;;  %v4176_v45 = vadd.f32 1.0, %v9019_v21  ;;  %v4373_v14 = vpack.c.bf16 %v4325_v54, %v4317_v52 }
 0xa81   : > { %v7388_v41 = vpop.eup %7387  ;;  %5252 = vmatprep.subr.bf16.mxu0 %v7116_v31  ;;  %5219 = vmatprep.mubr.bf16.mxu0 %v4374_v16  ;;  %v4334_v60 = vmul.f32 %v4270_v27, %v9058_v51  ;;  %v4342_v18 = vmul.f32 %v4278_v38, %v9102_v33  ;;  %v4285_v49 = vmul.f32 0.5, %v4221_v23  ;;  %v4184_v13 = vadd.f32 1.0, %v9046_v5  ;;  %v7117_v34 = vld [vmem:[%s7862_s20 + $0x120] ss:$8 sps:$4 sm:$0xff]   ;;  %v7122_v33 = vld [vmem:[%s7862_s20 + $0x134] ss:$8 sps:$4 sm:$0xff]  }
 0xa82   : > { %v9242_v30 = vpop.eup %7389  ;;  %v4222_v26 = vadd.f32 1.0, %v7388_v41  ;;  %v9247_v11 = vmul.f32 %v4269_v19, %v9035_v37  ;;  %v9250_v31 = vmul.f32 %v4277_v15, %v9092_v25  ;;  %v4240_v2 = vmul.f32 0.5, %v4176_v45 }
 0xa83   : > { %10358 = vst [vmem:[#allocation46_spill] sm:$0xff] %v9242_v30  ;;  %v7392_v21 = vpop.eup %7391  ;;  %v4382_v50 = vpack.c.bf16 %v4342_v18, %v4334_v60  ;;  %v9255_v51 = vadd.f32 %v3677_v55, %v8885_v53  ;;  %v9261_v25 = vmul.f32 %v4285_v49, %v9130_v1  ;;  %v4248_v16 = vmul.f32 0.5, %v4184_v13  ;;  %v7120_v60 = vld [vmem:[%s7862_s20 + $0x130] ss:$8 sps:$4 sm:$0xff]   ;;  %v7125_v13 = vld [vmem:[%s7862_s20 + $0x144] ss:$8 sps:$4 sm:$0xff]  }
 0xa84   : > { %5253 = vmatpush1.bf16.msra.mxu0 %v7114_v48  ;;  %v4286_v52 = vmul.f32 0.5, %v4222_v26  ;;  %v4229_v12 = vadd.f32 1.0, %v7392_v21  ;;  %v9273_v27 = vmul.f32 %v4240_v2, %v8893_v43  ;;  %v9278_v1 = vadd.f32 %v3750_v4, %v8887_v17 }
 0xa85   : > { %5254 = vmatprep.subr.bf16.mxu0 %v7119_v3  ;;  %v9263_v5 = vpop.f32.mrb[36].mxu0  ;;  %v9265_v48 = vpop.f32.mrb[100].mxu1  ;;  %v3793_v38 = vmul.f32 %v9255_v51, %v9255_v51  ;;  %v9285_v23 = vmul.f32 %v4248_v16, %v8919_v62  ;;  %v9288_v43 = vadd.f32 %v3679_v10, %v8897_v7  ;;  %v9303_v10 = vadd.f32 %v9230_v63, %v8885_v53 }
 0xa86   : > { %v9267_v54 = vpop.eup %7393  ;;  %v9270_v55 = vmul.f32 %v4286_v52, %v9149_v36  ;;  %v9280_v41 = vpop.f32.mrb[37].mxu0  ;;  %v4293_v15 = vmul.f32 0.5, %v4229_v12  ;;  %v9291_v36 = vadd.f32 %v3752_v9, %v8899_v22  ;;  %v3795_v62 = vmul.f32 %v9278_v1, %v9278_v1 }
 0xa87   : > { %10359 = vst [vmem:[#allocation47_spill] sm:$0xff] %v9267_v54  ;;  %v9282_v3 = vpop.f32.mrb[101].mxu1  ;;  %v7396_v19 = vpop.eup %7395  ;;  %5220 = vmatmul.mubr.bf16.gmra.mrb[52].mxu0 %v4373_v14  ;;  %10360 = vst [vmem:[#allocation48_spill] sm:$0xff] %v9288_v43  ;;  %v3857_v14 = vmul.f32 %v3793_v38, %v9255_v51  ;;  %v3794_v63 = vmul.f32 %v9288_v43, %v9288_v43 }
 0xa88   : > { %10361 = vst [vmem:[#allocation49_spill] sm:$0xff] %v9291_v36  ;;  %v9293_v45 = vpop.f32.mrb[38].mxu0  ;;  %v9295_v4 = vpop.f32.mrb[102].mxu1  ;;  %5255 = vmatpush1.bf16.msra.mxu0 %v7117_v34  ;;  %5229 = vmatprep.mubr.bf16.mxu0 %v4382_v50  ;;  %v4230_v18 = vadd.f32 1.0, %v7396_v19  ;;  %v9313_v21 = vmul.f32 %v4293_v15, %v9165_v8  ;;  %v3796_v50 = vmul.f32 %v9291_v36, %v9291_v36  ;;  %v7123_v15 = vld [vmem:[%s7862_s20 + $0x140] ss:$8 sps:$4 sm:$0xff]  }
 0xa89   : > { %v9305_v26 = vpop.f32.mrb[39].mxu0  ;;  %v9307_v9 = vpop.f32.mrb[103].mxu1  ;;  %5256 = vmatprep.subr.bf16.mxu0 %v7122_v33  ;;  %v3921_v2 = vmul.f32 0.044715, %v3857_v14  ;;  %v3859_v12 = vmul.f32 %v3795_v62, %v9278_v1  ;;  %v3801_v33 = vmul.f32 %v9303_v10, %v9303_v10  ;;  %v3858_v16 = vmul.f32 %v3794_v63, %v9288_v43 }
 0xa8a   : > { %v9309_v49 = vpop.eup %7397  ;;  %v4294_v52 = vmul.f32 0.5, %v4230_v18  ;;  %v3860_v38 = vmul.f32 %v3796_v50, %v9291_v36  ;;  %v9330_v19 = vadd.f32 %v9232_v57, %v8887_v17  ;;  %v7128_v18 = vld [vmem:[%s7862_s20 + $0x154] ss:$8 sps:$4 sm:$0xff]   ;;  %v9341_v57 = vadd.f32 %v9236_v39, %v8897_v7  ;;  %v7126_v39 = vld [vmem:[%s7862_s20 + $0x150] ss:$8 sps:$4 sm:$0xff]  }
 0xa8b   : > { %10362 = vst [vmem:[#allocation50_spill] sm:$0xff] %v9309_v49  ;;  %v3985_v62 = vadd.f32 %v3921_v2, %v9255_v51  ;;  %v3923_v34 = vmul.f32 0.044715, %v3859_v12  ;;  %v3865_v37 = vmul.f32 %v3801_v33, %v9303_v10  ;;  %v3922_v8 = vmul.f32 0.044715, %v3858_v16 }
 0xa8c   : > { %5257 = vmatpush1.bf16.msra.mxu0 %v7120_v60  ;;  %v4358_v14 = vmul.f32 %v4294_v52, %v9181_v0  ;;  %v3924_v63 = vmul.f32 0.044715, %v3860_v38  ;;  %v3803_v50 = vmul.f32 %v9330_v19, %v9330_v19  ;;  %10363 = vst [vmem:[#allocation51_spill] sm:$0xff] %v9341_v57  ;;  %v10364_v16 = vpack.c.bf16 %v9250_v31, %v9247_v11 }
 0xa8d   : > { %5258 = vmatprep.subr.bf16.mxu0 %v7125_v13  ;;  %v9343_v60 = vpop.f32.mrb[40].mxu0  ;;  %v9345_v32 = vpop.f32.mrb[104].mxu1  ;;  %v4049_v52 = vmul.f32 0.7978846, %v3985_v62  ;;  %v3987_v2 = vadd.f32 %v3923_v34, %v9278_v1  ;;  %v3929_v13 = vmul.f32 0.044715, %v3865_v37  ;;  %v3986_v38 = vadd.f32 %v3922_v8, %v9288_v43 }
 0xa8e   : > { %v4390_v0 = vpack.c.bf16 %v4358_v14, %v9270_v55  ;;  %v9349_v12 = vpop.f32.mrb[41].mxu0  ;;  %v9351_v33 = vpop.f32.mrb[105].mxu1  ;;  %v3988_v54 = vadd.f32 %v3924_v63, %v9291_v36  ;;  %v3867_v55 = vmul.f32 %v3803_v50, %v9330_v19  ;;  %v3802_v14 = vmul.f32 %v9341_v57, %v9341_v57  ;;  %v7131_v62 = vld [vmem:[%s7862_s20 + $0x164] ss:$8 sps:$4 sm:$0xff]  }
 0xa8f   : > { %5230 = vmatmul.mubr.bf16.gmra.mrb[56].mxu0 %v10364_v16  ;;  %v9362_v34 = vpop.f32.mrb[42].mxu0  ;;  %v9364_v37 = vpop.f32.mrb[106].mxu1  ;;  %7399 = vtanh.f32 %v4049_v52  ;;  %v4051_v11 = vmul.f32 0.7978846, %v3987_v2  ;;  %v3993_v31 = vadd.f32 %v3929_v13, %v9303_v10  ;;  %v9370_v8 = vadd.f32 %v9238_v59, %v8899_v22 }
 0xa90   : > { %5259 = vmatpush1.bf16.msra.mxu0 %v7123_v15  ;;  %5239 = vmatprep.mubr.bf16.mxu0 %v4390_v0  ;;  %v9372_v63 = vpop.f32.mrb[43].mxu0  ;;  %v9374_v50 = vpop.f32.mrb[107].mxu1  ;;  %v4050_v16 = vmul.f32 0.7978846, %v3986_v38  ;;  %v4052_v36 = vmul.f32 0.7978846, %v3988_v54  ;;  %v3866_v15 = vmul.f32 %v3802_v14, %v9341_v57  ;;  %v9381_v59 = vadd.f32 %v9263_v5, %v8885_v53 }
 0xa91   : > { %10365 = vst [vmem:[#allocation52_spill] sm:$0xff] %v9370_v8  ;;  %5260 = vmatprep.subr.bf16.mxu0 %v7128_v18  ;;  %v3931_v43 = vmul.f32 0.044715, %v3867_v55  ;;  %7401 = vtanh.f32 %v4051_v11  ;;  %v4057_v0 = vmul.f32 0.7978846, %v3993_v31  ;;  %v3804_v52 = vmul.f32 %v9370_v8, %v9370_v8 }
 0xa92   : > { %10366 = vst [vmem:[#allocation53_spill] sm:$0xff] %v9381_v59  ;;  %7403 = vtanh.f32 %v4050_v16  ;;  %v3930_v13 = vmul.f32 0.044715, %v3866_v15  ;;  %v9386_v54 = vadd.f32 %v9265_v48, %v8887_v17  ;;  %v7129_v18 = vld [vmem:[%s7862_s20 + $0x160] ss:$8 sps:$4 sm:$0xff]   ;;  %v3809_v55 = vmul.f32 %v9381_v59, %v9381_v59 }
 0xa93   : > { %v3995_v2 = vadd.f32 %v3931_v43, %v9330_v19  ;;  %7405 = vtanh.f32 %v4052_v36  ;;  %v3868_v38 = vmul.f32 %v3804_v52, %v9370_v8  ;;  %v9394_v5 = vadd.f32 %v9280_v41, %v8897_v7  ;;  %v7134_v14 = vld [vmem:[%s7862_s20 + $0x174] ss:$8 sps:$4 sm:$0xff]  }
 0xa94   : > { %10367 = vst [vmem:[#allocation54_spill] sm:$0xff] %v9386_v54  ;;  %5261 = vmatpush1.bf16.msra.mxu0 %v7126_v39  ;;  %7407 = vtanh.f32 %v4057_v0  ;;  %v3994_v11 = vadd.f32 %v3930_v13, %v9341_v57  ;;  %v3811_v48 = vmul.f32 %v9386_v54, %v9386_v54  ;;  %v3873_v16 = vmul.f32 %v3809_v55, %v9381_v59 }
 0xa95   : > { %5262 = vmatprep.subr.bf16.mxu0 %v7131_v62  ;;  %v4059_v43 = vmul.f32 0.7978846, %v3995_v2  ;;  %v9400_v39 = vpop.f32.mrb[44].mxu0  ;;  %v9402_v36 = vpop.f32.mrb[108].mxu1  ;;  %v3932_v31 = vmul.f32 0.044715, %v3868_v38  ;;  %v3810_v41 = vmul.f32 %v9394_v5, %v9394_v5  ;;  %v9409_v62 = vadd.f32 %v9282_v3, %v8899_v22 }
 0xa96   : > { %v9411_v15 = vpop.f32.mrb[45].mxu0  ;;  %v9413_v0 = vpop.f32.mrb[109].mxu1  ;;  %v10368_v52 = vpack.c.bf16 %v9313_v21, %v9261_v25  ;;  %v4058_v2 = vmul.f32 0.7978846, %v3994_v11  ;;  %v3875_v13 = vmul.f32 %v3811_v48, %v9386_v54  ;;  %v9421_v38 = vadd.f32 %v9293_v45, %v8885_v53  ;;  %v7132_v25 = vld [vmem:[%s7862_s20 + $0x170] ss:$8 sps:$4 sm:$0xff]  }
 0xa97   : > { %7409 = vtanh.f32 %v4059_v43  ;;  %v9423_v55 = vpop.f32.mrb[46].mxu0  ;;  %v9425_v3 = vpop.f32.mrb[110].mxu1  ;;  %v10369_v57 = vpack.c.bf16 %v9285_v23, %v9273_v27  ;;  %v3996_v21 = vadd.f32 %v3932_v31, %v9370_v8  ;;  %v3937_v43 = vmul.f32 0.044715, %v3873_v16 }
 0xa98   : > { %5240 = vmatmul.mubr.bf16.gmra.mrb[60].mxu0 %v10368_v52  ;;  %v3874_v11 = vmul.f32 %v3810_v41, %v9394_v5  ;;  %v3812_v45 = vmul.f32 %v9409_v62, %v9409_v62  ;;  %v9435_v48 = vpop.f32.mrb[47].mxu0  ;;  %v9437_v52 = vpop.f32.mrb[111].mxu1  ;;  %7411 = vtanh.f32 %v4058_v2  ;;  %v3939_v6 = vmul.f32 0.044715, %v3875_v13 }
 0xa99   : > { %5263 = vmatpush1.bf16.msra.mxu0 %v7129_v18  ;;  %5282 = vmatprep.mubr.bf16.mxu0 %v10369_v57  ;;  %v7137_v18 = vld [vmem:[%s7862_s20 + $0x184] ss:$8 sps:$4 sm:$0xff]   ;;  %v3817_v27 = vmul.f32 %v9421_v38, %v9421_v38  ;;  %v9444_v23 = vadd.f32 %v9295_v4, %v8887_v17  ;;  %v7400_v57 = vpop.eup %7399  ;;  %v4060_v31 = vmul.f32 0.7978846, %v3996_v21  ;;  %v4001_v16 = vadd.f32 %v3937_v43, %v9381_v59 }
 0xa9a   : > { %5264 = vmatprep.subr.bf16.mxu0 %v7134_v14  ;;  %v3938_v41 = vmul.f32 0.044715, %v3874_v11  ;;  %v3876_v8 = vmul.f32 %v3812_v45, %v9409_v62  ;;  %v4177_v49 = vadd.f32 1.0, %v7400_v57  ;;  %v7135_v14 = vld [vmem:[%s7862_s20 + $0x180] ss:$8 sps:$4 sm:$0xff]   ;;  %v4003_v2 = vadd.f32 %v3939_v6, %v9386_v54 }
 0xa9b   : > { %v3881_v13 = vmul.f32 %v3817_v27, %v9421_v38  ;;  %v3819_v47 = vmul.f32 %v9444_v23, %v9444_v23  ;;  %v7402_v30 = vpop.eup %7401  ;;  %7413 = vtanh.f32 %v4060_v31  ;;  %v4065_v4 = vmul.f32 0.7978846, %v4001_v16 }
 0xa9c   : > { %v4002_v21 = vadd.f32 %v3938_v41, %v9394_v5  ;;  %v3940_v43 = vmul.f32 0.044715, %v3876_v8  ;;  %v9455_v11 = vpop.eup %7403  ;;  %v4241_v45 = vmul.f32 0.5, %v4177_v49  ;;  %v4179_v57 = vadd.f32 1.0, %v7402_v30  ;;  %v7138_v49 = vld [vmem:[%s7862_s20 + $0x190] ss:$8 sps:$4 sm:$0xff]  }
 0xa9d   : > { %5265 = vmatpush1.bf16.msra.mxu0 %v7132_v25  ;;  %v4067_v6 = vmul.f32 0.7978846, %v4003_v2  ;;  %v3945_v54 = vmul.f32 0.044715, %v3881_v13  ;;  %v9457_v27 = vpop.eup %7405  ;;  %7415 = vtanh.f32 %v4065_v4  ;;  %v3883_v31 = vmul.f32 %v3819_v47, %v9444_v23 }
 0xa9e   : > { %5266 = vmatprep.subr.bf16.mxu0 %v7137_v18  ;;  %v4066_v59 = vmul.f32 0.7978846, %v4002_v21  ;;  %v4004_v25 = vadd.f32 %v3940_v43, %v9409_v62  ;;  %v7408_v16 = vpop.eup %7407  ;;  %v9462_v41 = vmul.f32 %v4241_v45, %v9255_v51  ;;  %v4243_v8 = vmul.f32 0.5, %v4179_v57 }
 0xa9f   : > { %7417 = vtanh.f32 %v4067_v6  ;;  %v4009_v30 = vadd.f32 %v3945_v54, %v9421_v38  ;;  %v4185_v18 = vadd.f32 1.0, %v7408_v16  ;;  %v3947_v13 = vmul.f32 0.044715, %v3883_v31  ;;  %v7143_v54 = vld [vmem:[%s7862_s20 + $0x1a4] ss:$8 sps:$4 sm:$0xff]  }
 0xaa0   : > { %10370 = vst [vmem:[#allocation55_spill] sm:$0xff] %v9462_v41  ;;  %7419 = vtanh.f32 %v4066_v59  ;;  %v4068_v2 = vmul.f32 0.7978846, %v4004_v25  ;;  %v9467_v21 = vmul.f32 %v4243_v8, %v9278_v1  ;;  %v9471_v51 = vadd.f32 %v9305_v26, %v8897_v7  ;;  %v7141_v31 = vld [vmem:[%s7862_s20 + $0x1a0] ss:$8 sps:$4 sm:$0xff]  }
 0xaa1   : > { %5267 = vmatpush1.bf16.msra.mxu0 %v7135_v14  ;;  %v7410_v4 = vpop.eup %7409  ;;  %v4073_v47 = vmul.f32 0.7978846, %v4009_v30  ;;  %v9475_v43 = vadd.f32 %v9307_v9, %v8899_v22  ;;  %v4249_v14 = vmul.f32 0.5, %v4185_v18  ;;  %v4011_v45 = vadd.f32 %v3947_v13, %v9444_v23  ;;  %v7146_v18 = vld [vmem:[%s7862_s20 + $0x1b4] ss:$8 sps:$4 sm:$0xff]  }
 0xaa2   : > { %10371 = vst [vmem:[#allocation56_spill] sm:$0xff] %v9467_v21  ;;  %5268 = vmatprep.subr.bf16.mxu0 %v7140_v42  ;;  %v4187_v59 = vadd.f32 1.0, %v7410_v4  ;;  %7421 = vtanh.f32 %v4068_v2  ;;  %v9479_v1 = vpop.eup %7411  ;;  %v3818_v42 = vmul.f32 %v9471_v51, %v9471_v51  ;;  %v9487_v9 = vadd.f32 %v9343_v60, %v8885_v53 }
 0xaa3   : > { %7423 = vtanh.f32 %v4073_v47  ;;  %v3820_v26 = vmul.f32 %v9475_v43, %v9475_v43  ;;  %v9490_v57 = vmul.f32 %v4249_v14, %v9303_v10  ;;  %v4075_v25 = vmul.f32 0.7978846, %v4011_v45  ;;  %v7144_v45 = vld [vmem:[%s7862_s20 + $0x1b0] ss:$8 sps:$4 sm:$0xff]  }
 0xaa4   : > { %v4251_v6 = vmul.f32 0.5, %v4187_v59  ;;  %v9495_v16 = vadd.f32 %v9345_v32, %v8887_v17  ;;  %v3882_v8 = vmul.f32 %v3818_v42, %v9471_v51  ;;  %v3825_v60 = vmul.f32 %v9487_v9, %v9487_v9 }
 0xaa5   : > { %10372 = vst [vmem:[#allocation57_spill] sm:$0xff] %v9490_v57  ;;  %5269 = vmatpush1.bf16.msra.mxu0 %v7138_v49  ;;  %v3884_v30 = vmul.f32 %v3820_v26, %v9475_v43  ;;  %v9504_v10 = vadd.f32 %v9349_v12, %v8897_v7  ;;  %v9506_v49 = vpop.eup %7413  ;;  %7425 = vtanh.f32 %v4075_v25  ;;  %v9526_v42 = vadd.f32 %v9351_v33, %v8899_v22 }
 0xaa6   : > { %10373 = vst [vmem:[#allocation58_spill] sm:$0xff] %v9495_v16  ;;  %5270 = vmatprep.subr.bf16.mxu0 %v7143_v54  ;;  %v9511_v2 = vmul.f32 %v4251_v6, %v9330_v19  ;;  %v3827_v13 = vmul.f32 %v9495_v16, %v9495_v16  ;;  %v3946_v4 = vmul.f32 0.044715, %v3882_v8  ;;  %v3889_v54 = vmul.f32 %v3825_v60, %v9487_v9  ;;  %v7149_v60 = vld [vmem:[%s7862_s20 + $0x1c4] ss:$8 sps:$4 sm:$0xff]  }
 0xaa7   : > { %v3948_v47 = vmul.f32 0.044715, %v3884_v30  ;;  %v3826_v12 = vmul.f32 %v9504_v10, %v9504_v10  ;;  %v9518_v14 = vpop.eup %7415  ;;  %10375 = vst [vmem:[#allocation60_spill] sm:$0xff] %v9526_v42  ;;  %v9530_v26 = vadd.f32 %v9362_v34, %v8885_v53  ;;  %v3828_v59 = vmul.f32 %v9526_v42, %v9526_v42 }
 0xaa8   : > { %10374 = vst [vmem:[#allocation59_spill] sm:$0xff] %v9511_v2  ;;  %v3891_v19 = vmul.f32 %v3827_v13, %v9495_v16  ;;  %v4010_v25 = vadd.f32 %v3946_v4, %v9471_v51  ;;  %v3953_v30 = vmul.f32 0.044715, %v3889_v54  ;;  %v9546_v4 = vadd.f32 %v9364_v37, %v8887_v17  ;;  %v7147_v37 = vld [vmem:[%s7862_s20 + $0x1c0] ss:$8 sps:$4 sm:$0xff]  }
 0xaa9   : > { %5271 = vmatpush1.bf16.msra.mxu0 %v7141_v31  ;;  %v9532_v6 = vpop.eup %7417  ;;  %v4012_v8 = vadd.f32 %v3948_v47, %v9475_v43  ;;  %v3890_v31 = vmul.f32 %v3826_v12, %v9504_v10  ;;  %v3833_v34 = vmul.f32 %v9530_v26, %v9530_v26  ;;  %v3892_v21 = vmul.f32 %v3828_v59, %v9526_v42  ;;  %v7152_v59 = vld [vmem:[%s7862_s20 + $0x1d4] ss:$8 sps:$4 sm:$0xff]  }
 0xaaa   : > { %5272 = vmatprep.subr.bf16.mxu0 %v7146_v18  ;;  %v9538_v13 = vpop.eup %7419  ;;  %v3955_v33 = vmul.f32 0.044715, %v3891_v19  ;;  %10376 = vst [vmem:[#allocation61_spill] sm:$0xff] %v9546_v4  ;;  %v4074_v47 = vmul.f32 0.7978846, %v4010_v25  ;;  %v4017_v18 = vadd.f32 %v3953_v30, %v9487_v9  ;;  %v3835_v41 = vmul.f32 %v9546_v4, %v9546_v4 }
 0xaab   : > { %v4076_v54 = vmul.f32 0.7978846, %v4012_v8  ;;  %v3954_v12 = vmul.f32 0.044715, %v3890_v31  ;;  %v3897_v2 = vmul.f32 %v3833_v34, %v9530_v26  ;;  %v9562_v30 = vadd.f32 %v9372_v63, %v8897_v7 }
 0xaac   : > { %v9549_v32 = vpop.eup %7421  ;;  %v4019_v19 = vadd.f32 %v3955_v33, %v9495_v16  ;;  %7427 = vtanh.f32 %v4074_v47  ;;  %v4081_v25 = vmul.f32 0.7978846, %v4017_v18  ;;  %v3956_v31 = vmul.f32 0.044715, %v3892_v21  ;;  %v7150_v21 = vld [vmem:[%s7862_s20 + $0x1d0] ss:$8 sps:$4 sm:$0xff]  }
 0xaad   : > { %5273 = vmatpush1.bf16.msra.mxu0 %v7144_v45  ;;  %v9557_v57 = vpop.eup %7423  ;;  %v4018_v8 = vadd.f32 %v3954_v12, %v9504_v10  ;;  %7429 = vtanh.f32 %v4076_v54  ;;  %v3961_v33 = vmul.f32 0.044715, %v3897_v2  ;;  %v3899_v16 = vmul.f32 %v3835_v41, %v9546_v4 }
 0xaae   : > { %5274 = vmatprep.subr.bf16.mxu0 %v7149_v60  ;;  %v4083_v45 = vmul.f32 0.7978846, %v4019_v19  ;;  %7431 = vtanh.f32 %v4081_v25  ;;  %v3834_v47 = vmul.f32 %v9562_v30, %v9562_v30  ;;  %v4020_v63 = vadd.f32 %v3956_v31, %v9526_v42  ;;  %v7155_v19 = vld [vmem:[%s7862_s20 + $0x1e4] ss:$8 sps:$4 sm:$0xff]  }
 0xaaf   : > { %v4082_v34 = vmul.f32 0.7978846, %v4018_v8  ;;  %v9568_v18 = vpop.eup %7425  ;;  %v4025_v60 = vadd.f32 %v3961_v33, %v9530_v26  ;;  %v9574_v54 = vadd.f32 %v9374_v50, %v8899_v22  ;;  %v3963_v2 = vmul.f32 0.044715, %v3899_v16 }
 0xab0   : > { %7433 = vtanh.f32 %v4083_v45  ;;  %v3898_v41 = vmul.f32 %v3834_v47, %v9562_v30  ;;  %v9580_v12 = vadd.f32 %v9400_v39, %v8885_v53  ;;  %v4084_v25 = vmul.f32 0.7978846, %v4020_v63 }
 0xab1   : > { %5275 = vmatpush1.bf16.msra.mxu0 %v7147_v37  ;;  %7435 = vtanh.f32 %v4082_v34  ;;  %v4089_v8 = vmul.f32 0.7978846, %v4025_v60  ;;  %v3836_v45 = vmul.f32 %v9574_v54, %v9574_v54  ;;  %v9587_v50 = vadd.f32 %v9402_v36, %v8887_v17  ;;  %v7153_v34 = vld [vmem:[%s7862_s20 + $0x1e0] ss:$8 sps:$4 sm:$0xff]  }
 0xab2   : > { %5276 = vmatprep.subr.bf16.mxu0 %v7152_v59  ;;  %v4027_v16 = vadd.f32 %v3963_v2, %v9546_v4  ;;  %v3962_v37 = vmul.f32 0.044715, %v3898_v41  ;;  %v3841_v39 = vmul.f32 %v9580_v12, %v9580_v12  ;;  %v9594_v59 = vadd.f32 %v9411_v15, %v8897_v7  ;;  %v7158_v15 = vld [vmem:[%s7862_s20 + $0x1f4] ss:$8 sps:$4 sm:$0xff]   ;;  %v7156_v4 = vld [vmem:[%s7862_s20 + $0x1f0] ss:$8 sps:$4 sm:$0xff]  }
 0xab3   : > { %10377 = vst [vmem:[#allocation62_spill] sm:$0xff] %v9587_v50  ;;  %7437 = vtanh.f32 %v4084_v25  ;;  %v3900_v31 = vmul.f32 %v3836_v45, %v9574_v54  ;;  %v3843_v33 = vmul.f32 %v9587_v50, %v9587_v50  ;;  %v9601_v36 = vadd.f32 %v9413_v0, %v8899_v22 }
 0xab4   : > { %7439 = vtanh.f32 %v4089_v8  ;;  %v4091_v47 = vmul.f32 0.7978846, %v4027_v16  ;;  %v4026_v63 = vadd.f32 %v3962_v37, %v9562_v30  ;;  %v3905_v60 = vmul.f32 %v3841_v39, %v9580_v12 }
 0xab5   : > { %10378 = vst [vmem:[#allocation63_spill] sm:$0xff] %v9601_v36  ;;  %5277 = vmatpush1.bf16.msra.mxu0 %v7150_v21  ;;  %v3964_v2 = vmul.f32 0.044715, %v3900_v31  ;;  %v3907_v41 = vmul.f32 %v3843_v33, %v9587_v50  ;;  %v3842_v25 = vmul.f32 %v9594_v59, %v9594_v59  ;;  %v3844_v0 = vmul.f32 %v9601_v36, %v9601_v36 }
 0xab6   : > { %5278 = vmatprep.subr.bf16.mxu0 %v7155_v19  ;;  %v9612_v21 = vpop.eup %7427  ;;  %7441 = vtanh.f32 %v4091_v47  ;;  %v4090_v8 = vmul.f32 0.7978846, %v4026_v63  ;;  %v3969_v45 = vmul.f32 0.044715, %v3905_v60  ;;  %v9616_v19 = vadd.f32 %v9423_v55, %v8885_v53  ;;  %v7161_v63 = vld [vmem:[%s7862_s20 + $0x204] ss:$8 sps:$4 sm:$0xff]  }
 0xab7   : > { %v9618_v16 = vpop.eup %7429  ;;  %v4028_v37 = vadd.f32 %v3964_v2, %v9574_v54  ;;  %v3971_v39 = vmul.f32 0.044715, %v3907_v41  ;;  %v3906_v31 = vmul.f32 %v3842_v25, %v9594_v59  ;;  %v3908_v33 = vmul.f32 %v3844_v0, %v9601_v36 }
 0xab8   : > { %v9624_v42 = vpop.eup %7431  ;;  %7443 = vtanh.f32 %v4090_v8  ;;  %v4033_v47 = vadd.f32 %v3969_v45, %v9580_v12  ;;  %v3849_v53 = vmul.f32 %v9616_v19, %v9616_v19  ;;  %v9631_v55 = vadd.f32 %v9425_v3, %v8887_v17 }
 0xab9   : > { %5279 = vmatpush1.bf16.msra.mxu0 %v7153_v34  ;;  %v4092_v2 = vmul.f32 0.7978846, %v4028_v37  ;;  %v4035_v34 = vadd.f32 %v3971_v39, %v9587_v50  ;;  %v3970_v41 = vmul.f32 0.044715, %v3906_v31  ;;  %v3972_v25 = vmul.f32 0.044715, %v3908_v33 }
 0xaba   : > { %10379 = vst [vmem:[#allocation64_spill] sm:$0xff] %v9631_v55  ;;  %5280 = vmatprep.subr.bf16.mxu0 %v7158_v15  ;;  %v9634_v60 = vpop.eup %7433  ;;  %v4097_v8 = vmul.f32 0.7978846, %v4033_v47  ;;  %v3913_v45 = vmul.f32 %v3849_v53, %v9616_v19  ;;  %v3851_v17 = vmul.f32 %v9631_v55, %v9631_v55  ;;  %v9644_v3 = vadd.f32 %v9435_v48, %v8897_v7  ;;  %v7159_v31 = vld [vmem:[%s7862_s20 + $0x200] ss:$8 sps:$4 sm:$0xff]  }
 0xabb   : > { %v9637_v0 = vpop.eup %7435  ;;  %7445 = vtanh.f32 %v4092_v2  ;;  %v4099_v15 = vmul.f32 0.7978846, %v4035_v34  ;;  %v4034_v37 = vadd.f32 %v3970_v41, %v9594_v59  ;;  %v4036_v39 = vadd.f32 %v3972_v25, %v9601_v36  ;;  %v7164_v50 = vld [vmem:[%s7862_s20 + $0x214] ss:$8 sps:$4 sm:$0xff]  }
 0xabc   : > { %7447 = vtanh.f32 %v4097_v8  ;;  %v3977_v33 = vmul.f32 0.044715, %v3913_v45  ;;  %v3915_v47 = vmul.f32 %v3851_v17, %v9631_v55  ;;  %v3850_v53 = vmul.f32 %v9644_v3, %v9644_v3 }
 0xabd   : > { %5281 = vmatpush1.bf16.msra.mxu0 %v7156_v4  ;;  %v9653_v7 = vpop.eup %7437  ;;  %7449 = vtanh.f32 %v4099_v15  ;;  %v4098_v48 = vmul.f32 0.7978846, %v4034_v37  ;;  %v4100_v2 = vmul.f32 0.7978846, %v4036_v39  ;;  %v9657_v34 = vadd.f32 %v9437_v52, %v8899_v22  ;;  %v7162_v52 = vld [vmem:[%s7862_s20 + $0x210] ss:$8 sps:$4 sm:$0xff]  }
 0xabe   : > { %5323 = vmatprep.subr.bf16.mxu0 %v7161_v63  ;;  %v9659_v4 = vpop.eup %7439  ;;  %v4041_v41 = vadd.f32 %v3977_v33, %v9616_v19  ;;  %v3979_v25 = vmul.f32 0.044715, %v3915_v47  ;;  %v3914_v8 = vmul.f32 %v3850_v53, %v9644_v3  ;;  %v10381_v63 = vpack.c.bf16 %v9069_v44, %v9044_v28  ;;  %v7167_v44 = vld [vmem:[%s7862_s20 + $0x224] ss:$8 sps:$4 sm:$0xff]  }
 0xabf   : > { %10380 = vst [vmem:[#allocation65_spill] sm:$0xff] %v9657_v34  ;;  %v4192_v45 = vadd.f32 1.0, %v9104_v35  ;;  %7451 = vtanh.f32 %v4098_v48  ;;  %v3852_v17 = vmul.f32 %v9657_v34, %v9657_v34  ;;  %v4200_v22 = vadd.f32 1.0, %v9156_v29 }
 0xac0   : > { %5283 = vmatmul.mubr.bf16.vlgmr.msra.gmra.mrb[48].mxu0 %v10381_v63  ;;  %v4191_v15 = vadd.f32 1.0, %v9086_v58  ;;  %v9672_v37 = vpop.eup %7441  ;;  %7453 = vtanh.f32 %v4100_v2  ;;  %v4105_v39 = vmul.f32 0.7978846, %v4041_v41  ;;  %v4043_v33 = vadd.f32 %v3979_v25, %v9631_v55  ;;  %v7165_v63 = vld [vmem:[%s7862_s20 + $0x220] ss:$8 sps:$4 sm:$0xff]  }
 0xac1   : > { %5324 = vmatpush1.bf16.msra.mxu0 %v7159_v31  ;;  %v3978_v28 = vmul.f32 0.044715, %v3914_v8  ;;  %v3916_v35 = vmul.f32 %v3852_v17, %v9657_v34  ;;  %v4256_v47 = vmul.f32 0.5, %v4192_v45  ;;  %v4264_v53 = vmul.f32 0.5, %v4200_v22  ;;  %v10382_v17 = vld [vmem:[#allocation34_spill] sm:$0xff] }
 0xac2   : > { %5325 = vmatprep.subr.bf16.mxu0 %v7164_v50  ;;  %v4199_v29 = vadd.f32 1.0, %v9116_v56  ;;  %v9678_v31 = vpop.eup %7443  ;;  %7455 = vtanh.f32 %v4105_v39  ;;  %v4107_v58 = vmul.f32 0.7978846, %v4043_v33  ;;  %v4255_v2 = vmul.f32 0.5, %v4191_v15  ;;  %v7170_v39 = vld [vmem:[%s7862_s20 + $0x234] ss:$8 sps:$4 sm:$0xff]  }
 0xac3   : > { %v4042_v48 = vadd.f32 %v3978_v28, %v9644_v3  ;;  %v3980_v41 = vmul.f32 0.044715, %v3916_v35  ;;  %v4320_v25 = vmul.f32 %v4256_v47, %v8957_v20  ;;  %v4328_v50 = vmul.f32 %v4264_v53, %v9003_v24  ;;  %v10383_v20 = vld [vmem:[#allocation35_spill] sm:$0xff]  ;;  %v10384_v53 = vld [vmem:[#allocation44_spill] sm:$0xff] }
 0xac4   : > { %v4263_v8 = vmul.f32 0.5, %v4199_v29  ;;  %7457 = vtanh.f32 %v4107_v58  ;;  %v4319_v56 = vmul.f32 %v4255_v2, %v10382_v17  ;;  %v4208_v22 = vadd.f32 1.0, %v9195_v61 }
 0xac5   : > { %5326 = vmatpush1.bf16.msra.mxu0 %v7162_v52  ;;  %v4106_v45 = vmul.f32 0.7978846, %v4042_v48  ;;  %v9687_v33 = vpop.eup %7445  ;;  %v4044_v15 = vadd.f32 %v3980_v41, %v9657_v34  ;;  %v4376_v28 = vpack.c.bf16 %v4328_v50, %v4320_v25  ;;  %v4216_v24 = vadd.f32 1.0, %v9214_v40  ;;  %v7168_v41 = vld [vmem:[%s7862_s20 + $0x230] ss:$8 sps:$4 sm:$0xff]   ;;  %v10387_v40 = vld [vmem:[#allocation37_spill] sm:$0xff] }
 0xac6   : > { %5327 = vmatprep.subr.bf16.mxu0 %v7167_v44  ;;  %v4327_v35 = vmul.f32 %v4263_v8, %v10383_v20  ;;  %v9692_v52 = vpop.eup %7447  ;;  %v4272_v47 = vmul.f32 0.5, %v4208_v22  ;;  %v4207_v44 = vadd.f32 1.0, %v9183_v46  ;;  %v4215_v61 = vadd.f32 1.0, %v10384_v53  ;;  %v10386_v25 = vld [vmem:[#allocation46_spill] sm:$0xff]  ;;  %v7173_v22 = vld [vmem:[%s7862_s20 + $0x244] ss:$8 sps:$4 sm:$0xff]  }
 0xac7   : > { %7459 = vtanh.f32 %v4106_v45  ;;  %v9696_v29 = vpop.eup %7449  ;;  %v4108_v58 = vmul.f32 0.7978846, %v4044_v15  ;;  %5292 = vmatprep.mubr.bf16.mxu0 %v4376_v28  ;;  %v4280_v2 = vmul.f32 0.5, %v4216_v24  ;;  %v4224_v50 = vadd.f32 1.0, %v10386_v25  ;;  %v10388_v46 = vld [vmem:[#allocation50_spill] sm:$0xff]  ;;  %v10389_v15 = vld [vmem:[#allocation39_spill] sm:$0xff] }
 0xac8   : > { %10385 = vst [vmem:[#allocation34_spill] sm:$0xff] %v9696_v29  ;;  %v4375_v48 = vpack.c.bf16 %v4327_v35, %v4319_v56  ;;  %v4336_v8 = vmul.f32 %v4272_v47, %v10387_v40  ;;  %v4271_v45 = vmul.f32 0.5, %v4207_v44  ;;  %v4279_v17 = vmul.f32 0.5, %v4215_v61  ;;  %v10391_v47 = vld [vmem:[#allocation36_spill] sm:$0xff]  ;;  %v10392_v44 = vld [vmem:[#allocation38_spill] sm:$0xff]  ;;  %v10393_v40 = vld [vmem:[#allocation47_spill] sm:$0xff] }
 0xac9   : > { %5328 = vmatpush1.bf16.msra.mxu0 %v7165_v63  ;;  %v4232_v20 = vadd.f32 1.0, %v10388_v46  ;;  %v9703_v53 = vpop.eup %7451  ;;  %7461 = vtanh.f32 %v4108_v58  ;;  %v4344_v56 = vmul.f32 %v4280_v2, %v10389_v15  ;;  %v4288_v28 = vmul.f32 0.5, %v4224_v50  ;;  %v10390_v63 = vld [vmem:[#allocation45_spill] sm:$0xff] }
 0xaca   : > { %5329 = vmatprep.subr.bf16.mxu0 %v7170_v39  ;;  %5293 = vmatmul.mubr.bf16.gmra.mrb[52].mxu0 %v4375_v48  ;;  %v4223_v35 = vadd.f32 1.0, %v10390_v63  ;;  %v9707_v24 = vpop.eup %7453  ;;  %v4335_v39 = vmul.f32 %v4271_v45, %v10391_v47  ;;  %v4343_v61 = vmul.f32 %v4279_v17, %v10392_v44  ;;  %v4231_v55 = vadd.f32 1.0, %v10393_v40  ;;  %v7171_v34 = vld [vmem:[%s7862_s20 + $0x240] ss:$8 sps:$4 sm:$0xff]   ;;  %v10395_v63 = vld [vmem:[#allocation43_spill] sm:$0xff] }
 0xacb   : > { %v4296_v25 = vmul.f32 0.5, %v4232_v20  ;;  %v4384_v46 = vpack.c.bf16 %v4344_v56, %v4336_v8  ;;  %v10394_v58 = vld [vmem:[#allocation41_spill] sm:$0xff]  ;;  %v4178_v2 = vadd.f32 1.0, %v9455_v11  ;;  %v7176_v45 = vld [vmem:[%s7862_s20 + $0x254] ss:$8 sps:$4 sm:$0xff]   ;;  %v4186_v17 = vadd.f32 1.0, %v9479_v1 }
 0xacc   : > { %v4352_v48 = vmul.f32 %v4288_v28, %v10394_v58  ;;  %v4287_v36 = vmul.f32 0.5, %v4223_v35  ;;  %v7456_v50 = vpop.eup %7455  ;;  %v4383_v15 = vpack.c.bf16 %v4343_v61, %v4335_v39  ;;  %v4295_v47 = vmul.f32 0.5, %v4231_v55  ;;  %v10396_v20 = vld [vmem:[#allocation40_spill] sm:$0xff]  ;;  %v10397_v35 = vld [vmem:[#allocation42_spill] sm:$0xff] }
 0xacd   : > { %5330 = vmatpush1.bf16.msra.mxu0 %v7168_v41  ;;  %v4360_v29 = vmul.f32 %v4296_v25, %v10395_v63  ;;  %5302 = vmatprep.mubr.bf16.mxu0 %v4384_v46  ;;  %v4242_v41 = vmul.f32 0.5, %v4178_v2  ;;  %v4194_v56 = vadd.f32 1.0, %v9538_v13  ;;  %v4202_v11 = vadd.f32 1.0, %v9612_v21  ;;  %v7174_v1 = vld [vmem:[%s7862_s20 + $0x250] ss:$8 sps:$4 sm:$0xff]   ;;  %v10398_v61 = vld [vmem:[#allocation48_spill] sm:$0xff] }
 0xace   : > { %5331 = vmatprep.subr.bf16.mxu0 %v7173_v22  ;;  %v9719_v8 = vmul.f32 %v4287_v36, %v10396_v20  ;;  %v9723_v28 = vpop.eup %7457  ;;  %v4359_v39 = vmul.f32 %v4295_v47, %v10397_v35  ;;  %v4250_v44 = vmul.f32 0.5, %v4186_v17  ;;  %v4193_v55 = vadd.f32 1.0, %v9518_v14  ;;  %v7179_v58 = vld [vmem:[%s7862_s20 + $0x264] ss:$8 sps:$4 sm:$0xff]   ;;  %v10399_v2 = vld [vmem:[#allocation51_spill] sm:$0xff] }
 0xacf   : > { %v4392_v22 = vpack.c.bf16 %v4360_v29, %v4352_v48  ;;  %v4306_v25 = vmul.f32 %v4242_v41, %v10398_v61  ;;  %v4258_v36 = vmul.f32 0.5, %v4194_v56  ;;  %v4266_v40 = vmul.f32 0.5, %v4202_v11  ;;  %v10400_v17 = vld [vmem:[#allocation53_spill] sm:$0xff]  ;;  %v7182_v11 = vld [vmem:[%s7862_s20 + $0x274] ss:$8 sps:$4 sm:$0xff]  }
 0xad0   : > { %v4201_v46 = vadd.f32 1.0, %v9557_v57  ;;  %v4391_v21 = vpack.c.bf16 %v4359_v39, %v9719_v8  ;;  %v4314_v29 = vmul.f32 %v4250_v44, %v10399_v2  ;;  %v4257_v48 = vmul.f32 0.5, %v4193_v55 }
 0xad1   : > { %5332 = vmatpush1.bf16.msra.mxu0 %v7171_v34  ;;  %v7460_v13 = vpop.eup %7459  ;;  %v4210_v63 = vadd.f32 1.0, %v9637_v0  ;;  %v9735_v14 = vmul.f32 %v4258_v36, %v9394_v5  ;;  %v9738_v34 = vmul.f32 %v4266_v40, %v9471_v51  ;;  %v4209_v41 = vadd.f32 1.0, %v9624_v42  ;;  %v7177_v5 = vld [vmem:[%s7862_s20 + $0x260] ss:$8 sps:$4 sm:$0xff]   ;;  %v7180_v36 = vld [vmem:[%s7862_s20 + $0x270] ss:$8 sps:$4 sm:$0xff]  }
 0xad2   : > { %5333 = vmatprep.subr.bf16.mxu0 %v7176_v45  ;;  %5303 = vmatmul.mubr.bf16.gmra.mrb[56].mxu0 %v4383_v15  ;;  %v4265_v57 = vmul.f32 0.5, %v4201_v46  ;;  %v4218_v45 = vadd.f32 1.0, %v9678_v31  ;;  %v4370_v47 = vpack.c.bf16 %v4314_v29, %v4306_v25  ;;  %v9742_v20 = vmul.f32 %v4257_v48, %v10400_v17  ;;  %v10402_v17 = vld [vmem:[#allocation52_spill] sm:$0xff] }
 0xad3   : > { %5312 = vmatprep.mubr.bf16.mxu0 %v4392_v22  ;;  %v4274_v8 = vmul.f32 0.5, %v4210_v63  ;;  %v9745_v0 = vpop.eup %7461  ;;  %v4378_v51 = vpack.c.bf16 %v9738_v34, %v9735_v14  ;;  %v4217_v31 = vadd.f32 1.0, %v9659_v4  ;;  %v4273_v42 = vmul.f32 0.5, %v4209_v41  ;;  %v10401_v63 = vld [vmem:[#allocation49_spill] sm:$0xff]  ;;  %v7216_v14 = vld [vmem:[%s7862_s20 + $0x330] ss:$8 sps:$4 sm:$0xff]  }
 0xad4   : > { %v9751_v15 = vmul.f32 %v4265_v57, %v9421_v38  ;;  %v4282_v56 = vmul.f32 0.5, %v4218_v45  ;;  %v4226_v35 = vadd.f32 1.0, %v9703_v53  ;;  %v4234_v39 = vadd.f32 1.0, %v7460_v13  ;;  %v7185_v13 = vld [vmem:[%s7862_s20 + $0x284] ss:$8 sps:$4 sm:$0xff]  }
 0xad5   : > { %5334 = vmatpush1.bf16.msra.mxu0 %v7174_v1  ;;  %v9756_v22 = vmul.f32 %v4274_v8, %v9504_v10  ;;  %v4281_v55 = vmul.f32 0.5, %v4217_v31  ;;  %v4225_v4 = vadd.f32 1.0, %v9692_v52  ;;  %v9766_v1 = vmul.f32 %v4273_v42, %v9487_v9  ;;  %v7221_v34 = vld [vmem:[%s7862_s20 + $0x344] ss:$8 sps:$4 sm:$0xff]  }
 0xad6   : > { %5335 = vmatprep.subr.bf16.mxu0 %v7179_v58  ;;  %v4377_v44 = vpack.c.bf16 %v9751_v15, %v9742_v20  ;;  %v9762_v38 = vmul.f32 %v4282_v56, %v9562_v30  ;;  %v4290_v61 = vmul.f32 0.5, %v4226_v35  ;;  %v4298_v10 = vmul.f32 0.5, %v4234_v39  ;;  %v7186_v39 = vld [vmem:[%s7862_s20 + $0x290] ss:$8 sps:$4 sm:$0xff]   ;;  %v7227_v15 = vld [vmem:[%s7862_s20 + $0x364] ss:$8 sps:$4 sm:$0xff]  }
 0xad7   : > { %v4233_v25 = vadd.f32 1.0, %v7456_v50  ;;  %v9772_v40 = vmul.f32 %v4281_v55, %v9530_v26  ;;  %v4289_v46 = vmul.f32 0.5, %v4225_v4  ;;  %v4180_v30 = vadd.f32 1.0, %v9457_v27  ;;  %v7222_v20 = vld [vmem:[%s7862_s20 + $0x350] ss:$8 sps:$4 sm:$0xff]  }
 0xad8   : > { %v4386_v53 = vpack.c.bf16 %v9762_v38, %v9756_v22  ;;  %v9777_v9 = vmul.f32 %v4290_v61, %v9594_v59  ;;  %v9780_v52 = vmul.f32 %v4298_v10, %v9644_v3  ;;  %v4188_v58 = vadd.f32 1.0, %v9506_v49  ;;  %v7191_v61 = vld [vmem:[%s7862_s20 + $0x2a4] ss:$8 sps:$4 sm:$0xff]   ;;  %v7225_v22 = vld [vmem:[%s7862_s20 + $0x360] ss:$8 sps:$4 sm:$0xff]  }
 0xad9   : > { %5336 = vmatpush1.bf16.msra.mxu0 %v7177_v5  ;;  %v4297_v50 = vmul.f32 0.5, %v4233_v25  ;;  %v4385_v26 = vpack.c.bf16 %v9772_v40, %v9766_v1  ;;  %v9786_v2 = vmul.f32 %v4289_v46, %v9580_v12  ;;  %v4244_v27 = vmul.f32 0.5, %v4180_v30  ;;  %v10404_v10 = vld [vmem:[#allocation60_spill] sm:$0xff]  ;;  %v7228_v38 = vld [vmem:[%s7862_s20 + $0x370] ss:$8 sps:$4 sm:$0xff]  }
 0xada   : > { %5337 = vmatprep.subr.bf16.mxu0 %v7182_v11  ;;  %5313 = vmatmul.mubr.bf16.gmra.mrb[60].mxu0 %v4391_v21  ;;  %v4196_v29 = vadd.f32 1.0, %v9549_v32  ;;  %v4394_v59 = vpack.c.bf16 %v9780_v52, %v9777_v9  ;;  %v4252_v48 = vmul.f32 0.5, %v4188_v58  ;;  %v4204_v49 = vadd.f32 1.0, %v9618_v16  ;;  %v7183_v21 = vld [vmem:[%s7862_s20 + $0x280] ss:$8 sps:$4 sm:$0xff]  }
 0xadb   : > { %5355 = vmatprep.mubr.bf16.mxu0 %v4370_v47  ;;  %v9792_v3 = vmul.f32 %v4297_v50, %v9616_v19  ;;  %v9797_v57 = vmul.f32 %v4244_v27, %v10401_v63  ;;  %v4195_v45 = vadd.f32 1.0, %v9532_v6  ;;  %v4203_v32 = vadd.f32 1.0, %v9568_v18  ;;  %v7188_v47 = vld [vmem:[%s7862_s20 + $0x294] ss:$8 sps:$4 sm:$0xff]   ;;  %v7233_v1 = vld [vmem:[%s7862_s20 + $0x384] ss:$8 sps:$4 sm:$0xff]  }
 0xadc   : > { %v4260_v12 = vmul.f32 0.5, %v4196_v29  ;;  %v9805_v8 = vmul.f32 %v4252_v48, %v10402_v17  ;;  %v4268_v16 = vmul.f32 0.5, %v4204_v49  ;;  %v4212_v41 = vadd.f32 1.0, %v9653_v7  ;;  %v10403_v7 = vld [vmem:[#allocation54_spill] sm:$0xff]  ;;  %v7189_v29 = vld [vmem:[%s7862_s20 + $0x2a0] ss:$8 sps:$4 sm:$0xff]  }
 0xadd   : > { %5338 = vmatpush1.bf16.msra.mxu0 %v7180_v36  ;;  %v4393_v19 = vpack.c.bf16 %v9792_v3, %v9786_v2  ;;  %v4259_v56 = vmul.f32 0.5, %v4195_v45  ;;  %v4267_v6 = vmul.f32 0.5, %v4203_v32  ;;  %v4220_v18 = vadd.f32 1.0, %v9687_v33  ;;  %v10405_v50 = vld [vmem:[#allocation34_spill] sm:$0xff]  ;;  %v10408_v32 = vld [vmem:[#allocation63_spill] sm:$0xff]  ;;  %v10409_v17 = vld [vmem:[#allocation65_spill] sm:$0xff] }
 0xade   : > { %5339 = vmatprep.subr.bf16.mxu0 %v7185_v13  ;;  %v9809_v5 = vmul.f32 %v4260_v12, %v9409_v62  ;;  %v4372_v31 = vpack.c.bf16 %v9805_v8, %v9797_v57  ;;  %v9815_v11 = vmul.f32 %v4268_v16, %v9475_v43  ;;  %v4276_v42 = vmul.f32 0.5, %v4212_v41  ;;  %v10406_v48 = vld [vmem:[#allocation58_spill] sm:$0xff]  ;;  %v7239_v52 = vld [vmem:[%s7862_s20 + $0x3a4] ss:$8 sps:$4 sm:$0xff]   ;;  %v7243_v57 = vld [vmem:[%s7862_s20 + $0x3c0] ss:$8 sps:$4 sm:$0xff]  }
 0xadf   : > { %v4211_v35 = vadd.f32 1.0, %v9634_v60  ;;  %v9820_v55 = vmul.f32 %v4259_v56, %v10403_v7  ;;  %v9823_v62 = vmul.f32 %v4267_v6, %v9444_v23  ;;  %v4284_v4 = vmul.f32 0.5, %v4220_v18  ;;  %v10410_v41 = vld [vmem:[#allocation62_spill] sm:$0xff]  ;;  %v10411_v6 = vld [vmem:[#allocation64_spill] sm:$0xff] }
 0xae0   : > { %v4219_v33 = vadd.f32 1.0, %v9672_v37  ;;  %v4380_v43 = vpack.c.bf16 %v9815_v11, %v9809_v5  ;;  %v9830_v25 = vmul.f32 %v4276_v42, %v10404_v10  ;;  %v4228_v36 = vadd.f32 1.0, %v9707_v24  ;;  %v7192_v42 = vld [vmem:[%s7862_s20 + $0x2b0] ss:$8 sps:$4 sm:$0xff]   ;;  %v7203_v10 = vld [vmem:[%s7862_s20 + $0x2e4] ss:$8 sps:$4 sm:$0xff]  }
 0xae1   : > { %5340 = vmatpush1.bf16.msra.mxu0 %v7183_v21  ;;  %v4275_v60 = vmul.f32 0.5, %v4211_v35  ;;  %v4379_v23 = vpack.c.bf16 %v9823_v62, %v9820_v55  ;;  %v9836_v46 = vmul.f32 %v4284_v4, %v9574_v54  ;;  %v4236_v37 = vadd.f32 1.0, %v9745_v0  ;;  %v10407_v21 = vld [vmem:[#allocation61_spill] sm:$0xff]  ;;  %v7194_v0 = vld [vmem:[%s7862_s20 + $0x2b4] ss:$8 sps:$4 sm:$0xff]   ;;  %v10418_v11 = vld [vmem:[#allocation16_spill] sm:$0xff] }
 0xae2   : > { %5341 = vmatprep.subr.bf16.mxu0 %v7188_v47  ;;  %v4283_v30 = vmul.f32 0.5, %v4219_v33  ;;  %v4292_v13 = vmul.f32 0.5, %v4228_v36  ;;  %v4227_v58 = vadd.f32 1.0, %v10405_v50  ;;  %v4235_v27 = vadd.f32 1.0, %v9723_v28  ;;  %v7195_v4 = vld [vmem:[%s7862_s20 + $0x2c0] ss:$8 sps:$4 sm:$0xff]  }
 0xae3   : > { %v4388_v24 = vpack.c.bf16 %v9836_v46, %v9830_v25  ;;  %v9845_v49 = vmul.f32 %v4275_v60, %v10406_v48  ;;  %v4300_v63 = vmul.f32 0.5, %v4236_v37  ;;  %v7200_v33 = vld [vmem:[%s7862_s20 + $0x2d4] ss:$8 sps:$4 sm:$0xff]   ;;  %v7201_v60 = vld [vmem:[%s7862_s20 + $0x2e0] ss:$8 sps:$4 sm:$0xff]  }
 0xae4   : > { %v9848_v54 = vmul.f32 %v4283_v30, %v10407_v21  ;;  %v4291_v12 = vmul.f32 0.5, %v4227_v58  ;;  %v4299_v28 = vmul.f32 0.5, %v4235_v27  ;;  %v9854_v47 = vmul.f32 %v4292_v13, %v10408_v32  ;;  %v7206_v36 = vld [vmem:[%s7862_s20 + $0x2f4] ss:$8 sps:$4 sm:$0xff]   ;;  %v7204_v30 = vld [vmem:[%s7862_s20 + $0x2f0] ss:$8 sps:$4 sm:$0xff]  }
 0xae5   : > { %5342 = vmatpush1.bf16.msra.mxu0 %v7186_v39  ;;  %v9857_v16 = vmul.f32 %v4300_v63, %v10409_v17  ;;  %v7197_v39 = vld [vmem:[%s7862_s20 + $0x2c4] ss:$8 sps:$4 sm:$0xff]   ;;  %v7207_v13 = vld [vmem:[%s7862_s20 + $0x300] ss:$8 sps:$4 sm:$0xff]   ;;  %v7212_v50 = vld [vmem:[%s7862_s20 + $0x314] ss:$8 sps:$4 sm:$0xff]  }
 0xae6   : > { %5343 = vmatprep.subr.bf16.mxu0 %v7191_v61  ;;  %v4387_v45 = vpack.c.bf16 %v9848_v54, %v9845_v49  ;;  %v9860_v56 = vmul.f32 %v4291_v12, %v10410_v41  ;;  %v9863_v18 = vmul.f32 %v4299_v28, %v10411_v6  ;;  %v7198_v61 = vld [vmem:[%s7862_s20 + $0x2d0] ss:$8 sps:$4 sm:$0xff]   ;;  %v7209_v37 = vld [vmem:[%s7862_s20 + $0x304] ss:$8 sps:$4 sm:$0xff]   ;;  %v7213_v63 = vld [vmem:[%s7862_s20 + $0x320] ss:$8 sps:$4 sm:$0xff]  }
 0xae7   : > { %v4396_v35 = vpack.c.bf16 %v9857_v16, %v9854_v47  ;;  %v10412_v58 = vld [vmem:[#allocation57_spill] sm:$0xff]  ;;  %v10413_v27 = vld [vmem:[#allocation55_spill] sm:$0xff]  ;;  %v10416_v6 = vld [vmem:[#allocation56_spill] sm:$0xff] }
 0xae8   : > { %v4395_v7 = vpack.c.bf16 %v9863_v18, %v9860_v56  ;;  %v7210_v48 = vld [vmem:[%s7862_s20 + $0x310] ss:$8 sps:$4 sm:$0xff]   ;;  %v7215_v21 = vld [vmem:[%s7862_s20 + $0x324] ss:$8 sps:$4 sm:$0xff]   ;;  %v7224_v12 = vld [vmem:[%s7862_s20 + $0x354] ss:$8 sps:$4 sm:$0xff]  }
 0xae9   : > { %5344 = vmatpush1.bf16.msra.mxu0 %v7189_v29  ;;  %v10414_v29 = vpack.c.bf16 %v10412_v58, %v10413_v27  ;;  %v7236_v40 = vld [vmem:[%s7862_s20 + $0x394] ss:$8 sps:$4 sm:$0xff]   ;;  %v7234_v9 = vld [vmem:[%s7862_s20 + $0x390] ss:$8 sps:$4 sm:$0xff]   ;;  %v7245_v3 = vld [vmem:[%s7862_s20 + $0x3c4] ss:$8 sps:$4 sm:$0xff]  }
 0xaea   : > { %5345 = vmatprep.subr.bf16.mxu0 %v7194_v0  ;;  %v7218_v0 = vld [vmem:[%s7862_s20 + $0x334] ss:$8 sps:$4 sm:$0xff]   ;;  %v7246_v8 = vld [vmem:[%s7862_s20 + $0x3d0] ss:$8 sps:$4 sm:$0xff]   ;;  %v7249_v28 = vld [vmem:[%s7862_s20 + $0x3e0] ss:$8 sps:$4 sm:$0xff]  }
 0xaeb   : > { %v7242_v2 = vld [vmem:[%s7862_s20 + $0x3b4] ss:$8 sps:$4 sm:$0xff]   ;;  %v7252_v17 = vld [vmem:[%s7862_s20 + $0x3f0] ss:$8 sps:$4 sm:$0xff]   ;;  %v4525_v5 = vld [vmem:[%s714_s2] sm:$0x3] }
 0xaec   : > { %v7254_v32 = vld [vmem:[%s7862_s20 + $0x3f4] ss:$8 sps:$4 sm:$0xff]   ;;  %v4530_v55 = vrot.slane %v4525_v5, %v10418_v11  ;;  %v10419_v62 = vld [vmem:[#allocation17_spill] sm:$0xff]  ;;  %v10420_v54 = vld [vmem:[#allocation20_spill] sm:$0xff] }
 0xaed   : > { %5346 = vmatpush1.bf16.msra.mxu0 %v7192_v42  ;;  %v10415_v41 = vld [vmem:[#allocation59_spill] sm:$0xff]  ;;  %v10421_v56 = vld [vmem:[#allocation18_spill] sm:$0xff] }
 0xaee   : > { %5347 = vmatprep.subr.bf16.mxu0 %v7197_v39  ;;  %v10417_v42 = vpack.c.bf16 %v10415_v41, %v10416_v6  ;;  %v10422_v39 = vld [vmem:[#allocation21_spill] sm:$0xff] }
 0xaf1   : > { %5348 = vmatpush1.bf16.msra.mxu0 %v7195_v4  ;;  %v10423_v4 = vld [vmem:[#allocation19_spill] sm:$0xff] }
 0xaf2   : > { %5349 = vmatprep.subr.bf16.mxu0 %v7200_v33 }
 0xaf5   : > { %5350 = vmatpush1.bf16.msra.mxu0 %v7198_v61 }
 0xaf6   : > { %5351 = vmatprep.subr.bf16.mxu0 %v7203_v10 }
 0xaf9   : > { %5352 = vmatpush1.bf16.msra.mxu0 %v7201_v60 }
 0xafa   : > { %5353 = vmatprep.subr.bf16.mxu0 %v7206_v36 }
 0xafd   : > { %5354 = vmatpush1.bf16.msra.mxu0 %v7204_v30 }
 0xafe   : > { %5396 = vmatprep.subr.bf16.mxu0 %v7209_v37 }
 0xb00   : > { %5356 = vmatmul.mubr.bf16.vlgmr.msra.gmra.mrb[48].mxu0 %v10414_v29 }
 0xb01   : > { %5365 = vmatprep.mubr.bf16.mxu0 %v4378_v51  ;;  %5397 = vmatpush1.bf16.msra.mxu0 %v7207_v13  ;;  %v7219_v51 = vld [vmem:[%s7862_s20 + $0x340] ss:$8 sps:$4 sm:$0xff]  }
 0xb02   : > { %5398 = vmatprep.subr.bf16.mxu0 %v7212_v50  ;;  %v10424_v50 = vld [vmem:[#allocation25_spill] sm:$0xff] }
 0xb05   : > { %5399 = vmatpush1.bf16.msra.mxu0 %v7210_v48  ;;  %v10425_v48 = vld [vmem:[#allocation22_spill] sm:$0xff] }
 0xb06   : > { %5400 = vmatprep.subr.bf16.mxu0 %v7215_v21 }
 0xb08   : > { %5366 = vmatmul.mubr.bf16.gmra.mrb[52].mxu0 %v4377_v44  ;;  %v7230_v44 = vld [vmem:[%s7862_s20 + $0x374] ss:$8 sps:$4 sm:$0xff]  }
 0xb09   : > { %5375 = vmatprep.mubr.bf16.mxu0 %v4386_v53  ;;  %5401 = vmatpush1.bf16.msra.mxu0 %v7213_v63  ;;  %v7231_v53 = vld [vmem:[%s7862_s20 + $0x380] ss:$8 sps:$4 sm:$0xff]  }
 0xb0a   : > { %5402 = vmatprep.subr.bf16.mxu0 %v7218_v0  ;;  %v10426_v0 = vld [vmem:[#allocation24_spill] sm:$0xff] }
 0xb0d   : > { %5403 = vmatpush1.bf16.msra.mxu0 %v7216_v14 }
 0xb0e   : > { %5404 = vmatprep.subr.bf16.mxu0 %v7221_v34  ;;  %v10427_v34 = vld [vmem:[#allocation23_spill] sm:$0xff] }
 0xb10   : > { %5376 = vmatmul.mubr.bf16.gmra.mrb[56].mxu0 %v4385_v26  ;;  %v7237_v26 = vld [vmem:[%s7862_s20 + $0x3a0] ss:$8 sps:$4 sm:$0xff]  }
 0xb11   : > { %5385 = vmatprep.mubr.bf16.mxu0 %v4394_v59  ;;  %5405 = vmatpush1.bf16.msra.mxu0 %v7219_v51  ;;  %v7240_v59 = vld [vmem:[%s7862_s20 + $0x3b0] ss:$8 sps:$4 sm:$0xff]  }
 0xb12   : > { %5406 = vmatprep.subr.bf16.mxu0 %v7224_v12 }
 0xb15   : > { %5407 = vmatpush1.bf16.msra.mxu0 %v7222_v20 }
 0xb16   : > { %5408 = vmatprep.subr.bf16.mxu0 %v7227_v15 }
 0xb18   : > { %5386 = vmatmul.mubr.bf16.gmra.mrb[60].mxu0 %v4393_v19  ;;  %v7248_v19 = vld [vmem:[%s7862_s20 + $0x3d4] ss:$8 sps:$4 sm:$0xff]  }
 0xb19   : > { %5409 = vmatpush1.bf16.msra.mxu0 %v7225_v22  ;;  %5428 = vmatprep.mubr.bf16.mxu0 %v4372_v31  ;;  %v7251_v31 = vld [vmem:[%s7862_s20 + $0x3e4] ss:$8 sps:$4 sm:$0xff]  }
 0xb1a   : > { %5410 = vmatprep.subr.bf16.mxu0 %v7230_v44 }
 0xb1d   : > { %5411 = vmatpush1.bf16.msra.mxu0 %v7228_v38 }
 0xb1e   : > { %5412 = vmatprep.subr.bf16.mxu0 %v7233_v1 }
 0xb21   : > { %5413 = vmatpush1.bf16.msra.mxu0 %v7231_v53  ;;  %v10428_v53 = vld [vmem:[#allocation29_spill] sm:$0xff] }
 0xb22   : > { %5414 = vmatprep.subr.bf16.mxu0 %v7236_v40 }
 0xb25   : > { %5415 = vmatpush1.bf16.msra.mxu0 %v7234_v9 }
 0xb26   : > { %5416 = vmatprep.subr.bf16.mxu0 %v7239_v52 }
 0xb29   : > { %5417 = vmatpush1.bf16.msra.mxu0 %v7237_v26  ;;  %v10429_v26 = vld [vmem:[#allocation26_spill] sm:$0xff] }
 0xb2a   : > { %5418 = vmatprep.subr.bf16.mxu0 %v7242_v2 }
 0xb2d   : > { %5419 = vmatpush1.bf16.msra.mxu0 %v7240_v59 }
 0xb2e   : > { %5420 = vmatprep.subr.bf16.mxu0 %v7245_v3  ;;  %v10430_v3 = vld [vmem:[#allocation28_spill] sm:$0xff] }
 0xb31   : > { %5421 = vmatpush1.bf16.msra.mxu0 %v7243_v57 }
 0xb32   : > { %5422 = vmatprep.subr.bf16.mxu0 %v7248_v19  ;;  %v10431_v19 = vld [vmem:[#allocation27_spill] sm:$0xff] }
 0xb35   : > { %5423 = vmatpush1.bf16.msra.mxu0 %v7246_v8 }
 0xb36   : > { %5424 = vmatprep.subr.bf16.mxu0 %v7251_v31 }
 0xb39   : > { %5425 = vmatpush1.bf16.msra.mxu0 %v7249_v28 }
 0xb3a   : > { %5426 = vmatprep.subr.bf16.mxu0 %v7254_v32 }
 0xb3d   : > { %5427 = vmatpush1.bf16.msra.mxu0 %v7252_v17 }
 0xb40   : > { %5429 = vmatmul.mubr.bf16.vlgmr.msra.gmra.mrb[48].mxu0 %v10417_v42 }
 0xb41   : > { %5438 = vmatprep.mubr.bf16.mxu0 %v4380_v43  ;;  %v4534_v43 = vrot.slane %v4525_v5, %v10419_v62  ;;  %v10432_v5 = vld [vmem:[#allocation32_spill] sm:$0xff] }
 0xb48   : > { %5439 = vmatmul.mubr.bf16.gmra.mrb[52].mxu0 %v4379_v23 }
 0xb49   : > { %5448 = vmatprep.mubr.bf16.mxu0 %v4388_v24 }
 0xb50   : > { %5449 = vmatmul.mubr.bf16.gmra.mrb[56].mxu0 %v4387_v45 }
 0xb51   : > { %5458 = vmatprep.mubr.bf16.mxu0 %v4396_v35 }
 0xb58   : > { %5459 = vmatmul.mubr.bf16.gmra.mrb[60].mxu0 %v4395_v7 }
 0xc13   : > { %v5430_v25 = vpop.f32.mrb[48].mxu0 }
 0xc14   : > { %v6736_v23 = vadd.f32 %v5430_v25, %v4530_v55  ;;  %v5432_v46 = vpop.f32.mrb[49].mxu0 }
 0xc15   : > { %v6737_v24 = vadd.f32 %v5432_v46, %v4534_v43  ;;  %v5434_v49 = vpop.f32.mrb[50].mxu0 }
 0xc16   : > { %v5469_v45 = vadd.f32 %v6736_v23, %v10420_v54  ;;  %v6738_v47 = vadd.f32 %v5434_v49, %v4530_v55  ;;  %v5436_v16 = vpop.f32.mrb[51].mxu0 }
 0xc17   : > { %v5470_v18 = vadd.f32 %v6737_v24, %v10421_v56  ;;  %v6739_v35 = vadd.f32 %v5436_v16, %v4534_v43  ;;  %v10433_v24 = vld [vmem:[#allocation30_spill] sm:$0xff]  ;;  %v10435_v56 = vld [vmem:[#allocation31_spill] sm:$0xff] }
 0xc18   : > { %v5471_v7 = vadd.f32 %v6738_v47, %v10422_v39  ;;  %v10434_v47 = vld [vmem:[#allocation33_spill] sm:$0xff] }
 0xc19   : > { %v5472_v33 = vadd.f32 %v6739_v35, %v10423_v4  ;;  %v5487_v61 = vadd.f32 %v5470_v18, %v5469_v45 }
 0xc1b   : > { %v5440_v10 = vpop.f32.mrb[52].mxu0  ;;  %5488 = vadd.xlane.f32.xlu0 %v5487_v61  ;;  %v5490_v60 = vadd.f32 %v5472_v33, %v5471_v7 }
 0xc1c   : > { %v6740_v36 = vadd.f32 %v5440_v10, %v4530_v55  ;;  %v5442_v30 = vpop.f32.mrb[53].mxu0 }
 0xc1d   : > { %v6741_v37 = vadd.f32 %v5442_v30, %v4534_v43  ;;  %v5444_v13 = vpop.f32.mrb[54].mxu0  ;;  %5491 = vadd.xlane.f32.xlu1 %v5490_v60 }
 0xc1e   : > { %v5473_v58 = vadd.f32 %v6740_v36, %v10424_v50  ;;  %v6742_v27 = vadd.f32 %v5444_v13, %v4530_v55  ;;  %v5446_v29 = vpop.f32.mrb[55].mxu0 }
 0xc1f   : > { %v5474_v21 = vadd.f32 %v6741_v37, %v10425_v48  ;;  %v6743_v63 = vadd.f32 %v5446_v29, %v4534_v43 }
 0xc20   : > { %v5475_v14 = vadd.f32 %v6742_v27, %v10426_v0 }
 0xc21   : > { %v5476_v51 = vadd.f32 %v6743_v63, %v10427_v34  ;;  %v5493_v12 = vadd.f32 %v5474_v21, %v5473_v58 }
 0xc23   : > { %v5450_v20 = vpop.f32.mrb[56].mxu0  ;;  %5494 = vadd.xlane.f32.xlu0 %v5493_v12  ;;  %v5496_v15 = vadd.f32 %v5476_v51, %v5475_v14 }
 0xc24   : > { %v6744_v22 = vadd.f32 %v5450_v20, %v4530_v55  ;;  %v5452_v44 = vpop.f32.mrb[57].mxu0 }
 0xc25   : > { %v6745_v38 = vadd.f32 %v5452_v44, %v4534_v43  ;;  %v5454_v1 = vpop.f32.mrb[58].mxu0  ;;  %5497 = vadd.xlane.f32.xlu1 %v5496_v15 }
 0xc26   : > { %v5477_v40 = vadd.f32 %v6744_v22, %v10428_v53  ;;  %v6746_v9 = vadd.f32 %v5454_v1, %v4530_v55  ;;  %v5456_v52 = vpop.f32.mrb[59].mxu0 }
 0xc27   : > { %v5478_v2 = vadd.f32 %v6745_v38, %v10429_v26  ;;  %v6747_v59 = vadd.f32 %v5456_v52, %v4534_v43 }
 0xc28   : > { %v5479_v57 = vadd.f32 %v6746_v9, %v10430_v3 }
 0xc29   : > { %v5480_v8 = vadd.f32 %v6747_v59, %v10431_v19  ;;  %v5499_v31 = vadd.f32 %v5478_v2, %v5477_v40 }
 0xc2b   : > { %v5460_v28 = vpop.f32.mrb[60].mxu0  ;;  %5500 = vadd.xlane.f32.xlu0 %v5499_v31  ;;  %v5502_v32 = vadd.f32 %v5480_v8, %v5479_v57 }
 0xc2c   : > { %v6748_v17 = vadd.f32 %v5460_v28, %v4530_v55  ;;  %v5462_v41 = vpop.f32.mrb[61].mxu0 }
 0xc2d   : > { %v6749_v6 = vadd.f32 %v5462_v41, %v4534_v43  ;;  %v5464_v42 = vpop.f32.mrb[62].mxu0  ;;  %5503 = vadd.xlane.f32.xlu1 %v5502_v32 }
 0xc2e   : > { %v5481_v25 = vadd.f32 %v6748_v17, %v10432_v5  ;;  %v6750_v23 = vadd.f32 %v5464_v42, %v4530_v55  ;;  %v5466_v46 = vpop.f32.mrb[63].mxu0 }
 0xc2f   : > { %v5482_v49 = vadd.f32 %v6749_v6, %v10433_v24  ;;  %v6751_v54 = vadd.f32 %v5466_v46, %v4534_v43 }
 0xc30   : > { %v5483_v16 = vadd.f32 %v6750_v23, %v10434_v47 }
 0xc31   : > { %v5484_v35 = vadd.f32 %v6751_v54, %v10435_v56  ;;  %v5505_v39 = vadd.f32 %v5482_v49, %v5481_v25 }
 0xc33   : > { %5506 = vadd.xlane.f32.xlu0 %v5505_v39  ;;  %v5508_v4 = vadd.f32 %v5484_v35, %v5483_v16 }
 0xc35   : > { %5509 = vadd.xlane.f32.xlu1 %v5508_v4 }
 0xca8   : > { %v5489_v61 = vpop.xlane.xlu0 %5488 }
 0xca9   : > { %v5511_v10 = vmul.f32 0.00390625, %v5489_v61 }
 0xcaa   : > { %v5492_v60 = vpop.xlane.xlu1 %5491 }
 0xcab   : > { %v9978_v36 = vsub.f32 %v5469_v45, %v5511_v10  ;;  %v9980_v30 = vsub.f32 %v5470_v18, %v5511_v10  ;;  %v5512_v55 = vmul.f32 0.00390625, %v5492_v60 }
 0xcad   : > { %v9982_v37 = vsub.f32 %v5471_v7, %v5512_v55  ;;  %v9984_v13 = vsub.f32 %v5472_v33, %v5512_v55  ;;  %v5535_v43 = vmul.f32 %v9978_v36, %v9978_v36  ;;  %v5536_v50 = vmul.f32 %v9980_v30, %v9980_v30  ;;  %v5485_v55 = vld [vmem:[%s718_s18] sm:$0x3]  ;;  %s10148_s18 = sld [smem:[#allocation4 + $0x2]] (!%p6570_p8) }
 0xcaf   : > { %v5551_v27 = vadd.f32 %v5536_v50, %v5535_v43  ;;  %v5537_v29 = vmul.f32 %v9982_v37, %v9982_v37  ;;  %v5538_v45 = vmul.f32 %v9984_v13, %v9984_v13 }
 0xcb0   : > { %v5495_v18 = vpop.xlane.xlu0 %5494 }
 0xcb1   : > { %v5513_v48 = vmul.f32 0.00390625, %v5495_v18  ;;  %5552 = vadd.xlane.f32.xlu0 %v5551_v27  ;;  %v5554_v7 = vadd.f32 %v5538_v45, %v5537_v29  ;;  %v5486_v27 = vld [vmem:[%s722_s26] sm:$0x3]  ;;  %v10053_v45 = vrot.slane %v5485_v55, %v10418_v11  ;;  %v10056_v18 = vrot.slane %v5485_v55, %v10419_v62  ;;  %s6572_s26 = sld [smem:[#allocation4 + $0x1]] (!%p6570_p8) }
 0xcb2   : > { %v5498_v63 = vpop.xlane.xlu1 %5497 }
 0xcb3   : > { %v9994_v33 = vsub.f32 %v5473_v58, %v5513_v48  ;;  %v9996_v0 = vsub.f32 %v5474_v21, %v5513_v48  ;;  %v5514_v34 = vmul.f32 0.00390625, %v5498_v63  ;;  %5555 = vadd.xlane.f32.xlu1 %v5554_v7  ;;  %v10059_v7 = vrot.slane %v5486_v27, %v10418_v11 }
 0xcb4   : > { %v10062_v63 = vrot.slane %v5486_v27, %v10419_v62 }
 0xcb5   : > { %v9998_v12 = vsub.f32 %v5475_v14, %v5514_v34  ;;  %v10000_v20 = vsub.f32 %v5476_v51, %v5514_v34  ;;  %v5539_v15 = vmul.f32 %v9994_v33, %v9994_v33  ;;  %v5540_v22 = vmul.f32 %v9996_v0, %v9996_v0 }
 0xcb7   : > { %v5557_v44 = vadd.f32 %v5540_v22, %v5539_v15  ;;  %v5541_v38 = vmul.f32 %v9998_v12, %v9998_v12  ;;  %v5542_v58 = vmul.f32 %v10000_v20, %v10000_v20 }
 0xcb8   : > { %v5501_v21 = vpop.xlane.xlu0 %5500 }
 0xcb9   : > { %v5515_v1 = vmul.f32 0.00390625, %v5501_v21  ;;  %5558 = vadd.xlane.f32.xlu0 %v5557_v44  ;;  %v5560_v14 = vadd.f32 %v5542_v58, %v5541_v38 }
 0xcba   : > { %v5504_v53 = vpop.xlane.xlu1 %5503 }
 0xcbb   : > { %v10010_v51 = vsub.f32 %v5477_v40, %v5515_v1  ;;  %v10012_v9 = vsub.f32 %v5478_v2, %v5515_v1  ;;  %v5516_v52 = vmul.f32 0.00390625, %v5504_v53  ;;  %5561 = vadd.xlane.f32.xlu1 %v5560_v14 }
 0xcbd   : > { %v10014_v26 = vsub.f32 %v5479_v57, %v5516_v52  ;;  %v10016_v59 = vsub.f32 %v5480_v8, %v5516_v52  ;;  %v5543_v3 = vmul.f32 %v10010_v51, %v10010_v51  ;;  %v5544_v19 = vmul.f32 %v10012_v9, %v10012_v9 }
 0xcbf   : > { %v5563_v31 = vadd.f32 %v5544_v19, %v5543_v3  ;;  %v5545_v28 = vmul.f32 %v10014_v26, %v10014_v26  ;;  %v5546_v40 = vmul.f32 %v10016_v59, %v10016_v59 }
 0xcc0   : > { %v5507_v2 = vpop.xlane.xlu0 %5506 }
 0xcc1   : > { %v5517_v32 = vmul.f32 0.00390625, %v5507_v2  ;;  %5564 = vadd.xlane.f32.xlu0 %v5563_v31  ;;  %v5566_v57 = vadd.f32 %v5546_v40, %v5545_v28 }
 0xcc2   : > { %v5510_v17 = vpop.xlane.xlu1 %5509 }
 0xcc3   : > { %v10026_v8 = vsub.f32 %v5481_v25, %v5517_v32  ;;  %v10028_v41 = vsub.f32 %v5482_v49, %v5517_v32  ;;  %v5518_v6 = vmul.f32 0.00390625, %v5510_v17  ;;  %5567 = vadd.xlane.f32.xlu1 %v5566_v57 }
 0xcc5   : > { %v10030_v42 = vsub.f32 %v5483_v16, %v5518_v6  ;;  %v10032_v5 = vsub.f32 %v5484_v35, %v5518_v6  ;;  %v5547_v23 = vmul.f32 %v10026_v8, %v10026_v8  ;;  %v5548_v46 = vmul.f32 %v10028_v41, %v10028_v41 }
 0xcc7   : > { %v5569_v24 = vadd.f32 %v5548_v46, %v5547_v23  ;;  %v5549_v54 = vmul.f32 %v10030_v42, %v10030_v42  ;;  %v5550_v25 = vmul.f32 %v10032_v5, %v10032_v5 }
 0xcc9   : > { %5570 = vadd.xlane.f32.xlu0 %v5569_v24  ;;  %v5572_v49 = vadd.f32 %v5550_v25, %v5549_v54 }
 0xccb   : > { %5573 = vadd.xlane.f32.xlu1 %v5572_v49 }
 0xd3e   : > { %v5553_v47 = vpop.xlane.xlu0 %5552 }
 0xd3f   : > { %v5575_v16 = vmul.f32 0.00390625, %v5553_v47 }
 0xd40   : > { %v5556_v56 = vpop.xlane.xlu1 %5555 }
 0xd41   : > { %v5583_v35 = vadd.f32 1e-12, %v5575_v16  ;;  %v5576_v39 = vmul.f32 0.00390625, %v5556_v56 }
 0xd43   : > { %7463 = vrsqrt.f32 %v5583_v35  ;;  %v5584_v4 = vadd.f32 1e-12, %v5576_v39 }
 0xd45   : > { %7465 = vrsqrt.f32 %v5584_v4 }
 0xd46   : > { %v5559_v61 = vpop.xlane.xlu0 %5558 }
 0xd47   : > { %v5577_v10 = vmul.f32 0.00390625, %v5559_v61 }
 0xd48   : > { %v5562_v60 = vpop.xlane.xlu1 %5561 }
 0xd49   : > { %v5585_v43 = vadd.f32 1e-12, %v5577_v10  ;;  %v5578_v50 = vmul.f32 0.00390625, %v5562_v60 }
 0xd4b   : > { %7467 = vrsqrt.f32 %v5585_v43  ;;  %v5586_v29 = vadd.f32 1e-12, %v5578_v50 }
 0xd4d   : > { %v7464_v48 = vpop.eup %7463  ;;  %7469 = vrsqrt.f32 %v5586_v29 }
 0xd4e   : > { %v5599_v34 = vmul.f32 %v7464_v48, %v9978_v36  ;;  %v5600_v15 = vmul.f32 %v7464_v48, %v9980_v30  ;;  %v5565_v22 = vpop.xlane.xlu0 %5564 }
 0xd4f   : > { %v7466_v44 = vpop.eup %7465  ;;  %v5579_v38 = vmul.f32 0.00390625, %v5565_v22 }
 0xd50   : > { %v5626_v58 = vmul.f32 %v10053_v45, %v5599_v34  ;;  %v5627_v21 = vmul.f32 %v10056_v18, %v5600_v15  ;;  %v5601_v1 = vmul.f32 %v7466_v44, %v9982_v37  ;;  %v5602_v14 = vmul.f32 %v7466_v44, %v9984_v13  ;;  %v5568_v11 = vpop.xlane.xlu1 %5567 }
 0xd51   : > { %v5587_v53 = vadd.f32 1e-12, %v5579_v38  ;;  %v5580_v52 = vmul.f32 0.00390625, %v5568_v11  ;;  %v7637_v11 = vmov (!%p6570_p8), 0.0  }
 0xd52   : > { %v10071_v62 = vadd.f32 %v10059_v7, %v5626_v58  ;;  %v10074_v36 = vadd.f32 %v10062_v63, %v5627_v21  ;;  %v5628_v30 = vmul.f32 %v10053_v45, %v5601_v1  ;;  %v5629_v3 = vmul.f32 %v10056_v18, %v5602_v14  ;;  %5784 = vmatprep.mubr.f32.mxu0 (!%p6570_p8), %v7637_v11 }
 0xd53   : > { %7471 = vrsqrt.f32 %v5587_v53  ;;  %v5588_v19 = vadd.f32 1e-12, %v5580_v52  ;;  %v10437_v53 = vlaneseq (!%p6570_p8) }
 0xd54   : > { %5669 = vst [vmem:[#allocation2] sm:$0xff] %v10071_v62  ;;  %5670 = vst [vmem:[#allocation2 + $0x8] sm:$0xff] %v10074_v36  ;;  %v10081_v37 = vadd.f32 %v10059_v7, %v5628_v30  ;;  %v10084_v13 = vadd.f32 %v10062_v63, %v5629_v3  ;;  %v7498_v3 = vld [vmem:[%s10436_s25 + $0x8] sm:$0xff] (!%p6570_p8)  }
 0xd55   : > { %v7468_v31 = vpop.eup %7467  ;;  %7473 = vrsqrt.f32 %v5588_v19  ;;  %v5690_v52 = vand.u32 (!%p6570_p8), 127, %v10437_v53 }
 0xd56   : > { %5671 = vst [vmem:[#allocation2 + $0x10] sm:$0xff] %v10081_v37  ;;  %5672 = vst [vmem:[#allocation2 + $0x18] sm:$0xff] %v10084_v13  ;;  %v5603_v28 = vmul.f32 %v7468_v31, %v9994_v33  ;;  %v5604_v40 = vmul.f32 %v7468_v31, %v9996_v0  ;;  %v5571_v2 = vpop.xlane.xlu0 %5570  ;;  %v7499_v31 = vld [vmem:[%s10436_s25 + $0x50] sm:$0xff] (!%p6570_p8)  }
 0xd57   : > { %v7470_v32 = vpop.eup %7469  ;;  %v5581_v57 = vmul.f32 0.00390625, %v5571_v2 }
 0xd58   : > { %v5630_v17 = vmul.f32 %v10053_v45, %v5603_v28  ;;  %v5631_v6 = vmul.f32 %v10056_v18, %v5604_v40  ;;  %v5605_v23 = vmul.f32 %v7470_v32, %v9998_v12  ;;  %v5606_v46 = vmul.f32 %v7470_v32, %v10000_v20  ;;  %v5574_v24 = vpop.xlane.xlu1 %5573 }
 0xd59   : > { %v5589_v54 = vadd.f32 1e-12, %v5581_v57  ;;  %v5582_v25 = vmul.f32 0.00390625, %v5574_v24  ;;  %v5702_v28 = vstv (!%p6570_p8), %s10148_s18  ;;  %v5707_v40 = vstv (!%p6570_p8), %s10150_s28 }
 0xd5a   : > { %v10095_v49 = vadd.f32 %v10059_v7, %v5630_v17  ;;  %v10098_v33 = vadd.f32 %v10062_v63, %v5631_v6  ;;  %v5632_v0 = vmul.f32 %v10053_v45, %v5605_v23  ;;  %v5633_v47 = vmul.f32 %v10056_v18, %v5606_v46  ;;  %v7500_v6 = vld [vmem:[%s10436_s25 + $0x10] sm:$0xff] (!%p6570_p8)   ;;  %v7501_v23 = vld [vmem:[%s10436_s25 + $0x58] sm:$0xff] (!%p6570_p8)  }
 0xd5b   : > { %7475 = vrsqrt.f32 %v5589_v54  ;;  %v5590_v16 = vadd.f32 1e-12, %v5582_v25  ;;  %vm5703_vm4 = vcmp.eq.s32.totalorder (!%p6570_p8), %v5690_v52, %v5702_v28  ;;  %vm5708_vm6 = vcmp.eq.s32.totalorder (!%p6570_p8), %v5690_v52, %v5707_v40  ;;  %v7502_v25 = vld [vmem:[%s10436_s25 + $0x18] sm:$0xff] (!%p6570_p8)  }
 0xd5c   : > { %5673 = vst [vmem:[#allocation2 + $0x20] sm:$0xff] %v10095_v49  ;;  %5674 = vst [vmem:[#allocation2 + $0x28] sm:$0xff] %v10098_v33  ;;  %v10105_v12 = vadd.f32 %v10059_v7, %v5632_v0  ;;  %v5660_v20 = vadd.f32 %v10062_v63, %v5633_v47  ;;  %v6575_v57 = vsel (!%p6570_p8), %vm5703_vm4, 1.0, %v7637_v11  ;;  %v6577_v24 = vsel (!%p6570_p8), %vm5708_vm6, 1.0, %v7637_v11  ;;  %v7504_v0 = vld [vmem:[%s10436_s25 + $0x20] sm:$0xff] (!%p6570_p8)   ;;  %v7505_v47 = vld [vmem:[%s10436_s25 + $0x68] sm:$0xff] (!%p6570_p8)  }
 0xd5d   : > { %v7472_v56 = vpop.eup %7471  ;;  %7477 = vrsqrt.f32 %v5590_v16  ;;  %v7506_v16 = vld [vmem:[%s10436_s25 + $0x28] sm:$0xff] (!%p6570_p8)  }
 0xd5e   : > { %5675 = vst [vmem:[#allocation2 + $0x30] sm:$0xff] %v10105_v12  ;;  %5676 = vst [vmem:[#allocation2 + $0x38] sm:$0xff] %v5660_v20  ;;  %v5607_v35 = vmul.f32 %v7472_v56, %v10010_v51  ;;  %v5608_v39 = vmul.f32 %v7472_v56, %v10012_v9  ;;  %v7509_v56 = vld [vmem:[%s10436_s25 + $0x78] sm:$0xff] (!%p6570_p8)  }
 0xd5f   : > { %v7474_v4 = vpop.eup %7473 }
 0xd60   : > { %v5634_v61 = vmul.f32 %v10053_v45, %v5607_v35  ;;  %v5635_v10 = vmul.f32 %v10056_v18, %v5608_v39  ;;  %v5609_v60 = vmul.f32 %v7474_v4, %v10014_v26  ;;  %v5610_v55 = vmul.f32 %v7474_v4, %v10016_v59  ;;  %v7510_v35 = vld [vmem:[%s10436_s25 + $0x38] sm:$0xff] (!%p6570_p8)  }
 0xd62   : > { %v10116_v43 = vadd.f32 %v10059_v7, %v5634_v61  ;;  %v5662_v50 = vadd.f32 %v10062_v63, %v5635_v10  ;;  %v5636_v27 = vmul.f32 %v10053_v45, %v5609_v60  ;;  %v5637_v51 = vmul.f32 %v10056_v18, %v5610_v55  ;;  %v6579_v55 = vld [vmem:[%s10438_s17] ss:$0 sm:$0xff] (!%p6570_p8) }
 0xd64   : > { %5677 = vst [vmem:[#allocation2 + $0x40] sm:$0xff] %v10116_v43  ;;  %5678 = vst [vmem:[#allocation2 + $0x48] sm:$0xff] %v5662_v50  ;;  %v10123_v9 = vadd.f32 %v10059_v7, %v5636_v27  ;;  %v5664_v29 = vadd.f32 %v10062_v63, %v5637_v51 }
 0xd65   : > { %v7476_v26 = vpop.eup %7475 }
 0xd66   : > { %5679 = vst [vmem:[#allocation2 + $0x50] sm:$0xff] %v10123_v9  ;;  %5680 = vst [vmem:[#allocation2 + $0x58] sm:$0xff] %v5664_v29  ;;  %v5611_v59 = vmul.f32 %v7476_v26, %v10026_v8  ;;  %v5612_v48 = vmul.f32 %v7476_v26, %v10028_v41  ;;  %v6730_v30 = vpack.c.bf16 (!%p6570_p8), %v10123_v9, %v10116_v43 }
 0xd67   : > { %v7478_v34 = vpop.eup %7477 }
 0xd68   : > { %v5638_v15 = vmul.f32 %v10053_v45, %v5611_v59  ;;  %v5639_v22 = vmul.f32 %v10056_v18, %v5612_v48  ;;  %v5613_v44 = vmul.f32 %v7478_v34, %v10030_v42  ;;  %v5614_v38 = vmul.f32 %v7478_v34, %v10032_v5  ;;  %5688 = sbr.rel (%p6570_p8) target bundleno = 3911 (0xf47), region = 96 }
 0xd69   : > { %v6720_v42 = vpack.c.bf16 (!%p6570_p8), %v10084_v13, %v10074_v36  ;;  %v6722_v5 = vpack.c.bf16 (!%p6570_p8), %v10081_v37, %v10071_v62  ;;  %v7497_v62 = vld [vmem:[%s10436_s25 + $0x48] sm:$0xff] (!%p6570_p8)   ;;  %v6728_v36 = vpack.c.bf16 (!%p6570_p8), %v5664_v29, %v5662_v50  ;;  %v5692_v37 = vstv (!%p6570_p8), %s5691_s22 }
 0xd6a   : > { %v10134_v58 = vadd.f32 %v10059_v7, %v5638_v15  ;;  %v5666_v21 = vadd.f32 %v10062_v63, %v5639_v22  ;;  %v5640_v1 = vmul.f32 %v10053_v45, %v5613_v44  ;;  %v5641_v8 = vmul.f32 %v10056_v18, %v5614_v38  ;;  %v7495_v18 = vld [vmem:[%s10436_s25 + $0x40] sm:$0xff] (!%p6570_p8)  }
 0xd6b   : > { %v6724_v45 = vpack.c.bf16 (!%p6570_p8), %v5660_v20, %v10098_v33  ;;  %6721 = vmatprep.subr.bf16.mxu0 (!%p6570_p8), %v6720_v42  ;;  %6634 = vmatprep.subr.bf16.mxu1 (!%p6570_p8), %v7495_v18  ;;  %v5697_v13 = vstv (!%p6570_p8), %s6572_s26  ;;  %vm5693_vm2 = vcmp.eq.s32.totalorder (!%p6570_p8), %v5690_v52, %v5692_v37  ;;  %v7508_v20 = vld [vmem:[%s10436_s25 + $0x30] sm:$0xff] (!%p6570_p8)  }
 0xd6c   : > { %5681 = vst [vmem:[#allocation2 + $0x60] sm:$0xff] %v10134_v58  ;;  %5682 = vst [vmem:[#allocation2 + $0x68] sm:$0xff] %v5666_v21  ;;  %v5667_v41 = vadd.f32 %v10059_v7, %v5640_v1  ;;  %v5668_v14 = vadd.f32 %v10062_v63, %v5641_v8  ;;  %v7496_v7 = vld [vmem:[%s10436_s25] sm:$0xff] (!%p6570_p8)   ;;  %6723 = vmatpush1.bf16.msra.mxu0 (!%p6570_p8), %v6722_v5  ;;  %v6726_v63 = vpack.c.bf16 (!%p6570_p8), %v10105_v12, %v10095_v49  ;;  %v7507_v12 = vld [vmem:[%s10436_s25 + $0x70] sm:$0xff] (!%p6570_p8)  }
 0xd6d   : > { %6725 = vmatprep.subr.bf16.mxu0 (!%p6570_p8), %v6724_v45  ;;  %6635 = vmatpush3.bf16.msra.mxu1 (!%p6570_p8), %v7496_v7  ;;  %vm5698_vm3 = vcmp.eq.s32.totalorder (!%p6570_p8), %v5690_v52, %v5697_v13  ;;  %v6571_v2 = vsel (!%p6570_p8), %vm5693_vm2, 1.0, %v7637_v11  ;;  %v7503_v49 = vld [vmem:[%s10436_s25 + $0x60] sm:$0xff] (!%p6570_p8)  }
 0xd6e   : > { %5683 = vst [vmem:[#allocation2 + $0x70] sm:$0xff] %v5667_v41  ;;  %5684 = vst [vmem:[#allocation2 + $0x78] sm:$0xff] %v5668_v14  ;;  %v6732_v19 = vpack.c.bf16 (!%p6570_p8), %v5668_v14, %v5666_v21  ;;  %6636 = vmatprep.subr.bf16.mxu1 (!%p6570_p8), %v7497_v62  ;;  %v6573_v32 = vsel (!%p6570_p8), %vm5698_vm3, 1.0, %v7637_v11  ;;  %v6734_v46 = vpack.c.bf16 (!%p6570_p8), %v5667_v41, %v10134_v58 }
 0xd6f   : > { %v5712_v17 = vsel %vm5711_vm1, %v6571_v2, %v6573_v32 }
 0xd70   : > { %6727 = vmatpush1.bf16.msra.mxu0 %v6726_v63  ;;  %v5714_v54 = vsel %vm5713_vm5, %v5712_v17, %v6575_v57 }
 0xd71   : > { %6729 = vmatprep.subr.bf16.mxu0 %v6728_v36  ;;  %6637 = vmatpush3.bf16.msra.mxu1 %v7498_v3  ;;  %v5716_v33 = vsel %vm5715_vm7, %v5714_v54, %v6577_v24 }
 0xd72   : > { %6638 = vmatprep.subr.bf16.mxu1 %v7499_v31 }
 0xd74   : > { %6731 = vmatpush1.bf16.msra.mxu0 %v6730_v30 }
 0xd75   : > { %6733 = vmatprep.subr.bf16.mxu0 %v6732_v19  ;;  %6639 = vmatpush3.bf16.msra.mxu1 %v7500_v6 }
 0xd76   : > { %6640 = vmatprep.subr.bf16.mxu1 %v7501_v23 }
 0xd78   : > { %6735 = vmatpush1.bf16.msra.mxu0 %v6734_v46 }
 0xd79   : > { %6641 = vmatpush3.bf16.msra.mxu1 %v7502_v25 }
 0xd7a   : > { %6642 = vmatprep.subr.bf16.mxu1 %v7503_v49 }
 0xd7b   : > { %6578 = vmatmul.mubr.msk.f32.vlgmr.msra.gmra.mrb[0].mxu0 %vm1716_vm0, %v5716_v33 }
 0xd7d   : > { %6643 = vmatpush3.bf16.msra.mxu1 %v7504_v0 }
 0xd7e   : > { %6644 = vmatprep.subr.bf16.mxu1 %v7505_v47 }
 0xd81   : > { %6645 = vmatpush3.bf16.msra.mxu1 %v7506_v16 }
 0xd82   : > { %6646 = vmatprep.subr.bf16.mxu1 %v7507_v12 }
 0xd85   : > { %6647 = vmatpush3.bf16.msra.mxu1 %v7508_v20 }
 0xd86   : > { %6648 = vmatprep.subr.bf16.mxu1 %v7509_v56 }
 0xd89   : > { %6649 = vmatpush3.bf16.msra.mxu1 %v7510_v35 }
 0xe4e   : > { %v5786_v39 = vpop.f32.mrb[0].mxu0 }
 0xe4f   : > { %v5788_v4 = vpop.f32.mrb[1].mxu0  ;;  %v5791_v10 = vpack.c.bf16 %v5786_v39, %v5786_v39 }
 0xe50   : > { %v5792_v61 = vpack.c.bf16 %v5788_v4, %v5788_v4 }
 0xe52   : > { %5960 = vmatprep.mubr.bf16.mxu1 %v5792_v61 }
 0xe53   : > { %5961 = vmatmul.mubr.bf16.vlgmr.msra.gmra.mrb[0].mxu1 %v5791_v10 }
 0xf26   : > { %v6650_v60 = vpop.f32.mrb[0].mxu1 }
 0xf27   : > { %v6651_v43 = vpop.f32.mrb[1].mxu1 }
 0xf28   : > { %v6652_v50 = vadd.f32 %v6651_v43, %v6650_v60  ;;  %v6653_v27 = vpop.f32.mrb[2].mxu1 }
 0xf29   : > { %v6654_v51 = vpop.f32.mrb[3].mxu1 }
 0xf2a   : > { %v5963_v9 = vadd.f32 %v6652_v50, %v6579_v55 }
 0xf2c   : > { %v6596_v29 = vmul.f32 -1.442695, %v5963_v9 }
 0xf2e   : > { %7511 = vpow2.f32 %v6596_v29 }
 0xf38   : > { %v7512_v26 = vpop.eup %7511 }
 0xf39   : > { %v5971_v59 = vadd.f32 1.0, %v7512_v26 }
 0xf3b   : > { %7513 = vrcp.f32 %v5971_v59 }
 0xf45   : > { %v7514_v48 = vpop.eup %7513 }
 0xf46   : > { %5974 = vst [vmem:[%s10439_s16] sm:$0xf] %v7514_v48 }
 0xf47 PF: > { %s10440_s29 = sld [smem:[#allocation14_spill]]  ;;  %s10441_s26 = sld [smem:[#allocation12_spill]] }
 0xf48   : > { %s10442_s27 = sld [smem:[#allocation13_spill]]  ;;  %s10443_s28 = sld [smem:[#allocation15_spill]] }
 0xf4d   : > { %p35_p11 = scmp.ge.s32.totalorder %s10440_s29, 4  }
 0xf4f   :  { %37 = sbr.rel (!%p35_p11) target bundleno = 28 (0x1c), region = 167 }
 0xf56   :  { %5986 = vsyncpa [#allocation6], 1 }
 0xf57   :  { %5988 = vsyncpa [#allocation6 + $0x1], 1 }
 0xf58   :  { %5989 = vsyncpa [#allocation8], 1 }
 0xf59   :  { %5991 = vsyncpa [#allocation8 + $0x1], 1 }

</bundles_post_ra>
